<compile_context>
chip_gen: v7x
topology: tpu7x:2x2x1
jax: 0.10.0
libtpu: 0.0.40
codegen_flags: <defaults>
</compile_context>

<pallas_src>
import functools

import jax
import jax.numpy as jnp
from jax import lax
from jax.experimental import pallas as pl
from jax.experimental.pallas import tpu as pltpu

EPS = 1e-5            # nn.GroupNorm default eps
DENOM_FLOOR = 1e-20   # guards softmax denominator against total underflow


def _round_up(v, m):
    return (v + m - 1) // m * m


def _const_spec(shape):
    """BlockSpec for a grid-invariant (resident) operand.

    The index_map is constant, so double-buffering buys nothing; request a
    single buffer (falls back to the default on jax versions without
    pipeline_mode support).
    """
    idx = lambda b: (0,) * len(shape)
    try:
        return pl.BlockSpec(shape, idx, pipeline_mode=pl.Buffered(1))
    except (TypeError, AttributeError):
        return pl.BlockSpec(shape, idx)


def _block_kernel(x_ref, w1_ref, w2_ref, b_ref, pool_ref, poolt_ref, o_ref,
                  *, BT, C, H, QKV_ROWS):
    """One grid step: BT batch elements, each a (C, PN) lane-dense tile."""
    PN = x_ref.shape[-1]
    OUT_OFF = QKV_ROWS
    M1_OFF = QKV_ROWS + C

    # ---- resident weights (bf16) -------------------------------------------
    w_qkv = w1_ref[0:QKV_ROWS, :]              # [k; v; q; pad] * gamma1 (GN1 folded)
    w_out = w1_ref[OUT_OFF:OUT_OFF + C, :]
    w_m1 = w1_ref[M1_OFF:M1_OFF + H, :]        # * gamma2 (GN2 folded)
    w_m2 = w2_ref[...]

    # ---- packed bias / fold-correction columns (f32, (rows, 1)) -------------
    wb1 = b_ref[0:QKV_ROWS, :]                 # W_qkv @ beta1 + b_qkv
    wg1 = b_ref[QKV_ROWS:2 * QKV_ROWS, :]      # W_qkv @ gamma1
    o0 = 2 * QKV_ROWS
    out_b = b_ref[o0:o0 + C, :]
    wb2 = b_ref[o0 + C:o0 + C + H, :]          # m1_w @ beta2 + m1_b
    wg2 = b_ref[o0 + C + H:o0 + C + 2 * H, :]  # m1_w @ gamma2
    m2_b = b_ref[o0 + C + 2 * H:o0 + 2 * C + 2 * H, :]

    pool = pool_ref[...]                       # (PN, Pp): lane -> pixel sum
    poolt = poolt_ref[...]                     # (Pp, PN): pixel -> lane broadcast
    inv_cn = 1.0 / (C * PN)

    def body(bt, carry):
        x = x_ref[bt]                          # (C, PN) f32, one batch element

        # GroupNorm(num_groups=1) #1, folded into the QKV matmul:
        #   W @ GN(x) = (W*g) @ (x*istd) + (W@beta + b) - mean*istd*(W@g)
        s = jnp.sum(x)
        ss = jnp.sum(x * x)
        mean = s * inv_cn
        var = jnp.maximum(ss * inv_cn - mean * mean, 0.0)   # clamp cancellation
        istd = lax.rsqrt(var + EPS)
        xs = (x * istd).astype(jnp.bfloat16)                # single scaled cast
        qkv_bias = wb1 - (mean * istd) * wg1                # (QKV_ROWS, 1)
        qkv = jnp.dot(w_qkv, xs,
                      preferred_element_type=jnp.float32) + qkv_bias
        k = qkv[0:C, :]
        v = qkv[C:2 * C, :]
        q = qkv[2 * C:2 * C + 1, :]                         # (1, PN) query row

        # LinearSelfAttention: softmax(q) over each pixel's N patches, done with
        # factored pooling matmuls; the denominator row rides in the same matmul.
        e = jnp.exp(q - jnp.max(q))                         # (1, PN), shift-inv.
        ke_aug = jnp.concatenate([k * e, e], axis=0)        # (C+1, PN)
        pooled = jnp.dot(ke_aug.astype(jnp.bfloat16), pool,
                         preferred_element_type=jnp.float32)  # (C+1, Pp)
        denom = jnp.maximum(pooled[C:C + 1, :], DENOM_FLOOR)  # no 0/0 -> NaN
        ctx_p = pooled[0:C, :] * pl.reciprocal(denom, approx=True)   # (C, Pp)
        ctx = jnp.dot(ctx_p.astype(jnp.bfloat16), poolt,
                      preferred_element_type=jnp.float32)   # broadcast over N
        att = jnp.maximum(v, 0.0) * ctx                     # relu(v) * context
        att_o = jnp.dot(w_out, att.astype(jnp.bfloat16),
                        preferred_element_type=jnp.float32) + out_b
        x1 = x + att_o                                      # residual 1

        # GroupNorm #2 (folded into conv1) + MLP: 1x1 conv -> SiLU -> 1x1 conv.
        s2 = jnp.sum(x1)
        ss2 = jnp.sum(x1 * x1)
        mean2 = s2 * inv_cn
        var2 = jnp.maximum(ss2 * inv_cn - mean2 * mean2, 0.0)
        istd2 = lax.rsqrt(var2 + EPS)
        x1s = (x1 * istd2).astype(jnp.bfloat16)
        m1_bias = wb2 - (mean2 * istd2) * wg2
        h = jnp.dot(w_m1, x1s,
                    preferred_element_type=jnp.float32) + m1_bias    # (H, PN)
        h = h * jax.nn.sigmoid(h)                           # SiLU
        y = jnp.dot(w_m2, h.astype(jnp.bfloat16),
                    preferred_element_type=jnp.float32) + m2_b       # (C, PN)
        o_ref[bt] = x1 + y                                  # residual 2
        return carry

    lax.fori_loop(0, BT, body, 0, unroll=True)


def pack_params(params, P, N):
    """One-time packing of the 16 module tensors into 6 kernel operands.

    Call at model init (or under jit, where it constant-folds); it must not
    sit on the per-forward hot path.
    """
    C = params["out_w"].shape[0]
    H = params["m1_w"].shape[0]
    PN = P * N
    QKV_ROWS = _round_up(2 * C + 1, 8)

    f32 = jnp.float32
    qkv_w = params["qkv_w"].astype(f32)
    qkv_b = params["qkv_b"].astype(f32)
    # reorder qkv output channels to [k; v; q], pad rows to a sublane multiple
    w_kvq = jnp.concatenate([qkv_w[1:1 + C], qkv_w[1 + C:], qkv_w[0:1]], axis=0)
    b_kvq = jnp.concatenate([qkv_b[1:1 + C], qkv_b[1 + C:], qkv_b[0:1]], axis=0)
    pad = QKV_ROWS - (2 * C + 1)
    w_kvq = jnp.pad(w_kvq, ((0, pad), (0, 0)))
    b_kvq = jnp.pad(b_kvq, ((0, pad),))

    g1w = params["gn1_w"].astype(f32)
    g1b = params["gn1_b"].astype(f32)
    g2w = params["gn2_w"].astype(f32)
    g2b = params["gn2_b"].astype(f32)
    m1_w = params["m1_w"].astype(f32)
    m1_b = params["m1_b"].astype(f32)

    # GroupNorm folds (see kernel): scale weight columns by gamma and keep
    # W@gamma / (W@beta + b) column vectors for the in-kernel bias correction.
    w_qkv_f = w_kvq * g1w[None, :]
    wg1 = w_kvq @ g1w
    wb1 = w_kvq @ g1b + b_kvq
    w_m1_f = m1_w * g2w[None, :]
    wg2 = m1_w @ g2w
    wb2 = m1_w @ g2b + m1_b

    # weight slab (bf16): [qkv (GN-folded, padded); out_proj; mlp1 (GN-folded)]
    w1 = jnp.concatenate([w_qkv_f, params["out_w"].astype(f32), w_m1_f],
                         axis=0).astype(jnp.bfloat16)       # (QKV_ROWS+C+H, C)
    w2 = params["m2_w"].astype(jnp.bfloat16)                # (C, H)
    # bias / fold-correction slab (f32 column vectors)
    b_slab = jnp.concatenate(
        [wb1, wg1, params["out_b"].astype(f32), wb2, wg2,
         params["m2_b"].astype(f32)], axis=0).reshape(-1, 1)

    # Factored pooling matrices (replace the O(PN^2) segment matrix):
    # pool[i, p] = 1 iff lane i belongs to pixel p (= i // N); poolt = pool^T.
    Pp = _round_up(P, 8)
    pid = jnp.arange(PN) // N
    cols = jnp.arange(Pp)
    pool = (pid[:, None] == cols[None, :]).astype(jnp.bfloat16)    # (PN, Pp)
    poolt = (cols[:, None] == pid[None, :]).astype(jnp.bfloat16)   # (Pp, PN)

    return dict(w1=w1, w2=w2, b=b_slab, pool=pool, poolt=poolt,
                C=C, H=H, P=P, N=N, QKV_ROWS=QKV_ROWS)


def linear_transformer_block(x_nchw, packed, *, batch_tile=4):
    """x_nchw: (B, C, P, N) float32.  Returns (B, C, P, N) float32."""
    B, C, P, N = x_nchw.shape
    assert (C, P, N) == (packed["C"], packed["P"], packed["N"])
    assert C % 8 == 0, "embed_dim must be a multiple of 8 (sublane alignment)"
    PN = P * N
    H, QKV_ROWS = packed["H"], packed["QKV_ROWS"]

    # Batch several elements per grid step to amortize per-step pipeline
    # overhead; keep >=2 grid steps when possible so v7x's two TensorCores
    # both get work (dimension_semantics=("parallel",)).
    bt = max(1, min(batch_tile, B))
    while B % bt:
        bt -= 1

    x = x_nchw.reshape(B, C, PN)     # row-major (P, N) collapse, no HBM transpose

    kernel = functools.partial(_block_kernel, BT=bt, C=C, H=H,
                               QKV_ROWS=QKV_ROWS)
    x_spec = pl.BlockSpec((bt, C, PN), lambda b: (b, 0, 0))

    out = pl.pallas_call(
        kernel,
        out_shape=jax.ShapeDtypeStruct((B, C, PN), jnp.float32),
        grid_spec=pltpu.PrefetchScalarGridSpec(
            num_scalar_prefetch=0,
            grid=(B // bt,),
            in_specs=[x_spec,
                      _const_spec(packed["w1"].shape),
                      _const_spec(packed["w2"].shape),
                      _const_spec(packed["b"].shape),
                      _const_spec(packed["pool"].shape),
                      _const_spec(packed["poolt"].shape)],
            out_specs=x_spec,
        ),
        compiler_params=pltpu.CompilerParams(
            dimension_semantics=("parallel",)),
    )(x, packed["w1"], packed["w2"], packed["b"], packed["pool"],
      packed["poolt"])

    return out.reshape(B, C, P, N)


# ---------------- pure-JAX f32 reference (mirrors the PyTorch forward) -------
def ref_block(x, p):
    C = x.shape[1]

    def gn(t, w, b):
        mean = jnp.mean(t, axis=(1, 2, 3), keepdims=True)
        var = jnp.mean(jnp.square(t - mean), axis=(1, 2, 3), keepdims=True)
        return (t - mean) / jnp.sqrt(var + EPS) * w[None, :, None, None] \
            + b[None, :, None, None]

    def conv1x1(t, w, b):   # w: (Cout, Cin)
        return jnp.einsum("oc,bcpn->bopn", w, t) + b[None, :, None, None]

    xn = gn(x, p["gn1_w"], p["gn1_b"])
    qkv = conv1x1(xn, p["qkv_w"], p["qkv_b"])
    q, k, v = qkv[:, :1], qkv[:, 1:1 + C], qkv[:, 1 + C:]
    scores = jax.nn.softmax(q, axis=-1)
    ctx = jnp.sum(k * scores, axis=-1, keepdims=True)
    att = jax.nn.relu(v) * ctx
    x1 = x + conv1x1(att, p["out_w"], p["out_b"])

    x1n = gn(x1, p["gn2_w"], p["gn2_b"])
    h = conv1x1(x1n, p["m1_w"], p["m1_b"])
    h = h * jax.nn.sigmoid(h)
    y = conv1x1(h, p["m2_w"], p["m2_b"])
    return x1 + y


if __name__ == "__main__":
    B, C, P, N = 8, 32, 8, 16          # embed_dim=32, patch area=8, num patches=16
    mlp_ratio = 2.0
    hidden = int(C * mlp_ratio)

    key = jax.random.PRNGKey(0)
    ks = jax.random.split(key, 16)

    params = {
        "gn1_w": 1.0 + 0.1 * jax.random.normal(ks[0], (C,), jnp.float32),
        "gn1_b": 0.1 * jax.random.normal(ks[1], (C,), jnp.float32),
        "qkv_w": 0.1 * jax.random.normal(ks[2], (1 + 2 * C, C), jnp.float32),
        "qkv_b": 0.05 * jax.random.normal(ks[3], (1 + 2 * C,), jnp.float32),
        "out_w": 0.1 * jax.random.normal(ks[4], (C, C), jnp.float32),
        "out_b": 0.05 * jax.random.normal(ks[5], (C,), jnp.float32),
        "gn2_w": 1.0 + 0.1 * jax.random.normal(ks[6], (C,), jnp.float32),
        "gn2_b": 0.1 * jax.random.normal(ks[7], (C,), jnp.float32),
        "m1_w": 0.1 * jax.random.normal(ks[8], (hidden, C), jnp.float32),
        "m1_b": 0.05 * jax.random.normal(ks[9], (hidden,), jnp.float32),
        "m2_w": 0.1 * jax.random.normal(ks[10], (C, hidden), jnp.float32),
        "m2_b": 0.05 * jax.random.normal(ks[11], (C,), jnp.float32),
    }

    x = jax.random.normal(ks[12], (B, C, P, N), jnp.float32)

    packed = pack_params(params, P, N)        # one-time packing, off the hot path
    fwd = jax.jit(functools.partial(linear_transformer_block, packed=packed,
                                    batch_tile=4))
    out = jax.block_until_ready(fwd(x))
    ref = jax.block_until_ready(ref_block(x, params))

    assert out.shape == (B, C, P, N), out.shape
    # bf16 MXU inputs + approx reciprocal -> relaxed tolerance vs f32 reference
    err = float(jnp.max(jnp.abs(out - ref)))
    assert jnp.allclose(out, ref, atol=5e-2, rtol=5e-2), err
    print("KERNEL_OK")
</pallas_src>

<mosaic_0001>
module attributes {stable_mosaic.version = 11 : i64} {
  func.func @_block_kernel(%arg0: i32, %arg1: memref<4x32x128xf32, #tpu.memory_space<vmem>>, %arg2: memref<168x32xbf16, #tpu.memory_space<vmem>>, %arg3: memref<32x64xbf16, #tpu.memory_space<vmem>>, %arg4: memref<336x1xf32, #tpu.memory_space<vmem>>, %arg5: memref<128x8xbf16, #tpu.memory_space<vmem>>, %arg6: memref<8x128xbf16, #tpu.memory_space<vmem>>, %arg7: memref<4x32x128xf32, #tpu.memory_space<vmem>>) attributes {dimension_semantics = [#tpu.dimension_semantics<parallel>], iteration_bounds = array<i64: 2>, scalar_prefetch = 0 : i64, scratch_operands = 0 : i64, tpu.core_type = #tpu.core_type<tc>, window_params = [{transform_indices = @transform_0, window_bounds = array<i64: 4, 32, 128>}, {pipeline_mode = #tpu.pipeline_mode<synchronous>, transform_indices = @transform_1, window_bounds = array<i64: 168, 32>}, {pipeline_mode = #tpu.pipeline_mode<synchronous>, transform_indices = @transform_2, window_bounds = array<i64: 32, 64>}, {pipeline_mode = #tpu.pipeline_mode<synchronous>, transform_indices = @transform_3, window_bounds = array<i64: 336, 1>}, {pipeline_mode = #tpu.pipeline_mode<synchronous>, transform_indices = @transform_4, window_bounds = array<i64: 128, 8>}, {pipeline_mode = #tpu.pipeline_mode<synchronous>, transform_indices = @transform_5, window_bounds = array<i64: 8, 128>}, {transform_indices = @transform_6, window_bounds = array<i64: 4, 32, 128>}]} {
    %c0 = arith.constant 0 : index
    %c0_0 = arith.constant 0 : index
    %0 = vector.load %arg2[%c0, %c0_0] : memref<168x32xbf16, #tpu.memory_space<vmem>>, vector<72x32xbf16>
    %c72 = arith.constant 72 : index
    %c0_1 = arith.constant 0 : index
    %1 = vector.load %arg2[%c72, %c0_1] : memref<168x32xbf16, #tpu.memory_space<vmem>>, vector<32x32xbf16>
    %c104 = arith.constant 104 : index
    %c0_2 = arith.constant 0 : index
    %2 = vector.load %arg2[%c104, %c0_2] : memref<168x32xbf16, #tpu.memory_space<vmem>>, vector<64x32xbf16>
    %c0_3 = arith.constant 0 : index
    %c0_4 = arith.constant 0 : index
    %3 = vector.load %arg3[%c0_3, %c0_4] : memref<32x64xbf16, #tpu.memory_space<vmem>>, vector<32x64xbf16>
    %c0_5 = arith.constant 0 : index
    %c0_6 = arith.constant 0 : index
    %4 = vector.load %arg4[%c0_5, %c0_6] : memref<336x1xf32, #tpu.memory_space<vmem>>, vector<72x1xf32>
    %c72_7 = arith.constant 72 : index
    %c0_8 = arith.constant 0 : index
    %5 = vector.load %arg4[%c72_7, %c0_8] : memref<336x1xf32, #tpu.memory_space<vmem>>, vector<72x1xf32>
    %c144 = arith.constant 144 : index
    %c0_9 = arith.constant 0 : index
    %6 = vector.load %arg4[%c144, %c0_9] : memref<336x1xf32, #tpu.memory_space<vmem>>, vector<32x1xf32>
    %c176 = arith.constant 176 : index
    %c0_10 = arith.constant 0 : index
    %7 = vector.load %arg4[%c176, %c0_10] : memref<336x1xf32, #tpu.memory_space<vmem>>, vector<64x1xf32>
    %c240 = arith.constant 240 : index
    %c0_11 = arith.constant 0 : index
    %8 = vector.load %arg4[%c240, %c0_11] : memref<336x1xf32, #tpu.memory_space<vmem>>, vector<64x1xf32>
    %c304 = arith.constant 304 : index
    %c0_12 = arith.constant 0 : index
    %9 = vector.load %arg4[%c304, %c0_12] : memref<336x1xf32, #tpu.memory_space<vmem>>, vector<32x1xf32>
    %c0_13 = arith.constant 0 : index
    %c0_14 = arith.constant 0 : index
    %10 = vector.load %arg5[%c0_13, %c0_14] : memref<128x8xbf16, #tpu.memory_space<vmem>>, vector<128x8xbf16>
    %c0_15 = arith.constant 0 : index
    %c0_16 = arith.constant 0 : index
    %11 = vector.load %arg6[%c0_15, %c0_16] : memref<8x128xbf16, #tpu.memory_space<vmem>>, vector<8x128xbf16>
    %c0_i32 = arith.constant 0 : i32
    %12 = arith.index_cast %c0_i32 : i32 to index
    %c0_17 = arith.constant 0 : index
    %c0_18 = arith.constant 0 : index
    %13 = vector.load %arg1[%12, %c0_17, %c0_18] : memref<4x32x128xf32, #tpu.memory_space<vmem>>, vector<1x32x128xf32>
    %14 = vector.shape_cast %13 : vector<1x32x128xf32> to vector<32x128xf32>
    %15 = vector.shape_cast %14 : vector<32x128xf32> to vector<1x32x128xf32>
    %cst = arith.constant dense<0.000000e+00> : vector<1xf32>
    %16 = vector.multi_reduction <add>, %15, %cst [1, 2] : vector<1x32x128xf32> to vector<1xf32>
    %17 = vector.shape_cast %16 : vector<1xf32> to vector<1x1x1xf32>
    %18 = vector.extract %17[0, 0, 0] : f32 from vector<1x1x1xf32>
    %19 = arith.mulf %14, %14 : vector<32x128xf32>
    %20 = vector.shape_cast %19 : vector<32x128xf32> to vector<1x32x128xf32>
    %cst_19 = arith.constant dense<0.000000e+00> : vector<1xf32>
    %21 = vector.multi_reduction <add>, %20, %cst_19 [1, 2] : vector<1x32x128xf32> to vector<1xf32>
    %22 = vector.shape_cast %21 : vector<1xf32> to vector<1x1x1xf32>
    %23 = vector.extract %22[0, 0, 0] : f32 from vector<1x1x1xf32>
    %cst_20 = arith.constant 2.44140625E-4 : f32
    %24 = arith.mulf %18, %cst_20 : f32
    %cst_21 = arith.constant 2.44140625E-4 : f32
    %25 = arith.mulf %23, %cst_21 : f32
    %26 = arith.mulf %24, %24 : f32
    %27 = arith.subf %25, %26 : f32
    %cst_22 = arith.constant 0.000000e+00 : f32
    %28 = arith.maximumf %27, %cst_22 : f32
    %cst_23 = arith.constant 9.99999974E-6 : f32
    %29 = arith.addf %28, %cst_23 : f32
    %30 = math.rsqrt %29 : f32
    %31 = vector.broadcast %30 : f32 to vector<32x128xf32>
    %32 = arith.mulf %14, %31 : vector<32x128xf32>
    %33 = arith.truncf %32 : vector<32x128xf32> to vector<32x128xbf16>
    %34 = arith.mulf %24, %30 : f32
    %35 = vector.broadcast %34 : f32 to vector<72x1xf32>
    %36 = arith.mulf %35, %5 : vector<72x1xf32>
    %37 = arith.subf %4, %36 : vector<72x1xf32>
    %cst_24 = arith.constant dense<0.000000e+00> : vector<72x128xf32>
    %38 = tpu.matmul %0, %33, %cst_24 {dimension_numbers = #tpu.dot_dimension_numbers<[1], [0], [0], [1], [0, 0, 1, 1], [], []>} : vector<72x32xbf16>, vector<32x128xbf16>, vector<72x128xf32> -> vector<72x128xf32>
    %39 = vector.broadcast %37 : vector<72x1xf32> to vector<72x128xf32>
    %40 = arith.addf %38, %39 : vector<72x128xf32>
    %41 = vector.extract_strided_slice %40 {offsets = [0, 0], sizes = [32, 128], strides = [1, 1]} : vector<72x128xf32> to vector<32x128xf32>
    %42 = vector.extract_strided_slice %40 {offsets = [32, 0], sizes = [32, 128], strides = [1, 1]} : vector<72x128xf32> to vector<32x128xf32>
    %43 = vector.extract_strided_slice %40 {offsets = [64, 0], sizes = [1, 128], strides = [1, 1]} : vector<72x128xf32> to vector<1x128xf32>
    %44 = vector.shape_cast %43 : vector<1x128xf32> to vector<1x1x128xf32>
    %cst_25 = arith.constant dense<0xFF800000> : vector<1xf32>
    %45 = vector.multi_reduction <maximumf>, %44, %cst_25 [1, 2] : vector<1x1x128xf32> to vector<1xf32>
    %46 = vector.shape_cast %45 : vector<1xf32> to vector<1x1x1xf32>
    %47 = vector.extract %46[0, 0, 0] : f32 from vector<1x1x1xf32>
    %48 = vector.broadcast %47 : f32 to vector<1x128xf32>
    %49 = arith.subf %43, %48 : vector<1x128xf32>
    %50 = math.exp %49 : vector<1x128xf32>
    %51 = vector.broadcast %50 : vector<1x128xf32> to vector<32x128xf32>
    %52 = arith.mulf %41, %51 : vector<32x128xf32>
    %53 = tpu.concatenate %52, %50 in 0 : vector<32x128xf32>, vector<1x128xf32> -> vector<33x128xf32>
    %54 = arith.truncf %53 : vector<33x128xf32> to vector<33x128xbf16>
    %cst_26 = arith.constant dense<0.000000e+00> : vector<33x8xf32>
    %55 = tpu.matmul %54, %10, %cst_26 {dimension_numbers = #tpu.dot_dimension_numbers<[1], [0], [0], [1], [0, 0, 1, 1], [], []>} : vector<33x128xbf16>, vector<128x8xbf16>, vector<33x8xf32> -> vector<33x8xf32>
    %56 = vector.extract_strided_slice %55 {offsets = [32, 0], sizes = [1, 8], strides = [1, 1]} : vector<33x8xf32> to vector<1x8xf32>
    %cst_27 = arith.constant 9.99999968E-21 : f32
    %57 = vector.broadcast %cst_27 : f32 to vector<1x8xf32>
    %58 = arith.maximumf %56, %57 : vector<1x8xf32>
    %59 = vector.extract_strided_slice %55 {offsets = [0, 0], sizes = [32, 8], strides = [1, 1]} : vector<33x8xf32> to vector<32x8xf32>
    %60 = tpu.reciprocal %58 {approx = true} : vector<1x8xf32> -> vector<1x8xf32>
    %61 = vector.broadcast %60 : vector<1x8xf32> to vector<32x8xf32>
    %62 = arith.mulf %59, %61 : vector<32x8xf32>
    %63 = arith.truncf %62 : vector<32x8xf32> to vector<32x8xbf16>
    %cst_28 = arith.constant dense<0.000000e+00> : vector<32x128xf32>
    %64 = tpu.matmul %63, %11, %cst_28 {dimension_numbers = #tpu.dot_dimension_numbers<[1], [0], [0], [1], [0, 0, 1, 1], [], []>} : vector<32x8xbf16>, vector<8x128xbf16>, vector<32x128xf32> -> vector<32x128xf32>
    %cst_29 = arith.constant 0.000000e+00 : f32
    %65 = vector.broadcast %cst_29 : f32 to vector<32x128xf32>
    %66 = arith.maximumf %42, %65 : vector<32x128xf32>
    %67 = arith.mulf %66, %64 : vector<32x128xf32>
    %68 = arith.truncf %67 : vector<32x128xf32> to vector<32x128xbf16>
    %cst_30 = arith.constant dense<0.000000e+00> : vector<32x128xf32>
    %69 = tpu.matmul %1, %68, %cst_30 {dimension_numbers = #tpu.dot_dimension_numbers<[1], [0], [0], [1], [0, 0, 1, 1], [], []>} : vector<32x32xbf16>, vector<32x128xbf16>, vector<32x128xf32> -> vector<32x128xf32>
    %70 = vector.broadcast %6 : vector<32x1xf32> to vector<32x128xf32>
    %71 = arith.addf %69, %70 : vector<32x128xf32>
    %72 = arith.addf %14, %71 : vector<32x128xf32>
    %73 = vector.shape_cast %72 : vector<32x128xf32> to vector<1x32x128xf32>
    %cst_31 = arith.constant dense<0.000000e+00> : vector<1xf32>
    %74 = vector.multi_reduction <add>, %73, %cst_31 [1, 2] : vector<1x32x128xf32> to vector<1xf32>
    %75 = vector.shape_cast %74 : vector<1xf32> to vector<1x1x1xf32>
    %76 = vector.extract %75[0, 0, 0] : f32 from vector<1x1x1xf32>
    %77 = arith.mulf %72, %72 : vector<32x128xf32>
    %78 = vector.shape_cast %77 : vector<32x128xf32> to vector<1x32x128xf32>
    %cst_32 = arith.constant dense<0.000000e+00> : vector<1xf32>
    %79 = vector.multi_reduction <add>, %78, %cst_32 [1, 2] : vector<1x32x128xf32> to vector<1xf32>
    %80 = vector.shape_cast %79 : vector<1xf32> to vector<1x1x1xf32>
    %81 = vector.extract %80[0, 0, 0] : f32 from vector<1x1x1xf32>
    %cst_33 = arith.constant 2.44140625E-4 : f32
    %82 = arith.mulf %76, %cst_33 : f32
    %cst_34 = arith.constant 2.44140625E-4 : f32
    %83 = arith.mulf %81, %cst_34 : f32
    %84 = arith.mulf %82, %82 : f32
    %85 = arith.subf %83, %84 : f32
    %cst_35 = arith.constant 0.000000e+00 : f32
    %86 = arith.maximumf %85, %cst_35 : f32
    %cst_36 = arith.constant 9.99999974E-6 : f32
    %87 = arith.addf %86, %cst_36 : f32
    %88 = math.rsqrt %87 : f32
    %89 = vector.broadcast %88 : f32 to vector<32x128xf32>
    %90 = arith.mulf %72, %89 : vector<32x128xf32>
    %91 = arith.truncf %90 : vector<32x128xf32> to vector<32x128xbf16>
    %92 = arith.mulf %82, %88 : f32
    %93 = vector.broadcast %92 : f32 to vector<64x1xf32>
    %94 = arith.mulf %93, %8 : vector<64x1xf32>
    %95 = arith.subf %7, %94 : vector<64x1xf32>
    %cst_37 = arith.constant dense<0.000000e+00> : vector<64x128xf32>
    %96 = tpu.matmul %2, %91, %cst_37 {dimension_numbers = #tpu.dot_dimension_numbers<[1], [0], [0], [1], [0, 0, 1, 1], [], []>} : vector<64x32xbf16>, vector<32x128xbf16>, vector<64x128xf32> -> vector<64x128xf32>
    %97 = vector.broadcast %95 : vector<64x1xf32> to vector<64x128xf32>
    %98 = arith.addf %96, %97 : vector<64x128xf32>
    %99 = arith.negf %98 : vector<64x128xf32>
    %100 = math.exp %99 : vector<64x128xf32>
    %cst_38 = arith.constant 1.000000e+00 : f32
    %101 = vector.broadcast %cst_38 : f32 to vector<64x128xf32>
    %102 = arith.addf %101, %100 : vector<64x128xf32>
    %103 = arith.divf %101, %102 : vector<64x128xf32>
    %104 = arith.mulf %98, %103 : vector<64x128xf32>
    %105 = arith.truncf %104 : vector<64x128xf32> to vector<64x128xbf16>
    %cst_39 = arith.constant dense<0.000000e+00> : vector<32x128xf32>
    %106 = tpu.matmul %3, %105, %cst_39 {dimension_numbers = #tpu.dot_dimension_numbers<[1], [0], [0], [1], [0, 0, 1, 1], [], []>} : vector<32x64xbf16>, vector<64x128xbf16>, vector<32x128xf32> -> vector<32x128xf32>
    %107 = vector.broadcast %9 : vector<32x1xf32> to vector<32x128xf32>
    %108 = arith.addf %106, %107 : vector<32x128xf32>
    %109 = arith.addf %72, %108 : vector<32x128xf32>
    %110 = arith.index_cast %c0_i32 : i32 to index
    %c0_40 = arith.constant 0 : index
    %c0_41 = arith.constant 0 : index
    %111 = vector.load %arg7[%110, %c0_40, %c0_41] : memref<4x32x128xf32, #tpu.memory_space<vmem>>, vector<1x32x128xf32>
    %112 = vector.shape_cast %111 : vector<1x32x128xf32> to vector<32x128xf32>
    %113 = vector.shape_cast %109 : vector<32x128xf32> to vector<1x32x128xf32>
    tpu.vector_store %arg7[%110, %c0_40, %c0_41], %113 {strides = array<i32>} : memref<4x32x128xf32, #tpu.memory_space<vmem>>, vector<1x32x128xf32>,
    %c1_i32 = arith.constant 1 : i32
    %114 = arith.index_cast %c1_i32 : i32 to index
    %c0_42 = arith.constant 0 : index
    %c0_43 = arith.constant 0 : index
    %115 = vector.load %arg1[%114, %c0_42, %c0_43] : memref<4x32x128xf32, #tpu.memory_space<vmem>>, vector<1x32x128xf32>
    %116 = vector.shape_cast %115 : vector<1x32x128xf32> to vector<32x128xf32>
    %117 = vector.shape_cast %116 : vector<32x128xf32> to vector<1x32x128xf32>
    %cst_44 = arith.constant dense<0.000000e+00> : vector<1xf32>
    %118 = vector.multi_reduction <add>, %117, %cst_44 [1, 2] : vector<1x32x128xf32> to vector<1xf32>
    %119 = vector.shape_cast %118 : vector<1xf32> to vector<1x1x1xf32>
    %120 = vector.extract %119[0, 0, 0] : f32 from vector<1x1x1xf32>
    %121 = arith.mulf %116, %116 : vector<32x128xf32>
    %122 = vector.shape_cast %121 : vector<32x128xf32> to vector<1x32x128xf32>
    %cst_45 = arith.constant dense<0.000000e+00> : vector<1xf32>
    %123 = vector.multi_reduction <add>, %122, %cst_45 [1, 2] : vector<1x32x128xf32> to vector<1xf32>
    %124 = vector.shape_cast %123 : vector<1xf32> to vector<1x1x1xf32>
    %125 = vector.extract %124[0, 0, 0] : f32 from vector<1x1x1xf32>
    %cst_46 = arith.constant 2.44140625E-4 : f32
    %126 = arith.mulf %120, %cst_46 : f32
    %cst_47 = arith.constant 2.44140625E-4 : f32
    %127 = arith.mulf %125, %cst_47 : f32
    %128 = arith.mulf %126, %126 : f32
    %129 = arith.subf %127, %128 : f32
    %cst_48 = arith.constant 0.000000e+00 : f32
    %130 = arith.maximumf %129, %cst_48 : f32
    %cst_49 = arith.constant 9.99999974E-6 : f32
    %131 = arith.addf %130, %cst_49 : f32
    %132 = math.rsqrt %131 : f32
    %133 = vector.broadcast %132 : f32 to vector<32x128xf32>
    %134 = arith.mulf %116, %133 : vector<32x128xf32>
    %135 = arith.truncf %134 : vector<32x128xf32> to vector<32x128xbf16>
    %136 = arith.mulf %126, %132 : f32
    %137 = vector.broadcast %136 : f32 to vector<72x1xf32>
    %138 = arith.mulf %137, %5 : vector<72x1xf32>
    %139 = arith.subf %4, %138 : vector<72x1xf32>
    %cst_50 = arith.constant dense<0.000000e+00> : vector<72x128xf32>
    %140 = tpu.matmul %0, %135, %cst_50 {dimension_numbers = #tpu.dot_dimension_numbers<[1], [0], [0], [1], [0, 0, 1, 1], [], []>} : vector<72x32xbf16>, vector<32x128xbf16>, vector<72x128xf32> -> vector<72x128xf32>
    %141 = vector.broadcast %139 : vector<72x1xf32> to vector<72x128xf32>
    %142 = arith.addf %140, %141 : vector<72x128xf32>
    %143 = vector.extract_strided_slice %142 {offsets = [0, 0], sizes = [32, 128], strides = [1, 1]} : vector<72x128xf32> to vector<32x128xf32>
    %144 = vector.extract_strided_slice %142 {offsets = [32, 0], sizes = [32, 128], strides = [1, 1]} : vector<72x128xf32> to vector<32x128xf32>
    %145 = vector.extract_strided_slice %142 {offsets = [64, 0], sizes = [1, 128], strides = [1, 1]} : vector<72x128xf32> to vector<1x128xf32>
    %146 = vector.shape_cast %145 : vector<1x128xf32> to vector<1x1x128xf32>
    %cst_51 = arith.constant dense<0xFF800000> : vector<1xf32>
    %147 = vector.multi_reduction <maximumf>, %146, %cst_51 [1, 2] : vector<1x1x128xf32> to vector<1xf32>
    %148 = vector.shape_cast %147 : vector<1xf32> to vector<1x1x1xf32>
    %149 = vector.extract %148[0, 0, 0] : f32 from vector<1x1x1xf32>
    %150 = vector.broadcast %149 : f32 to vector<1x128xf32>
    %151 = arith.subf %145, %150 : vector<1x128xf32>
    %152 = math.exp %151 : vector<1x128xf32>
    %153 = vector.broadcast %152 : vector<1x128xf32> to vector<32x128xf32>
    %154 = arith.mulf %143, %153 : vector<32x128xf32>
    %155 = tpu.concatenate %154, %152 in 0 : vector<32x128xf32>, vector<1x128xf32> -> vector<33x128xf32>
    %156 = arith.truncf %155 : vector<33x128xf32> to vector<33x128xbf16>
    %cst_52 = arith.constant dense<0.000000e+00> : vector<33x8xf32>
    %157 = tpu.matmul %156, %10, %cst_52 {dimension_numbers = #tpu.dot_dimension_numbers<[1], [0], [0], [1], [0, 0, 1, 1], [], []>} : vector<33x128xbf16>, vector<128x8xbf16>, vector<33x8xf32> -> vector<33x8xf32>
    %158 = vector.extract_strided_slice %157 {offsets = [32, 0], sizes = [1, 8], strides = [1, 1]} : vector<33x8xf32> to vector<1x8xf32>
    %cst_53 = arith.constant 9.99999968E-21 : f32
    %159 = vector.broadcast %cst_53 : f32 to vector<1x8xf32>
    %160 = arith.maximumf %158, %159 : vector<1x8xf32>
    %161 = vector.extract_strided_slice %157 {offsets = [0, 0], sizes = [32, 8], strides = [1, 1]} : vector<33x8xf32> to vector<32x8xf32>
    %162 = tpu.reciprocal %160 {approx = true} : vector<1x8xf32> -> vector<1x8xf32>
    %163 = vector.broadcast %162 : vector<1x8xf32> to vector<32x8xf32>
    %164 = arith.mulf %161, %163 : vector<32x8xf32>
    %165 = arith.truncf %164 : vector<32x8xf32> to vector<32x8xbf16>
    %cst_54 = arith.constant dense<0.000000e+00> : vector<32x128xf32>
    %166 = tpu.matmul %165, %11, %cst_54 {dimension_numbers = #tpu.dot_dimension_numbers<[1], [0], [0], [1], [0, 0, 1, 1], [], []>} : vector<32x8xbf16>, vector<8x128xbf16>, vector<32x128xf32> -> vector<32x128xf32>
    %cst_55 = arith.constant 0.000000e+00 : f32
    %167 = vector.broadcast %cst_55 : f32 to vector<32x128xf32>
    %168 = arith.maximumf %144, %167 : vector<32x128xf32>
    %169 = arith.mulf %168, %166 : vector<32x128xf32>
    %170 = arith.truncf %169 : vector<32x128xf32> to vector<32x128xbf16>
    %cst_56 = arith.constant dense<0.000000e+00> : vector<32x128xf32>
    %171 = tpu.matmul %1, %170, %cst_56 {dimension_numbers = #tpu.dot_dimension_numbers<[1], [0], [0], [1], [0, 0, 1, 1], [], []>} : vector<32x32xbf16>, vector<32x128xbf16>, vector<32x128xf32> -> vector<32x128xf32>
    %172 = vector.broadcast %6 : vector<32x1xf32> to vector<32x128xf32>
    %173 = arith.addf %171, %172 : vector<32x128xf32>
    %174 = arith.addf %116, %173 : vector<32x128xf32>
    %175 = vector.shape_cast %174 : vector<32x128xf32> to vector<1x32x128xf32>
    %cst_57 = arith.constant dense<0.000000e+00> : vector<1xf32>
    %176 = vector.multi_reduction <add>, %175, %cst_57 [1, 2] : vector<1x32x128xf32> to vector<1xf32>
    %177 = vector.shape_cast %176 : vector<1xf32> to vector<1x1x1xf32>
    %178 = vector.extract %177[0, 0, 0] : f32 from vector<1x1x1xf32>
    %179 = arith.mulf %174, %174 : vector<32x128xf32>
    %180 = vector.shape_cast %179 : vector<32x128xf32> to vector<1x32x128xf32>
    %cst_58 = arith.constant dense<0.000000e+00> : vector<1xf32>
    %181 = vector.multi_reduction <add>, %180, %cst_58 [1, 2] : vector<1x32x128xf32> to vector<1xf32>
    %182 = vector.shape_cast %181 : vector<1xf32> to vector<1x1x1xf32>
    %183 = vector.extract %182[0, 0, 0] : f32 from vector<1x1x1xf32>
    %cst_59 = arith.constant 2.44140625E-4 : f32
    %184 = arith.mulf %178, %cst_59 : f32
    %cst_60 = arith.constant 2.44140625E-4 : f32
    %185 = arith.mulf %183, %cst_60 : f32
    %186 = arith.mulf %184, %184 : f32
    %187 = arith.subf %185, %186 : f32
    %cst_61 = arith.constant 0.000000e+00 : f32
    %188 = arith.maximumf %187, %cst_61 : f32
    %cst_62 = arith.constant 9.99999974E-6 : f32
    %189 = arith.addf %188, %cst_62 : f32
    %190 = math.rsqrt %189 : f32
    %191 = vector.broadcast %190 : f32 to vector<32x128xf32>
    %192 = arith.mulf %174, %191 : vector<32x128xf32>
    %193 = arith.truncf %192 : vector<32x128xf32> to vector<32x128xbf16>
    %194 = arith.mulf %184, %190 : f32
    %195 = vector.broadcast %194 : f32 to vector<64x1xf32>
    %196 = arith.mulf %195, %8 : vector<64x1xf32>
    %197 = arith.subf %7, %196 : vector<64x1xf32>
    %cst_63 = arith.constant dense<0.000000e+00> : vector<64x128xf32>
    %198 = tpu.matmul %2, %193, %cst_63 {dimension_numbers = #tpu.dot_dimension_numbers<[1], [0], [0], [1], [0, 0, 1, 1], [], []>} : vector<64x32xbf16>, vector<32x128xbf16>, vector<64x128xf32> -> vector<64x128xf32>
    %199 = vector.broadcast %197 : vector<64x1xf32> to vector<64x128xf32>
    %200 = arith.addf %198, %199 : vector<64x128xf32>
    %201 = arith.negf %200 : vector<64x128xf32>
    %202 = math.exp %201 : vector<64x128xf32>
    %cst_64 = arith.constant 1.000000e+00 : f32
    %203 = vector.broadcast %cst_64 : f32 to vector<64x128xf32>
    %204 = arith.addf %203, %202 : vector<64x128xf32>
    %205 = arith.divf %203, %204 : vector<64x128xf32>
    %206 = arith.mulf %200, %205 : vector<64x128xf32>
    %207 = arith.truncf %206 : vector<64x128xf32> to vector<64x128xbf16>
    %cst_65 = arith.constant dense<0.000000e+00> : vector<32x128xf32>
    %208 = tpu.matmul %3, %207, %cst_65 {dimension_numbers = #tpu.dot_dimension_numbers<[1], [0], [0], [1], [0, 0, 1, 1], [], []>} : vector<32x64xbf16>, vector<64x128xbf16>, vector<32x128xf32> -> vector<32x128xf32>
    %209 = vector.broadcast %9 : vector<32x1xf32> to vector<32x128xf32>
    %210 = arith.addf %208, %209 : vector<32x128xf32>
    %211 = arith.addf %174, %210 : vector<32x128xf32>
    %212 = arith.index_cast %c1_i32 : i32 to index
    %c0_66 = arith.constant 0 : index
    %c0_67 = arith.constant 0 : index
    %213 = vector.load %arg7[%212, %c0_66, %c0_67] : memref<4x32x128xf32, #tpu.memory_space<vmem>>, vector<1x32x128xf32>
    %214 = vector.shape_cast %213 : vector<1x32x128xf32> to vector<32x128xf32>
    %215 = vector.shape_cast %211 : vector<32x128xf32> to vector<1x32x128xf32>
    tpu.vector_store %arg7[%212, %c0_66, %c0_67], %215 {strides = array<i32>} : memref<4x32x128xf32, #tpu.memory_space<vmem>>, vector<1x32x128xf32>,
    %c2_i32 = arith.constant 2 : i32
    %216 = arith.index_cast %c2_i32 : i32 to index
    %c0_68 = arith.constant 0 : index
    %c0_69 = arith.constant 0 : index
    %217 = vector.load %arg1[%216, %c0_68, %c0_69] : memref<4x32x128xf32, #tpu.memory_space<vmem>>, vector<1x32x128xf32>
    %218 = vector.shape_cast %217 : vector<1x32x128xf32> to vector<32x128xf32>
    %219 = vector.shape_cast %218 : vector<32x128xf32> to vector<1x32x128xf32>
    %cst_70 = arith.constant dense<0.000000e+00> : vector<1xf32>
    %220 = vector.multi_reduction <add>, %219, %cst_70 [1, 2] : vector<1x32x128xf32> to vector<1xf32>
    %221 = vector.shape_cast %220 : vector<1xf32> to vector<1x1x1xf32>
    %222 = vector.extract %221[0, 0, 0] : f32 from vector<1x1x1xf32>
    %223 = arith.mulf %218, %218 : vector<32x128xf32>
    %224 = vector.shape_cast %223 : vector<32x128xf32> to vector<1x32x128xf32>
    %cst_71 = arith.constant dense<0.000000e+00> : vector<1xf32>
    %225 = vector.multi_reduction <add>, %224, %cst_71 [1, 2] : vector<1x32x128xf32> to vector<1xf32>
    %226 = vector.shape_cast %225 : vector<1xf32> to vector<1x1x1xf32>
    %227 = vector.extract %226[0, 0, 0] : f32 from vector<1x1x1xf32>
    %cst_72 = arith.constant 2.44140625E-4 : f32
    %228 = arith.mulf %222, %cst_72 : f32
    %cst_73 = arith.constant 2.44140625E-4 : f32
    %229 = arith.mulf %227, %cst_73 : f32
    %230 = arith.mulf %228, %228 : f32
    %231 = arith.subf %229, %230 : f32
    %cst_74 = arith.constant 0.000000e+00 : f32
    %232 = arith.maximumf %231, %cst_74 : f32
    %cst_75 = arith.constant 9.99999974E-6 : f32
    %233 = arith.addf %232, %cst_75 : f32
    %234 = math.rsqrt %233 : f32
    %235 = vector.broadcast %234 : f32 to vector<32x128xf32>
    %236 = arith.mulf %218, %235 : vector<32x128xf32>
    %237 = arith.truncf %236 : vector<32x128xf32> to vector<32x128xbf16>
    %238 = arith.mulf %228, %234 : f32
    %239 = vector.broadcast %238 : f32 to vector<72x1xf32>
    %240 = arith.mulf %239, %5 : vector<72x1xf32>
    %241 = arith.subf %4, %240 : vector<72x1xf32>
    %cst_76 = arith.constant dense<0.000000e+00> : vector<72x128xf32>
    %242 = tpu.matmul %0, %237, %cst_76 {dimension_numbers = #tpu.dot_dimension_numbers<[1], [0], [0], [1], [0, 0, 1, 1], [], []>} : vector<72x32xbf16>, vector<32x128xbf16>, vector<72x128xf32> -> vector<72x128xf32>
    %243 = vector.broadcast %241 : vector<72x1xf32> to vector<72x128xf32>
    %244 = arith.addf %242, %243 : vector<72x128xf32>
    %245 = vector.extract_strided_slice %244 {offsets = [0, 0], sizes = [32, 128], strides = [1, 1]} : vector<72x128xf32> to vector<32x128xf32>
    %246 = vector.extract_strided_slice %244 {offsets = [32, 0], sizes = [32, 128], strides = [1, 1]} : vector<72x128xf32> to vector<32x128xf32>
    %247 = vector.extract_strided_slice %244 {offsets = [64, 0], sizes = [1, 128], strides = [1, 1]} : vector<72x128xf32> to vector<1x128xf32>
    %248 = vector.shape_cast %247 : vector<1x128xf32> to vector<1x1x128xf32>
    %cst_77 = arith.constant dense<0xFF800000> : vector<1xf32>
    %249 = vector.multi_reduction <maximumf>, %248, %cst_77 [1, 2] : vector<1x1x128xf32> to vector<1xf32>
    %250 = vector.shape_cast %249 : vector<1xf32> to vector<1x1x1xf32>
    %251 = vector.extract %250[0, 0, 0] : f32 from vector<1x1x1xf32>
    %252 = vector.broadcast %251 : f32 to vector<1x128xf32>
    %253 = arith.subf %247, %252 : vector<1x128xf32>
    %254 = math.exp %253 : vector<1x128xf32>
    %255 = vector.broadcast %254 : vector<1x128xf32> to vector<32x128xf32>
    %256 = arith.mulf %245, %255 : vector<32x128xf32>
    %257 = tpu.concatenate %256, %254 in 0 : vector<32x128xf32>, vector<1x128xf32> -> vector<33x128xf32>
    %258 = arith.truncf %257 : vector<33x128xf32> to vector<33x128xbf16>
    %cst_78 = arith.constant dense<0.000000e+00> : vector<33x8xf32>
    %259 = tpu.matmul %258, %10, %cst_78 {dimension_numbers = #tpu.dot_dimension_numbers<[1], [0], [0], [1], [0, 0, 1, 1], [], []>} : vector<33x128xbf16>, vector<128x8xbf16>, vector<33x8xf32> -> vector<33x8xf32>
    %260 = vector.extract_strided_slice %259 {offsets = [32, 0], sizes = [1, 8], strides = [1, 1]} : vector<33x8xf32> to vector<1x8xf32>
    %cst_79 = arith.constant 9.99999968E-21 : f32
    %261 = vector.broadcast %cst_79 : f32 to vector<1x8xf32>
    %262 = arith.maximumf %260, %261 : vector<1x8xf32>
    %263 = vector.extract_strided_slice %259 {offsets = [0, 0], sizes = [32, 8], strides = [1, 1]} : vector<33x8xf32> to vector<32x8xf32>
    %264 = tpu.reciprocal %262 {approx = true} : vector<1x8xf32> -> vector<1x8xf32>
    %265 = vector.broadcast %264 : vector<1x8xf32> to vector<32x8xf32>
    %266 = arith.mulf %263, %265 : vector<32x8xf32>
    %267 = arith.truncf %266 : vector<32x8xf32> to vector<32x8xbf16>
    %cst_80 = arith.constant dense<0.000000e+00> : vector<32x128xf32>
    %268 = tpu.matmul %267, %11, %cst_80 {dimension_numbers = #tpu.dot_dimension_numbers<[1], [0], [0], [1], [0, 0, 1, 1], [], []>} : vector<32x8xbf16>, vector<8x128xbf16>, vector<32x128xf32> -> vector<32x128xf32>
    %cst_81 = arith.constant 0.000000e+00 : f32
    %269 = vector.broadcast %cst_81 : f32 to vector<32x128xf32>
    %270 = arith.maximumf %246, %269 : vector<32x128xf32>
    %271 = arith.mulf %270, %268 : vector<32x128xf32>
    %272 = arith.truncf %271 : vector<32x128xf32> to vector<32x128xbf16>
    %cst_82 = arith.constant dense<0.000000e+00> : vector<32x128xf32>
    %273 = tpu.matmul %1, %272, %cst_82 {dimension_numbers = #tpu.dot_dimension_numbers<[1], [0], [0], [1], [0, 0, 1, 1], [], []>} : vector<32x32xbf16>, vector<32x128xbf16>, vector<32x128xf32> -> vector<32x128xf32>
    %274 = vector.broadcast %6 : vector<32x1xf32> to vector<32x128xf32>
    %275 = arith.addf %273, %274 : vector<32x128xf32>
    %276 = arith.addf %218, %275 : vector<32x128xf32>
    %277 = vector.shape_cast %276 : vector<32x128xf32> to vector<1x32x128xf32>
    %cst_83 = arith.constant dense<0.000000e+00> : vector<1xf32>
    %278 = vector.multi_reduction <add>, %277, %cst_83 [1, 2] : vector<1x32x128xf32> to vector<1xf32>
    %279 = vector.shape_cast %278 : vector<1xf32> to vector<1x1x1xf32>
    %280 = vector.extract %279[0, 0, 0] : f32 from vector<1x1x1xf32>
    %281 = arith.mulf %276, %276 : vector<32x128xf32>
    %282 = vector.shape_cast %281 : vector<32x128xf32> to vector<1x32x128xf32>
    %cst_84 = arith.constant dense<0.000000e+00> : vector<1xf32>
    %283 = vector.multi_reduction <add>, %282, %cst_84 [1, 2] : vector<1x32x128xf32> to vector<1xf32>
    %284 = vector.shape_cast %283 : vector<1xf32> to vector<1x1x1xf32>
    %285 = vector.extract %284[0, 0, 0] : f32 from vector<1x1x1xf32>
    %cst_85 = arith.constant 2.44140625E-4 : f32
    %286 = arith.mulf %280, %cst_85 : f32
    %cst_86 = arith.constant 2.44140625E-4 : f32
    %287 = arith.mulf %285, %cst_86 : f32
    %288 = arith.mulf %286, %286 : f32
    %289 = arith.subf %287, %288 : f32
    %cst_87 = arith.constant 0.000000e+00 : f32
    %290 = arith.maximumf %289, %cst_87 : f32
    %cst_88 = arith.constant 9.99999974E-6 : f32
    %291 = arith.addf %290, %cst_88 : f32
    %292 = math.rsqrt %291 : f32
    %293 = vector.broadcast %292 : f32 to vector<32x128xf32>
    %294 = arith.mulf %276, %293 : vector<32x128xf32>
    %295 = arith.truncf %294 : vector<32x128xf32> to vector<32x128xbf16>
    %296 = arith.mulf %286, %292 : f32
    %297 = vector.broadcast %296 : f32 to vector<64x1xf32>
    %298 = arith.mulf %297, %8 : vector<64x1xf32>
    %299 = arith.subf %7, %298 : vector<64x1xf32>
    %cst_89 = arith.constant dense<0.000000e+00> : vector<64x128xf32>
    %300 = tpu.matmul %2, %295, %cst_89 {dimension_numbers = #tpu.dot_dimension_numbers<[1], [0], [0], [1], [0, 0, 1, 1], [], []>} : vector<64x32xbf16>, vector<32x128xbf16>, vector<64x128xf32> -> vector<64x128xf32>
    %301 = vector.broadcast %299 : vector<64x1xf32> to vector<64x128xf32>
    %302 = arith.addf %300, %301 : vector<64x128xf32>
    %303 = arith.negf %302 : vector<64x128xf32>
    %304 = math.exp %303 : vector<64x128xf32>
    %cst_90 = arith.constant 1.000000e+00 : f32
    %305 = vector.broadcast %cst_90 : f32 to vector<64x128xf32>
    %306 = arith.addf %305, %304 : vector<64x128xf32>
    %307 = arith.divf %305, %306 : vector<64x128xf32>
    %308 = arith.mulf %302, %307 : vector<64x128xf32>
    %309 = arith.truncf %308 : vector<64x128xf32> to vector<64x128xbf16>
    %cst_91 = arith.constant dense<0.000000e+00> : vector<32x128xf32>
    %310 = tpu.matmul %3, %309, %cst_91 {dimension_numbers = #tpu.dot_dimension_numbers<[1], [0], [0], [1], [0, 0, 1, 1], [], []>} : vector<32x64xbf16>, vector<64x128xbf16>, vector<32x128xf32> -> vector<32x128xf32>
    %311 = vector.broadcast %9 : vector<32x1xf32> to vector<32x128xf32>
    %312 = arith.addf %310, %311 : vector<32x128xf32>
    %313 = arith.addf %276, %312 : vector<32x128xf32>
    %314 = arith.index_cast %c2_i32 : i32 to index
    %c0_92 = arith.constant 0 : index
    %c0_93 = arith.constant 0 : index
    %315 = vector.load %arg7[%314, %c0_92, %c0_93] : memref<4x32x128xf32, #tpu.memory_space<vmem>>, vector<1x32x128xf32>
    %316 = vector.shape_cast %315 : vector<1x32x128xf32> to vector<32x128xf32>
    %317 = vector.shape_cast %313 : vector<32x128xf32> to vector<1x32x128xf32>
    tpu.vector_store %arg7[%314, %c0_92, %c0_93], %317 {strides = array<i32>} : memref<4x32x128xf32, #tpu.memory_space<vmem>>, vector<1x32x128xf32>,
    %c3_i32 = arith.constant 3 : i32
    %318 = arith.index_cast %c3_i32 : i32 to index
    %c0_94 = arith.constant 0 : index
    %c0_95 = arith.constant 0 : index
    %319 = vector.load %arg1[%318, %c0_94, %c0_95] : memref<4x32x128xf32, #tpu.memory_space<vmem>>, vector<1x32x128xf32>
    %320 = vector.shape_cast %319 : vector<1x32x128xf32> to vector<32x128xf32>
    %321 = vector.shape_cast %320 : vector<32x128xf32> to vector<1x32x128xf32>
    %cst_96 = arith.constant dense<0.000000e+00> : vector<1xf32>
    %322 = vector.multi_reduction <add>, %321, %cst_96 [1, 2] : vector<1x32x128xf32> to vector<1xf32>
    %323 = vector.shape_cast %322 : vector<1xf32> to vector<1x1x1xf32>
    %324 = vector.extract %323[0, 0, 0] : f32 from vector<1x1x1xf32>
    %325 = arith.mulf %320, %320 : vector<32x128xf32>
    %326 = vector.shape_cast %325 : vector<32x128xf32> to vector<1x32x128xf32>
    %cst_97 = arith.constant dense<0.000000e+00> : vector<1xf32>
    %327 = vector.multi_reduction <add>, %326, %cst_97 [1, 2] : vector<1x32x128xf32> to vector<1xf32>
    %328 = vector.shape_cast %327 : vector<1xf32> to vector<1x1x1xf32>
    %329 = vector.extract %328[0, 0, 0] : f32 from vector<1x1x1xf32>
    %cst_98 = arith.constant 2.44140625E-4 : f32
    %330 = arith.mulf %324, %cst_98 : f32
    %cst_99 = arith.constant 2.44140625E-4 : f32
    %331 = arith.mulf %329, %cst_99 : f32
    %332 = arith.mulf %330, %330 : f32
    %333 = arith.subf %331, %332 : f32
    %cst_100 = arith.constant 0.000000e+00 : f32
    %334 = arith.maximumf %333, %cst_100 : f32
    %cst_101 = arith.constant 9.99999974E-6 : f32
    %335 = arith.addf %334, %cst_101 : f32
    %336 = math.rsqrt %335 : f32
    %337 = vector.broadcast %336 : f32 to vector<32x128xf32>
    %338 = arith.mulf %320, %337 : vector<32x128xf32>
    %339 = arith.truncf %338 : vector<32x128xf32> to vector<32x128xbf16>
    %340 = arith.mulf %330, %336 : f32
    %341 = vector.broadcast %340 : f32 to vector<72x1xf32>
    %342 = arith.mulf %341, %5 : vector<72x1xf32>
    %343 = arith.subf %4, %342 : vector<72x1xf32>
    %cst_102 = arith.constant dense<0.000000e+00> : vector<72x128xf32>
    %344 = tpu.matmul %0, %339, %cst_102 {dimension_numbers = #tpu.dot_dimension_numbers<[1], [0], [0], [1], [0, 0, 1, 1], [], []>} : vector<72x32xbf16>, vector<32x128xbf16>, vector<72x128xf32> -> vector<72x128xf32>
    %345 = vector.broadcast %343 : vector<72x1xf32> to vector<72x128xf32>
    %346 = arith.addf %344, %345 : vector<72x128xf32>
    %347 = vector.extract_strided_slice %346 {offsets = [0, 0], sizes = [32, 128], strides = [1, 1]} : vector<72x128xf32> to vector<32x128xf32>
    %348 = vector.extract_strided_slice %346 {offsets = [32, 0], sizes = [32, 128], strides = [1, 1]} : vector<72x128xf32> to vector<32x128xf32>
    %349 = vector.extract_strided_slice %346 {offsets = [64, 0], sizes = [1, 128], strides = [1, 1]} : vector<72x128xf32> to vector<1x128xf32>
    %350 = vector.shape_cast %349 : vector<1x128xf32> to vector<1x1x128xf32>
    %cst_103 = arith.constant dense<0xFF800000> : vector<1xf32>
    %351 = vector.multi_reduction <maximumf>, %350, %cst_103 [1, 2] : vector<1x1x128xf32> to vector<1xf32>
    %352 = vector.shape_cast %351 : vector<1xf32> to vector<1x1x1xf32>
    %353 = vector.extract %352[0, 0, 0] : f32 from vector<1x1x1xf32>
    %354 = vector.broadcast %353 : f32 to vector<1x128xf32>
    %355 = arith.subf %349, %354 : vector<1x128xf32>
    %356 = math.exp %355 : vector<1x128xf32>
    %357 = vector.broadcast %356 : vector<1x128xf32> to vector<32x128xf32>
    %358 = arith.mulf %347, %357 : vector<32x128xf32>
    %359 = tpu.concatenate %358, %356 in 0 : vector<32x128xf32>, vector<1x128xf32> -> vector<33x128xf32>
    %360 = arith.truncf %359 : vector<33x128xf32> to vector<33x128xbf16>
    %cst_104 = arith.constant dense<0.000000e+00> : vector<33x8xf32>
    %361 = tpu.matmul %360, %10, %cst_104 {dimension_numbers = #tpu.dot_dimension_numbers<[1], [0], [0], [1], [0, 0, 1, 1], [], []>} : vector<33x128xbf16>, vector<128x8xbf16>, vector<33x8xf32> -> vector<33x8xf32>
    %362 = vector.extract_strided_slice %361 {offsets = [32, 0], sizes = [1, 8], strides = [1, 1]} : vector<33x8xf32> to vector<1x8xf32>
    %cst_105 = arith.constant 9.99999968E-21 : f32
    %363 = vector.broadcast %cst_105 : f32 to vector<1x8xf32>
    %364 = arith.maximumf %362, %363 : vector<1x8xf32>
    %365 = vector.extract_strided_slice %361 {offsets = [0, 0], sizes = [32, 8], strides = [1, 1]} : vector<33x8xf32> to vector<32x8xf32>
    %366 = tpu.reciprocal %364 {approx = true} : vector<1x8xf32> -> vector<1x8xf32>
    %367 = vector.broadcast %366 : vector<1x8xf32> to vector<32x8xf32>
    %368 = arith.mulf %365, %367 : vector<32x8xf32>
    %369 = arith.truncf %368 : vector<32x8xf32> to vector<32x8xbf16>
    %cst_106 = arith.constant dense<0.000000e+00> : vector<32x128xf32>
    %370 = tpu.matmul %369, %11, %cst_106 {dimension_numbers = #tpu.dot_dimension_numbers<[1], [0], [0], [1], [0, 0, 1, 1], [], []>} : vector<32x8xbf16>, vector<8x128xbf16>, vector<32x128xf32> -> vector<32x128xf32>
    %cst_107 = arith.constant 0.000000e+00 : f32
    %371 = vector.broadcast %cst_107 : f32 to vector<32x128xf32>
    %372 = arith.maximumf %348, %371 : vector<32x128xf32>
    %373 = arith.mulf %372, %370 : vector<32x128xf32>
    %374 = arith.truncf %373 : vector<32x128xf32> to vector<32x128xbf16>
    %cst_108 = arith.constant dense<0.000000e+00> : vector<32x128xf32>
    %375 = tpu.matmul %1, %374, %cst_108 {dimension_numbers = #tpu.dot_dimension_numbers<[1], [0], [0], [1], [0, 0, 1, 1], [], []>} : vector<32x32xbf16>, vector<32x128xbf16>, vector<32x128xf32> -> vector<32x128xf32>
    %376 = vector.broadcast %6 : vector<32x1xf32> to vector<32x128xf32>
    %377 = arith.addf %375, %376 : vector<32x128xf32>
    %378 = arith.addf %320, %377 : vector<32x128xf32>
    %379 = vector.shape_cast %378 : vector<32x128xf32> to vector<1x32x128xf32>
    %cst_109 = arith.constant dense<0.000000e+00> : vector<1xf32>
    %380 = vector.multi_reduction <add>, %379, %cst_109 [1, 2] : vector<1x32x128xf32> to vector<1xf32>
    %381 = vector.shape_cast %380 : vector<1xf32> to vector<1x1x1xf32>
    %382 = vector.extract %381[0, 0, 0] : f32 from vector<1x1x1xf32>
    %383 = arith.mulf %378, %378 : vector<32x128xf32>
    %384 = vector.shape_cast %383 : vector<32x128xf32> to vector<1x32x128xf32>
    %cst_110 = arith.constant dense<0.000000e+00> : vector<1xf32>
    %385 = vector.multi_reduction <add>, %384, %cst_110 [1, 2] : vector<1x32x128xf32> to vector<1xf32>
    %386 = vector.shape_cast %385 : vector<1xf32> to vector<1x1x1xf32>
    %387 = vector.extract %386[0, 0, 0] : f32 from vector<1x1x1xf32>
    %cst_111 = arith.constant 2.44140625E-4 : f32
    %388 = arith.mulf %382, %cst_111 : f32
    %cst_112 = arith.constant 2.44140625E-4 : f32
    %389 = arith.mulf %387, %cst_112 : f32
    %390 = arith.mulf %388, %388 : f32
    %391 = arith.subf %389, %390 : f32
    %cst_113 = arith.constant 0.000000e+00 : f32
    %392 = arith.maximumf %391, %cst_113 : f32
    %cst_114 = arith.constant 9.99999974E-6 : f32
    %393 = arith.addf %392, %cst_114 : f32
    %394 = math.rsqrt %393 : f32
    %395 = vector.broadcast %394 : f32 to vector<32x128xf32>
    %396 = arith.mulf %378, %395 : vector<32x128xf32>
    %397 = arith.truncf %396 : vector<32x128xf32> to vector<32x128xbf16>
    %398 = arith.mulf %388, %394 : f32
    %399 = vector.broadcast %398 : f32 to vector<64x1xf32>
    %400 = arith.mulf %399, %8 : vector<64x1xf32>
    %401 = arith.subf %7, %400 : vector<64x1xf32>
    %cst_115 = arith.constant dense<0.000000e+00> : vector<64x128xf32>
    %402 = tpu.matmul %2, %397, %cst_115 {dimension_numbers = #tpu.dot_dimension_numbers<[1], [0], [0], [1], [0, 0, 1, 1], [], []>} : vector<64x32xbf16>, vector<32x128xbf16>, vector<64x128xf32> -> vector<64x128xf32>
    %403 = vector.broadcast %401 : vector<64x1xf32> to vector<64x128xf32>
    %404 = arith.addf %402, %403 : vector<64x128xf32>
    %405 = arith.negf %404 : vector<64x128xf32>
    %406 = math.exp %405 : vector<64x128xf32>
    %cst_116 = arith.constant 1.000000e+00 : f32
    %407 = vector.broadcast %cst_116 : f32 to vector<64x128xf32>
    %408 = arith.addf %407, %406 : vector<64x128xf32>
    %409 = arith.divf %407, %408 : vector<64x128xf32>
    %410 = arith.mulf %404, %409 : vector<64x128xf32>
    %411 = arith.truncf %410 : vector<64x128xf32> to vector<64x128xbf16>
    %cst_117 = arith.constant dense<0.000000e+00> : vector<32x128xf32>
    %412 = tpu.matmul %3, %411, %cst_117 {dimension_numbers = #tpu.dot_dimension_numbers<[1], [0], [0], [1], [0, 0, 1, 1], [], []>} : vector<32x64xbf16>, vector<64x128xbf16>, vector<32x128xf32> -> vector<32x128xf32>
    %413 = vector.broadcast %9 : vector<32x1xf32> to vector<32x128xf32>
    %414 = arith.addf %412, %413 : vector<32x128xf32>
    %415 = arith.addf %378, %414 : vector<32x128xf32>
    %416 = arith.index_cast %c3_i32 : i32 to index
    %c0_118 = arith.constant 0 : index
    %c0_119 = arith.constant 0 : index
    %417 = vector.load %arg7[%416, %c0_118, %c0_119] : memref<4x32x128xf32, #tpu.memory_space<vmem>>, vector<1x32x128xf32>
    %418 = vector.shape_cast %417 : vector<1x32x128xf32> to vector<32x128xf32>
    %419 = vector.shape_cast %415 : vector<32x128xf32> to vector<1x32x128xf32>
    tpu.vector_store %arg7[%416, %c0_118, %c0_119], %419 {strides = array<i32>} : memref<4x32x128xf32, #tpu.memory_space<vmem>>, vector<1x32x128xf32>,
    %c4_i32 = arith.constant 4 : i32
    return
  }
  func.func @transform_0(%arg0: i32) -> (i32, i32, i32) {
    %c0_i32 = arith.constant 0 : i32
    %c0_i32_0 = arith.constant 0 : i32
    %c0_i32_1 = arith.constant 0 : i32
    return %arg0, %c0_i32, %c0_i32_0 : i32, i32, i32
  }
  func.func @transform_1(%arg0: i32) -> (i32, i32) {
    %c0_i32 = arith.constant 0 : i32
    %c0_i32_0 = arith.constant 0 : i32
    %c0_i32_1 = arith.constant 0 : i32
    return %c0_i32, %c0_i32_0 : i32, i32
  }
  func.func @transform_2(%arg0: i32) -> (i32, i32) {
    %c0_i32 = arith.constant 0 : i32
    %c0_i32_0 = arith.constant 0 : i32
    %c0_i32_1 = arith.constant 0 : i32
    return %c0_i32, %c0_i32_0 : i32, i32
  }
  func.func @transform_3(%arg0: i32) -> (i32, i32) {
    %c0_i32 = arith.constant 0 : i32
    %c0_i32_0 = arith.constant 0 : i32
    %c0_i32_1 = arith.constant 0 : i32
    return %c0_i32, %c0_i32_0 : i32, i32
  }
  func.func @transform_4(%arg0: i32) -> (i32, i32) {
    %c0_i32 = arith.constant 0 : i32
    %c0_i32_0 = arith.constant 0 : i32
    %c0_i32_1 = arith.constant 0 : i32
    return %c0_i32, %c0_i32_0 : i32, i32
  }
  func.func @transform_5(%arg0: i32) -> (i32, i32) {
    %c0_i32 = arith.constant 0 : i32
    %c0_i32_0 = arith.constant 0 : i32
    %c0_i32_1 = arith.constant 0 : i32
    return %c0_i32, %c0_i32_0 : i32, i32
  }
  func.func @transform_6(%arg0: i32) -> (i32, i32, i32) {
    %c0_i32 = arith.constant 0 : i32
    %c0_i32_0 = arith.constant 0 : i32
    %c0_i32_1 = arith.constant 0 : i32
    return %arg0, %c0_i32, %c0_i32_0 : i32, i32, i32
  }
}

</mosaic_0001>

<bundles_post_ra>
// kernel: linear_transformer_block.1
= control target key start
LH: loop header
LB: loop body
LE: loop exit
PB: predicated region body
PF: predicated region fallthrough
CT: control target
= control target key end

     0   :  { %s4348_s21 = smov 0   ;;  %s5967_s0 = inlined_call_operand.vmem [shape: f32[8,32,128], index: 0, kind: input, shape index: {}]   ;;  %s5968_s1 = inlined_call_operand.vmem [shape: bf16[168,32], index: 1, kind: input, shape index: {}]   ;;  %s5969_s2 = inlined_call_operand.vmem [shape: bf16[32,64], index: 2, kind: input, shape index: {}]   ;;  %s5970_s3 = inlined_call_operand.vmem [shape: f32[336,1], index: 3, kind: input, shape index: {}]   ;;  %s5971_s4 = inlined_call_operand.vmem [shape: bf16[128,8], index: 4, kind: input, shape index: {}]   ;;  %s5972_s5 = inlined_call_operand.vmem [shape: bf16[8,128], index: 5, kind: input, shape index: {}]   ;;  %s5973_s6 = inlined_call_operand.vmem [shape: f32[8,32,128], index: 6, kind: output, shape index: {}]  }
   0x1 LB: > { %s3327_s22 = sadd.s32 4294967295, %s4307_s21   ;;  %p3331_p0 = scmp.ge.s32.totalorder %s4307_s21, 1  ;;  %s4307_s21 = sphi %s4348_s21, %s16_s21  }
   0x2   : > { %p214_p1 = scmp.lt.s32.totalorder %s4307_s21, 3 }
   0x4   : > { %p215_p2 = pnand %p3331_p0, %p214_p1 }
   0x6   : > { %218 = sbr.rel (%p215_p2) target bundleno = 6859 (0x1acb), region = 44 }
   0xd   : > { %s3332_s23 = sshll.u32 %s3327_s22, 2  ;;  %v5974_v26 = vmov 0.0   ;;  %v4310_v28 = vmov 0   ;;  %vm4311_vm0 = vmmov 0   ;;  %s4312_s10 = smov 0.0   ;;  %v4400_v33 = vld [vmem:[%s5970_s3 + $0x88] sm:$0xff] }
   0xe   : > { %p247_p3 = scmp.lt.s32.totalorder %s3332_s23, 7  ;;  %3627 = vmatprep.subr.bf16.mxu0 %v5974_v26  ;;  %3651 = vmatprep.subr.bf16.mxu1 %v5974_v26  ;;  %v295_v34 = vld [vmem:[%s5970_s3 + $0x48] sm:$0xff]  ;;  %v4413_v39 = vld [vmem:[%s5970_s3 + $0x40] sm:$0xff]  ;;  %v297_v41 = vld [vmem:[%s5970_s3 + $0x58] sm:$0xff]  ;;  %vm481_vm1 = vcmask 261120   ;;  %vm569_vm2 = vcmask 1040384  }
   0xf   : > { %4060 = vset.pattern.permute.xlu0 %v4310_v28  ;;  %4059 = vset.pattern.permute.xlu1 %v4310_v28  ;;  %v286_v40 = vld [vmem:[%s5970_s3] sm:$0xff]  ;;  %v4431_v49 = vld [vmem:[%s5970_s3 + $0x10] sm:$0xff]  ;;  %v4449_v55 = vld [vmem:[%s5970_s3 + $0x18] sm:$0xff]  ;;  %vm718_vm3 = vcmask 1043456   ;;  %vm711_vm4 = vcmask 64512   ;;  %vm1159_vm5 = vcmask 523264  }
  0x10   : > { %s6085_s23 = smov (!%p247_p3, %s3332_s23), 7  ;;  %3631 = vmatprep.mubr.msk.bf16.mxu0 %vm4311_vm0, %v5974_v26  ;;  %3667 = vmatprep.mubr.msk.bf16.mxu1 %vm4311_vm0, %v5974_v26  ;;  %v4436_v50 = vld [vmem:[%s5970_s3 + $0x60] sm:$0xff]  ;;  %v4454_v56 = vld [vmem:[%s5970_s3 + $0x70] sm:$0xff]  ;;  %v4466_v59 = vld [vmem:[%s5970_s3 + $0x28] sm:$0xff] }
  0x11   : > { %s3477_s24 = sshll.u32 %s6085_s23, 5  ;;  %v4441_v52 = vld [vmem:[%s5968_s1] sm:$0xff]   ;;  %v4476_v61 = vld [vmem:[%s5968_s1 + $0x8] sm:$0xff]  }
  0x12   : > { %s4364_s27 = scalar_lea.vmem %s5967_s0, %s3477_s24  ;;  %v4471_v60 = vld [vmem:[%s5970_s3 + $0x80] sm:$0xff] }
  0x13   : > { %v4367_v0 = vld [vmem:[%s4364_s27] sm:$0xff]  ;;  %v4370_v1 = vld [vmem:[%s4364_s27 + $0x8] sm:$0xff]  ;;  %v4373_v2 = vld [vmem:[%s4364_s27 + $0x10] sm:$0xff] }
  0x14   : > { %v4376_v3 = vld [vmem:[%s4364_s27 + $0x18] sm:$0xff]  ;;  %v349_v4 = vadd.f32 %v4370_v1, %v4367_v0  ;;  %v361_v5 = vmul.f32 %v4367_v0, %v4367_v0  ;;  %v362_v6 = vmul.f32 %v4370_v1, %v4370_v1  ;;  %v363_v7 = vmul.f32 %v4373_v2, %v4373_v2 }
  0x15   : > { %v364_v9 = vmul.f32 %v4376_v3, %v4376_v3 }
  0x16   : > { %v350_v8 = vadd.f32 %v349_v4, %v4373_v2  ;;  %v365_v10 = vadd.f32 %v362_v6, %v361_v5  ;;  %v4484_v4 = vld [vmem:[%s5970_s3 + $0x38] sm:$0xff]  ;;  %v4494_v6 = vld [vmem:[%s5968_s1 + $0x10] sm:$0xff]  }
  0x18   : > { %v351_v11 = vadd.f32 %v350_v8, %v4376_v3  ;;  %v366_v12 = vadd.f32 %v365_v10, %v363_v7  ;;  %v4503_v7 = vld [vmem:[%s5968_s1 + $0x18] sm:$0xff]   ;;  %v4512_v8 = vld [vmem:[%s5968_s1 + $0x20] ss:$0 sps:$4 sm:$0xff]   ;;  %v307_v10 = vld [vmem:[%s5970_s3 + $0xa8] sm:$0xff] }
  0x1a   : > { %352 = vadd.xlane.f32.xlu0 %v351_v11  ;;  %v367_v13 = vadd.f32 %v366_v12, %v364_v9  ;;  %v305_v9 = vld [vmem:[%s5970_s3 + $0x98] sm:$0xff] }
  0x1e   : > { %368 = vadd.xlane.f32.xlu0 %v367_v13 }
  0xa7   : > { %v353_v14 = vpop.xlane.xlu0 %352 }
  0xa8   : > { %v354_v15 = vrot.slane %v353_v14, 4 }
  0xaa   : > { %v355_v16 = vadd.f32 %v354_v15, %v353_v14 }
  0xab   : > { %v369_v17 = vpop.xlane.xlu0 %368 }
  0xac   : > { %v356_v18 = vrot.slane %v355_v16, 2  ;;  %v370_v19 = vrot.slane %v369_v17, 4 }
  0xae   : > { %v371_v20 = vadd.f32 %v370_v19, %v369_v17  ;;  %v357_v21 = vadd.f32 %v356_v18, %v355_v16 }
  0xb0   : > { %v372_v22 = vrot.slane %v371_v20, 2  ;;  %v358_v23 = vrot.slane %v357_v21, 1 }
  0xb2   : > { %v359_v24 = vadd.f32 %v358_v23, %v357_v21  ;;  %v373_v25 = vadd.f32 %v372_v22, %v371_v20 }
  0xb4   : > { %3991 = vpush %v359_v24  ;;  %v374_v27 = vrot.slane %v373_v25, 1 }
  0xb6   : > { %v375_v29 = vadd.f32 %v374_v27, %v373_v25 }
  0xb8   : > { %3993 = vpush %v375_v29 }
  0xe5   : > { %s3992_s28 = spop %3991 }
  0xe6   : > { %s377_s29 = smul.f32 0.00024414063, %s3992_s28 }
  0xe8   : > { %s379_s30 = smul.f32 %s377_s29, %s377_s29 }
  0xe9   : > { %s3994_s7 = spop %3993 }
  0xea   : > { %s378_s8 = smul.f32 0.00024414063, %s3994_s7 }
  0xec   : > { %s380_s9 = ssub.f32 %s378_s8, %s379_s30 }
  0xee   : > { %s381_s11 = smax.f32 %s4312_s10, %s380_s9 }
  0xef   : > { %s382_s12 = sadd.f32 1e-05, %s381_s11 }
  0xf1   : > { %v383_v30 = vstv %s382_s12 }
  0xf2   : > { %4082 = vrsqrt.f32 %v383_v30 }
  0xfc   : > { %v4083_v31 = vpop.eup %4082 }
  0xfd   : > { %3995 = vpush %v4083_v31 }
 0x12e   : > { %s3996_s13 = spop %3995 }
 0x12f   : > { %v386_v32 = vstv %s3996_s13  ;;  %s393_s14 = smul.f32 %s3996_s13, %s377_s29 }
 0x130   : > { %v387_v35 = vmul.f32 %v386_v32, %v4367_v0  ;;  %v388_v36 = vmul.f32 %v386_v32, %v4370_v1  ;;  %v389_v37 = vmul.f32 %v386_v32, %v4373_v2  ;;  %v390_v42 = vmul.f32 %v386_v32, %v4376_v3 }
 0x131   : > { %v4408_v38 = vstv %s393_s14 }
 0x132   : > { %v391_v43 = vpack.c.bf16 %v388_v36, %v387_v35  ;;  %v403_v44 = vmul.f32 %v4408_v38, %v4400_v33  ;;  %v395_v45 = vmul.f32 %v4408_v38, %v295_v34  ;;  %v397_v48 = vmul.f32 %v4408_v38, %v297_v41  ;;  %v4542_v36 = vld [vmem:[%s5970_s3 + $0x50] sm:$0xff]  ;;  %v4554_v41 = vld [vmem:[%s5970_s3 + $0x68] sm:$0xff] }
 0x133   : > { %v392_v51 = vpack.c.bf16 %v390_v42, %v389_v37  ;;  %v398_v54 = vmul.f32 %v4408_v38, %v4436_v50  ;;  %v400_v58 = vmul.f32 %v4408_v38, %v4454_v56  ;;  %v402_v63 = vmul.f32 %v4408_v38, %v4471_v60 }
 0x134   : > { %3628 = vmatpush3.bf16.msra.mxu0 %v391_v43  ;;  %v412_v46 = vsub.f32 %v4413_v39, %v403_v44  ;;  %v404_v47 = vsub.f32 %v286_v40, %v395_v45  ;;  %v406_v53 = vsub.f32 %v4431_v49, %v397_v48  ;;  %v396_v37 = vmul.f32 %v4408_v38, %v4542_v36  ;;  %v4549_v40 = vld [vmem:[%s5970_s3 + $0x8] sm:$0xff]  ;;  %v4562_v44 = vld [vmem:[%s5970_s3 + $0x20] sm:$0xff]  ;;  %v4567_v45 = vld [vmem:[%s5970_s3 + $0x78] sm:$0xff] }
 0x135   : > { %3629 = vmatprep.subr.bf16.mxu0 %v5974_v26  ;;  %v407_v57 = vsub.f32 %v4449_v55, %v398_v54  ;;  %v409_v62 = vsub.f32 %v4466_v59, %v400_v58  ;;  %v411_v5 = vsub.f32 %v4484_v4, %v402_v63  ;;  %v399_v43 = vmul.f32 %v4408_v38, %v4554_v41  ;;  %v4575_v48 = vld [vmem:[%s5970_s3 + $0x30] sm:$0xff]  ;;  %v306_v54 = vld [vmem:[%s5970_s3 + $0xa0] sm:$0xff] }
 0x136   : > { %455 = vperm.xlu1 %4059, %v412_v46   ;;  %415 = vperm.xlu0 %4060, %v404_v47   ;;  %v405_v42 = vsub.f32 %v4549_v40, %v396_v37  ;;  %v401_v47 = vmul.f32 %v4408_v38, %v4567_v45  ;;  %v4587_v38 = vld [vmem:[%s5971_s4] sm:$0xff]   ;;  %v4601_v58 = vld [vmem:[%s5971_s4 + $0x10] sm:$0xff]  }
 0x137   : > { %v408_v46 = vsub.f32 %v4562_v44, %v399_v43  ;;  %3652 = vmatpush3.bf16.msra.mxu1 %v4587_v38  ;;  %v4615_v63 = vld [vmem:[%s5971_s4 + $0x20] sm:$0xff]  }
 0x138   : > { %3630 = vmatpush3.bf16.msra.mxu0 %v392_v51  ;;  %v410_v51 = vsub.f32 %v4575_v48, %v401_v47  ;;  %3653 = vmatprep.subr.bf16.mxu1 %v5974_v26 }
 0x13a   : > { %425 = vperm.xlu0 %4060, %v406_v53   ;;  %v304_v53 = vld [vmem:[%s5970_s3 + $0x90] sm:$0xff] }
 0x13b   : > { %3632 = vmatmul.mubr.msk.bf16.vlgmr.msra.gmra.mrb[0].mxu0 %vm481_vm1, %v4441_v52 }
 0x13c   : > { %3635 = vmatprep.mubr.msk.bf16.mxu0 %vm4311_vm0, %v5974_v26 }
 0x13e   : > { %430 = vperm.xlu0 %4060, %v407_v57   ;;  %v4593_v57 = vld [vmem:[%s5971_s4 + $0x8] sm:$0xff]  }
 0x13f   : > { %3654 = vmatpush3.bf16.msra.mxu1 %v4593_v57 }
 0x140   : > { %3655 = vmatprep.subr.bf16.mxu1 %v5974_v26 }
 0x142   : > { %440 = vperm.xlu0 %4060, %v409_v62   ;;  %v4608_v62 = vld [vmem:[%s5971_s4 + $0x18] sm:$0xff]  }
 0x143   : > { %3636 = vmatmul.mubr.msk.bf16.gmra.mrb[4].mxu0 %vm481_vm1, %v4476_v61  ;;  %3656 = vmatpush3.bf16.msra.mxu1 %v4601_v58 }
 0x144   : > { %3639 = vmatprep.mubr.msk.bf16.mxu0 %vm4311_vm0, %v5974_v26  ;;  %3657 = vmatprep.subr.bf16.mxu1 %v5974_v26 }
 0x146   : > { %450 = vperm.xlu0 %4060, %v411_v5   ;;  %v4622_v5 = vld [vmem:[%s5971_s4 + $0x28] sm:$0xff]  }
 0x147   : > { %3658 = vmatpush3.bf16.msra.mxu1 %v4608_v62 }
 0x148   : > { %3659 = vmatprep.subr.bf16.mxu1 %v5974_v26 }
 0x14a   : > { %788 = vperm.xlu0 %4060, %v305_v9   ;;  %v4629_v9 = vld [vmem:[%s5971_s4 + $0x30] sm:$0xff]  }
 0x14b   : > { %3640 = vmatmul.mubr.msk.bf16.gmra.mrb[8].mxu0 %vm481_vm1, %v4494_v6  ;;  %3660 = vmatpush3.bf16.msra.mxu1 %v4615_v63 }
 0x14c   : > { %3643 = vmatprep.mubr.msk.bf16.mxu0 %vm4311_vm0, %v5974_v26  ;;  %3661 = vmatprep.subr.bf16.mxu1 %v5974_v26 }
 0x14e   : > { %798 = vperm.xlu0 %4060, %v307_v10   ;;  %v4635_v10 = vld [vmem:[%s5971_s4 + $0x38] sm:$0xff]  }
 0x14f   : > { %3662 = vmatpush3.bf16.msra.mxu1 %v4622_v5 }
 0x150   : > { %3663 = vmatprep.subr.bf16.mxu1 %v5974_v26 }
 0x153   : > { %3644 = vmatmul.mubr.msk.bf16.gmra.mrb[12].mxu0 %vm481_vm1, %v4503_v7  ;;  %3664 = vmatpush3.bf16.msra.mxu1 %v4629_v9 }
 0x154   : > { %3647 = vmatprep.mubr.msk.bf16.mxu0 %vm4311_vm0, %v5974_v26  ;;  %3665 = vmatprep.subr.bf16.mxu1 %v5974_v26 }
 0x157   : > { %3666 = vmatpush3.bf16.msra.mxu1 %v4635_v10 }
 0x15b   : > { %3648 = vmatmul.mubr.msk.bf16.gmra.mrb[16].mxu0 %vm481_vm1, %v4512_v8 }
 0x1b5   : > { %v456_v28 = vpop.permute.xlu1 %455 }
 0x20e   : > { %v4522_v11 = vpop.f32.mrb[0].mxu0 }
 0x20f   : > { %v3633_v12 = vpop.f32.mrb[1].mxu0 }
 0x210   : > { %v4524_v13 = vpop.f32.mrb[2].mxu0 }
 0x211   : > { %v3634_v14 = vpop.f32.mrb[3].mxu0 }
 0x216   : > { %v4526_v15 = vpop.f32.mrb[4].mxu0 }
 0x217   : > { %v3637_v16 = vpop.f32.mrb[5].mxu0 }
 0x218   : > { %v4528_v17 = vpop.f32.mrb[6].mxu0 }
 0x219   : > { %v3638_v18 = vpop.f32.mrb[7].mxu0 }
 0x21e   : > { %v4530_v19 = vpop.f32.mrb[8].mxu0 }
 0x21f   : > { %v3641_v20 = vpop.f32.mrb[9].mxu0 }
 0x220   : > { %v4532_v21 = vpop.f32.mrb[10].mxu0 }
 0x221   : > { %v3642_v22 = vpop.f32.mrb[11].mxu0 }
 0x226   : > { %v4534_v23 = vpop.f32.mrb[12].mxu0 }
 0x227   : > { %v3645_v24 = vpop.f32.mrb[13].mxu0 }
 0x228   : > { %v4536_v25 = vpop.f32.mrb[14].mxu0 }
 0x229   : > { %v3646_v27 = vpop.f32.mrb[15].mxu0 }
 0x22e   : > { %v563_v29 = vpop.f32.mrb[16].mxu0 }
 0x22f   : > { %v564_v30 = vadd.f32 %v563_v29, %v456_v28  ;;  %v3649_v31 = vpop.f32.mrb[17].mxu0  ;;  %v416_v29 = vpop.permute.xlu0 %415 }
 0x230   : > { %v566_v32 = vpop.f32.mrb[18].mxu0  ;;  %v532_v47 = vadd.f32 %v4522_v11, %v416_v29 }
 0x231   : > { %v3650_v34 = vpop.f32.mrb[19].mxu0  ;;  %v570_v35 = vsel %vm569_vm2, %v564_v30, -inf  ;;  %v584_v32 = vlaneseq }
 0x232   : > { %571 = vmax.xlane.f32.xlu1 %v570_v35 }
 0x233   : > { %v585_v34 = vshrl.u32 %v584_v32, 7  ;;  %v426_v35 = vpop.permute.xlu0 %425 }
 0x235   : > { %v4639_v37 = vsub.s32 0, %v585_v34 }
 0x243   : > { %420 = vperm.xlu1 %4059, %v405_v42  }
 0x247   : > { %435 = vperm.xlu1 %4059, %v408_v46   ;;  %v431_v46 = vpop.permute.xlu0 %430 }
 0x24b   : > { %445 = vperm.xlu1 %4059, %v410_v51   ;;  %v540_v51 = vadd.f32 %v4526_v15, %v426_v35 }
 0x24f   : > { %783 = vperm.xlu1 %4059, %v304_v53   ;;  %v543_v53 = vadd.f32 %v4528_v17, %v431_v46 }
 0x253   : > { %793 = vperm.xlu1 %4059, %v306_v54  }
 0x2bf   : > { %v572_v12 = vpop.xlane.xlu1 %571 }
 0x2c0   : > { %v573_v14 = vrot.slane %v572_v12, 4 }
 0x2c2   : > { %v574_v16 = vmax.f32 %v572_v12, %v573_v14 }
 0x2c3   : > { %v421_v42 = vpop.permute.xlu1 %420 }
 0x2c4   : > { %v575_v18 = vrot.slane %v574_v16, 2  ;;  %v535_v54 = vadd.f32 %v4524_v13, %v421_v42  ;;  %v4653_v13 = vld [vmem:[%s5972_s5] sm:$0xf] }
 0x2c5   : > { %3987 = vmatprep.subr.msk.bf16.mxu0 %vm718_vm3, %v4653_v13  ;;  %v4659_v15 = vsel %vm718_vm3, %v4653_v13, 0 }
 0x2c6   : > { %v576_v20 = vmax.f32 %v574_v16, %v575_v18  ;;  %6009 = vst [vmem:[#allocation2_spill] sm:$0xff] %v4659_v15  ;;  %3680 = vmatpush3.bf16.msra.mxu0 %v4659_v15 }
 0x2c8   : > { %v577_v22 = vrot.slane %v576_v20, 1 }
 0x2ca   : > { %v578_v24 = vmax.f32 %v576_v20, %v577_v22 }
 0x2cc   : > { %3997 = vpush %v578_v24 }
 0x2fd   : > { %s3998_s8 = spop %3997 }
 0x2fe   : > { %v580_v27 = vstv %s3998_s8 }
 0x2ff   : > { %v581_v28 = vsub.f32 %v564_v30, %v580_v27 }
 0x301   : > { %v582_v31 = vmul.f32 1.442695, %v581_v28 }
 0x303   : > { %4084 = vpow2.f32 %v582_v31 }
 0x30d   : > { %v4085_v43 = vpop.eup %4084 }
 0x30e   : > { %v587_v30 = vrot.slane %v4085_v43, %v4639_v37  ;;  %v594_v11 = vpack.c.bf16 %v4085_v43, %v4085_v43 }
 0x310   : > { %v588_v12 = vmul.f32 %v587_v30, %v532_v47  ;;  %v589_v14 = vmul.f32 %v587_v30, %v535_v54  ;;  %v590_v16 = vmul.f32 %v587_v30, %v540_v51  ;;  %v591_v18 = vmul.f32 %v587_v30, %v543_v53 }
 0x312   : > { %v592_v20 = vpack.c.bf16 %v589_v14, %v588_v12  ;;  %v593_v22 = vpack.c.bf16 %v591_v18, %v590_v16 }
 0x314   : > { %3668 = vmatmul.mubr.bf16.vlgmr.msra.gmra.mrb[0].mxu1 %v592_v20  ;;  %v4668_v20 = vld [vmem:[%s5968_s1 + $0x24] sm:$0xff]  }
 0x315   : > { %3671 = vmatprep.mubr.msk.bf16.mxu1 %vm4311_vm0, %v5974_v26 }
 0x31c   : > { %3672 = vmatmul.mubr.bf16.gmra.mrb[4].mxu1 %v593_v22  ;;  %v436_v22 = vpop.permute.xlu1 %435 }
 0x31d   : > { %3675 = vmatprep.mubr.msk.bf16.mxu1 %vm4311_vm0, %v5974_v26 }
 0x324   : > { %3676 = vmatmul.mubr.bf16.gmra.mrb[8].mxu1 %v594_v11  ;;  %v441_v11 = vpop.permute.xlu0 %440 }
 0x3e7   : > { %v677_v17 = vpop.f32.mrb[0].mxu1 }
 0x3e8   : > { %v3669_v24 = vpop.f32.mrb[1].mxu1 }
 0x3e9   : > { %v680_v27 = vpop.f32.mrb[2].mxu1 }
 0x3ea   : > { %v3670_v28 = vpop.f32.mrb[3].mxu1 }
 0x3eb   : > { %v548_v28 = vadd.f32 %v4530_v19, %v436_v22 }
 0x3ef   : > { %v685_v29 = vpop.f32.mrb[4].mxu1 }
 0x3f0   : > { %v3673_v31 = vpop.f32.mrb[5].mxu1 }
 0x3f1   : > { %v688_v32 = vpop.f32.mrb[6].mxu1  ;;  %v551_v31 = vadd.f32 %v4532_v21, %v441_v11  ;;  %v4679_v21 = vld [vmem:[%s5968_s1 + $0x2c] sm:$0xff]  }
 0x3f2   : > { %v3674_v34 = vpop.f32.mrb[7].mxu1 }
 0x3f3   : > { %v771_v34 = vmax.f32 %v548_v28, 0.0 }
 0x3f7   : > { %v693_v35 = vpop.f32.mrb[8].mxu1 }
 0x3f8   : > { %v699_v42 = vmax.f32 %v693_v35, 1e-20  ;;  %v3677_v43 = vpop.f32.mrb[9].mxu1 }
 0x3f9   : > { %v696_v46 = vpop.f32.mrb[10].mxu1 }
 0x3fa   : > { %4086 = vrcp.f32 %v699_v42  ;;  %v3678_v47 = vpop.f32.mrb[11].mxu1 }
 0x3fb   : > { %v772_v47 = vmax.f32 %v551_v31, 0.0 }
 0x404   : > { %v4087_v51 = vpop.eup %4086 }
 0x405   : > { %v704_v53 = vrot.slane %v4087_v51, %v4639_v37 }
 0x407   : > { %v705_v54 = vmul.f32 %v704_v53, %v677_v17  ;;  %v706_v30 = vmul.f32 %v704_v53, %v680_v27  ;;  %v707_v12 = vmul.f32 %v704_v53, %v685_v29  ;;  %v708_v14 = vmul.f32 %v704_v53, %v688_v32  ;;  %v446_v17 = vpop.permute.xlu1 %445  ;;  %v451_v27 = vpop.permute.xlu0 %450 }
 0x408   : > { %v556_v24 = vadd.f32 %v4534_v23, %v446_v17  ;;  %v559_v29 = vadd.f32 %v4536_v25, %v451_v27 }
 0x409   : > { %v709_v16 = vpack.c.bf16 %v706_v30, %v705_v54  ;;  %v710_v18 = vpack.c.bf16 %v708_v14, %v707_v12 }
 0x40a   : > { %v773_v32 = vmax.f32 %v556_v24, 0.0  ;;  %v774_v42 = vmax.f32 %v559_v29, 0.0 }
 0x40b   : > { %3681 = vmatprep.mubr.msk.bf16.mxu0 %vm711_vm4, %v709_v16  ;;  %v4683_v25 = vpop.permute.xlu1 %783  ;;  %v4685_v14 = vpop.permute.xlu0 %788  ;;  %v4688_v16 = vld [vmem:[%s4364_s27 + $0x20] sm:$0xff] }
 0x40c   : > { %3682 = vmatmul.mubr.msk.bf16.vlgmr.msra.gmra.mrb[20].mxu0 %vm711_vm4, %v710_v18  ;;  %6010 = vst [vmem:[#allocation3_spill] sm:$0xff] %v4683_v25  ;;  %6011 = vst [vmem:[#allocation4_spill] sm:$0xff] %v4685_v14  ;;  %v4691_v18 = vld [vmem:[%s4364_s27 + $0x28] sm:$0xff]  ;;  %v1240_v29 = vmul.f32 %v4688_v16, %v4688_v16 }
 0x40d   : > { %3689 = vmatprep.mubr.msk.bf16.mxu0 %vm481_vm1, %v4668_v20  ;;  %v1241_v31 = vmul.f32 %v4691_v18, %v4691_v18 }
 0x40f   : > { %v4693_v11 = vpop.permute.xlu1 %793 }
 0x410   : > { %6012 = vst [vmem:[#allocation5_spill] sm:$0xff] %v4693_v11 }
 0x4df   : > { %v3683_v35 = vpop.f32.mrb[20].mxu0 }
 0x4e0   : > { %v777_v43 = vmul.f32 %v3683_v35, %v773_v32  ;;  %v756_v46 = vpop.f32.mrb[21].mxu0  ;;  %v4701_v32 = vpop.permute.xlu0 %798  ;;  %v4704_v35 = vld [vmem:[%s4364_s27 + $0x30] sm:$0xff] }
 0x4e1   : > { %v775_v51 = vmul.f32 %v771_v34, %v756_v46  ;;  %v3684_v53 = vpop.f32.mrb[22].mxu0  ;;  %6013 = vst [vmem:[#allocation6_spill] sm:$0xff] %v4701_v32 }
 0x4e2   : > { %v778_v54 = vmul.f32 %v3684_v53, %v774_v42  ;;  %v759_v23 = vpop.f32.mrb[23].mxu0  ;;  %v4718_v53 = vld [vmem:[%s4364_s27 + $0x38] sm:$0xff] }
 0x4e3   : > { %v776_v30 = vmul.f32 %v772_v47, %v759_v23  ;;  %v1244_v23 = vadd.f32 %v1241_v31, %v1240_v29 }
 0x4e4   : > { %v780_v12 = vpack.c.bf16 %v778_v54, %v777_v43  ;;  %v1242_v54 = vmul.f32 %v4704_v35, %v4704_v35 }
 0x4e5   : > { %v779_v19 = vpack.c.bf16 %v776_v30, %v775_v51 }
 0x4e7   : > { %3685 = vmatprep.subr.bf16.mxu0 %v779_v19 }
 0x4e8   : > { %3686 = vmatpush3.bf16.msra.mxu0 %v779_v19  ;;  %v1243_v19 = vmul.f32 %v4718_v53, %v4718_v53 }
 0x4e9   : > { %3687 = vmatprep.subr.bf16.mxu0 %v780_v12 }
 0x4ec   : > { %3688 = vmatpush3.bf16.msra.mxu0 %v780_v12 }
 0x4ef   : > { %3690 = vmatmul.mubr.msk.bf16.vlgmr.msra.gmra.mrb[24].mxu0 %vm481_vm1, %v4679_v21 }
 0x5c2   : > { %v3691_v22 = vpop.f32.mrb[24].mxu0 }
 0x5c3   : > { %v851_v17 = vpop.f32.mrb[25].mxu0  ;;  %v860_v24 = vadd.f32 %v3691_v22, %v4693_v11 }
 0x5c4   : > { %v852_v27 = vadd.f32 %v851_v17, %v4683_v25  ;;  %v3692_v28 = vpop.f32.mrb[26].mxu0 }
 0x5c5   : > { %v854_v34 = vpop.f32.mrb[27].mxu0  ;;  %v863_v43 = vadd.f32 %v3692_v28, %v4701_v32  ;;  %v4712_v47 = vadd.f32 %v860_v24, %v4373_v2 }
 0x5c6   : > { %v4707_v42 = vadd.f32 %v852_v27, %v4367_v0  ;;  %v855_v46 = vadd.f32 %v854_v34, %v4685_v14  ;;  %v1228_v0 = vadd.f32 %v4691_v18, %v4688_v16 }
 0x5c7   : > { %6015 = vst [vmem:[#allocation8_spill] sm:$0xff] %v4712_v47  ;;  %v4725_v30 = vadd.f32 %v863_v43, %v4376_v3  ;;  %v884_v17 = vmul.f32 %v4712_v47, %v4712_v47  ;;  %v1245_v3 = vadd.f32 %v1244_v23, %v1242_v54 }
 0x5c8   : > { %6014 = vst [vmem:[#allocation7_spill] sm:$0xff] %v4707_v42  ;;  %v4715_v51 = vadd.f32 %v855_v46, %v4370_v1  ;;  %v882_v2 = vmul.f32 %v4707_v42, %v4707_v42  ;;  %v1229_v31 = vadd.f32 %v4704_v35, %v1228_v0 }
 0x5c9   : > { %6017 = vst [vmem:[#allocation10_spill] sm:$0xff] %v4725_v30  ;;  %v885_v28 = vmul.f32 %v4725_v30, %v4725_v30  ;;  %v1246_v43 = vadd.f32 %v1245_v3, %v1243_v19  ;;  %v4746_v3 = vld [vmem:[%s5968_s1 + $0x34] sm:$0xff]  }
 0x5ca   : > { %6016 = vst [vmem:[#allocation9_spill] sm:$0xff] %v4715_v51  ;;  %v870_v12 = vadd.f32 %v4715_v51, %v4707_v42  ;;  %v883_v1 = vmul.f32 %v4715_v51, %v4715_v51  ;;  %v1230_v46 = vadd.f32 %v4718_v53, %v1229_v31  ;;  %3697 = vmatprep.mubr.msk.bf16.mxu1 %vm481_vm1, %v4746_v3 }
 0x5cc   : > { %v871_v22 = vadd.f32 %v870_v12, %v4712_v47  ;;  %v886_v24 = vadd.f32 %v883_v1, %v882_v2 }
 0x5ce   : > { %v872_v27 = vadd.f32 %v871_v22, %v4725_v30  ;;  %v887_v29 = vadd.f32 %v886_v24, %v884_v17 }
 0x5d0   : > { %873 = vadd.xlane.f32.xlu1 %v872_v27  ;;  %v888_v34 = vadd.f32 %v887_v29, %v885_v28 }
 0x5d2   : > { %889 = vadd.xlane.f32.xlu0 %v888_v34 }
 0x5d4   : > { %1247 = vadd.xlane.f32.xlu1 %v1246_v43 }
 0x5d6   : > { %1231 = vadd.xlane.f32.xlu0 %v1230_v46 }
 0x65d   : > { %v874_v12 = vpop.xlane.xlu1 %873 }
 0x65e   : > { %v875_v26 = vrot.slane %v874_v12, 4 }
 0x65f   : > { %v890_v2 = vpop.xlane.xlu0 %889 }
 0x660   : > { %v876_v54 = vadd.f32 %v875_v26, %v874_v12  ;;  %v891_v23 = vrot.slane %v890_v2, 4 }
 0x661   : > { %v1248_v28 = vpop.xlane.xlu1 %1247 }
 0x662   : > { %v877_v1 = vrot.slane %v876_v54, 2  ;;  %v892_v22 = vadd.f32 %v891_v23, %v890_v2 }
 0x663   : > { %v1232_v26 = vpop.xlane.xlu0 %1231 }
 0x664   : > { %v893_v14 = vrot.slane %v892_v22, 2  ;;  %v878_v32 = vadd.f32 %v877_v1, %v876_v54 }
 0x666   : > { %v879_v17 = vrot.slane %v878_v32, 1  ;;  %v894_v24 = vadd.f32 %v893_v14, %v892_v22  ;;  %v1233_v14 = vrot.slane %v1232_v26, 4 }
 0x668   : > { %v880_v0 = vadd.f32 %v879_v17, %v878_v32  ;;  %v895_v27 = vrot.slane %v894_v24, 1  ;;  %v1249_v32 = vrot.slane %v1248_v28, 4  ;;  %v1234_v29 = vadd.f32 %v1233_v14, %v1232_v26 }
 0x66a   : > { %3999 = vpush %v880_v0  ;;  %v896_v19 = vadd.f32 %v895_v27, %v894_v24  ;;  %v1250_v31 = vadd.f32 %v1249_v32, %v1248_v28  ;;  %v1235_v34 = vrot.slane %v1234_v29, 2  ;;  %v4759_v0 = vld [vmem:[%s5970_s3 + $0xf0] sm:$0xff] }
 0x66b   : > { %v4772_v32 = vld [vmem:[%s5970_s3 + $0xb0] sm:$0xff] }
 0x66c   : > { %4001 = vpush %v896_v19  ;;  %v1251_v46 = vrot.slane %v1250_v31, 2  ;;  %v1236_v12 = vadd.f32 %v1235_v34, %v1234_v29  ;;  %v4777_v29 = vld [vmem:[%s5970_s3 + $0x100] sm:$0xff] }
 0x66e   : > { %v1252_v2 = vadd.f32 %v1251_v46, %v1250_v31  ;;  %v1237_v54 = vrot.slane %v1236_v12, 1 }
 0x670   : > { %v1253_v23 = vrot.slane %v1252_v2, 1  ;;  %v1238_v22 = vadd.f32 %v1237_v54, %v1236_v12  ;;  %v4794_v54 = vld [vmem:[%s5970_s3 + $0x110] sm:$0xff] }
 0x672   : > { %v1254_v17 = vadd.f32 %v1253_v23, %v1252_v2  ;;  %v4789_v2 = vld [vmem:[%s5970_s3 + $0xc0] sm:$0xff] }
 0x69b   : > { %s4000_s18 = spop %3999 }
 0x69c   : > { %s4750_s19 = smul.f32 0.00024414063, %s4000_s18 }
 0x69d   : > { %s4002_s20 = spop %4001 }
 0x69e   : > { %s900_s22 = smul.f32 %s4750_s19, %s4750_s19 }
 0x69f   : > { %s899_s25 = smul.f32 0.00024414063, %s4002_s20 }
 0x6a1   : > { %s901_s26 = ssub.f32 %s899_s25, %s900_s22 }
 0x6a3   : > { %s902_s28 = smax.f32 %s4312_s10, %s901_s26 }
 0x6a4   : > { %s903_s29 = sadd.f32 1e-05, %s902_s28 }
 0x6a6   : > { %v904_v43 = vstv %s903_s29 }
 0x6a7   : > { %4088 = vrsqrt.f32 %v904_v43 }
 0x6b1   : > { %v4089_v1 = vpop.eup %4088 }
 0x6b2   : > { %4003 = vpush %v4089_v1  ;;  %v4801_v1 = vld [vmem:[%s5968_s1 + $0x3c] sm:$0xff]  }
 0x6b3   : > { %4005 = vpush %v1238_v22 }
 0x6b4   : > { %4007 = vpush %v1254_v17 }
 0x6e3   : > { %s4004_s30 = spop %4003 }
 0x6e4   : > { %v907_v24 = vstv %s4004_s30  ;;  %s914_s7 = smul.f32 %s4004_s30, %s4750_s19  ;;  %s4006_s8 = spop %4005 }
 0x6e5   : > { %v908_v27 = vmul.f32 %v907_v24, %v4707_v42  ;;  %v909_v19 = vmul.f32 %v907_v24, %v4715_v51  ;;  %v910_v26 = vmul.f32 %v907_v24, %v4712_v47  ;;  %v911_v28 = vmul.f32 %v907_v24, %v4725_v30  ;;  %s4765_s12 = smul.f32 0.00024414063, %s4006_s8  ;;  %s4008_s13 = spop %4007  ;;  %v4808_v24 = vld [vmem:[%s5970_s3 + $0xd0] sm:$0xff]  ;;  %v4851_v51 = vld [vmem:[%s5970_s3 + $0xb8] sm:$0xff] }
 0x6e6   : > { %v4767_v14 = vstv %s914_s7  ;;  %s1257_s14 = smul.f32 0.00024414063, %s4008_s13 }
 0x6e7   : > { %s1258_s19 = smul.f32 %s4765_s12, %s4765_s12  ;;  %v912_v31 = vpack.c.bf16 %v909_v19, %v908_v27  ;;  %v916_v34 = vmul.f32 %v4767_v14, %v4759_v0  ;;  %v913_v46 = vpack.c.bf16 %v911_v28, %v910_v26  ;;  %v918_v12 = vmul.f32 %v4767_v14, %v4777_v29  ;;  %v4813_v27 = vld [vmem:[%s5968_s1 + $0x44] sm:$0xff]   ;;  %v4824_v28 = vld [vmem:[%s5968_s1 + $0x4c] sm:$0xff]  }
 0x6e8   : > { %v920_v22 = vmul.f32 %v4767_v14, %v4794_v54  ;;  %v6018_v19 = vmov 0.0  }
 0x6e9   : > { %s1259_s20 = ssub.f32 %s1257_s14, %s1258_s19  ;;  %3693 = vmatprep.subr.bf16.mxu1 %v912_v31  ;;  %v924_v43 = vsub.f32 %v4772_v32, %v916_v34  ;;  %v926_v23 = vsub.f32 %v4789_v2, %v918_v12 }
 0x6ea   : > { %3694 = vmatpush3.bf16.msra.mxu1 %v912_v31  ;;  %v928_v26 = vsub.f32 %v4808_v24, %v920_v22 }
 0x6eb   : > { %s1260_s29 = smax.f32 %s4312_s10, %s1259_s20  ;;  %934 = vperm.xlu1 %4059, %v924_v43   ;;  %3695 = vmatprep.subr.bf16.mxu1 %v913_v46 }
 0x6ec   : > { %s1261_s30 = sadd.f32 1e-05, %s1260_s29 }
 0x6ee   : > { %v1262_v17 = vstv %s1261_s30  ;;  %3696 = vmatpush3.bf16.msra.mxu1 %v913_v46 }
 0x6ef   : > { %4090 = vrsqrt.f32 %v1262_v17  ;;  %944 = vperm.xlu1 %4059, %v926_v23   ;;  %3717 = vmatprep.subr.bf16.mxu1 %v6018_v19  ;;  %v4838_v23 = vld [vmem:[%s5970_s3 + $0xf8] sm:$0xff] }
 0x6f0   : > { %v917_v47 = vmul.f32 %v4767_v14, %v4838_v23 }
 0x6f1   : > { %3698 = vmatmul.mubr.msk.bf16.vlgmr.msra.gmra.mrb[12].mxu1 %vm481_vm1, %v4801_v1 }
 0x6f2   : > { %3701 = vmatprep.mubr.msk.bf16.mxu1 %vm481_vm1, %v4813_v27 }
 0x6f3   : > { %954 = vperm.xlu1 %4059, %v928_v26  }
 0x6f9   : > { %v4091_v31 = vpop.eup %4090  ;;  %3702 = vmatmul.mubr.msk.bf16.gmra.mrb[16].mxu1 %vm481_vm1, %v4824_v28 }
 0x6fa   : > { %4009 = vpush %v4091_v31  ;;  %3721 = vmatprep.mubr.msk.bf16.mxu1 %vm4311_vm0, %v6018_v19 }
 0x72b   : > { %s4010_s17 = spop %4009 }
 0x72c   : > { %v1265_v34 = vstv %s4010_s17  ;;  %s1272_s18 = smul.f32 %s4010_s17, %s4765_s12 }
 0x72d   : > { %v1266_v43 = vmul.f32 %v4688_v16, %v1265_v34  ;;  %v1267_v46 = vmul.f32 %v4691_v18, %v1265_v34  ;;  %v1268_v22 = vmul.f32 %v4704_v35, %v1265_v34  ;;  %v1269_v17 = vmul.f32 %v4718_v53, %v1265_v34  ;;  %v4856_v34 = vld [vmem:[%s5970_s3 + $0x108] sm:$0xff] }
 0x72e   : > { %v4833_v12 = vstv %s1272_s18  ;;  %6019 = vst [vmem:[#allocation11_spill] sm:$0xff] %v4856_v34 }
 0x72f   : > { %v1270_v26 = vpack.c.bf16 %v1267_v46, %v1266_v43  ;;  %v1282_v31 = vmul.f32 %v4833_v12, %v4400_v33  ;;  %v1271_v33 = vpack.c.bf16 %v1269_v17, %v1268_v22  ;;  %v919_v43 = vmul.f32 %v4767_v14, %v4856_v34  ;;  %v4864_v46 = vld [vmem:[%s5970_s3 + $0xc8] sm:$0xff]  ;;  %v4884_v22 = vld [vmem:[%s5970_s3 + $0xd8] sm:$0xff] }
 0x730   : > { %6020 = vst [vmem:[#allocation12_spill] sm:$0xff] %v4864_v46  ;;  %6022 = vst [vmem:[#allocation14_spill] sm:$0xff] %v4884_v22 }
 0x731   : > { %3718 = vmatpush3.bf16.msra.mxu1 %v1270_v26  ;;  %v1291_v30 = vsub.f32 %v4413_v39, %v1282_v31  ;;  %v925_v39 = vsub.f32 %v4851_v51, %v917_v47  ;;  %v4869_v26 = vld [vmem:[%s5970_s3 + $0x118] sm:$0xff]  ;;  %v927_v47 = vsub.f32 %v4864_v46, %v919_v43  ;;  %v4897_v31 = vld [vmem:[%s5970_s3 + $0xe8] sm:$0xff] }
 0x732   : > { %3719 = vmatprep.subr.bf16.mxu1 %v6018_v19  ;;  %6021 = vst [vmem:[#allocation13_spill] sm:$0xff] %v4869_v26  ;;  %6024 = vst [vmem:[#allocation16_spill] sm:$0xff] %v4897_v31 }
 0x733   : > { %1334 = vperm.xlu0 %4060, %v1291_v30   ;;  %v921_v30 = vmul.f32 %v4767_v14, %v4869_v26 }
 0x735   : > { %3720 = vmatpush3.bf16.msra.mxu1 %v1271_v33 }
 0x736   : > { %3988 = vmatprep.subr.msk.bf16.mxu1 %vm718_vm3, %v4653_v13  ;;  %v4889_v13 = vld [vmem:[%s5970_s3 + $0x128] sm:$0xff] }
 0x737   : > { %939 = vperm.xlu0 %4060, %v925_v39   ;;  %6023 = vst [vmem:[#allocation15_spill] sm:$0xff] %v4889_v13  ;;  %v923_v17 = vmul.f32 %v4767_v14, %v4889_v13  ;;  %v1275_v39 = vmul.f32 %v4833_v12, %v4542_v36 }
 0x738   : > { %3722 = vmatmul.mubr.msk.bf16.vlgmr.msra.gmra.mrb[20].mxu1 %vm481_vm1, %v4441_v52  ;;  %v929_v52 = vsub.f32 %v4884_v22, %v921_v30  ;;  %v1279_v30 = vmul.f32 %v4833_v12, %v4454_v56 }
 0x739   : > { %3725 = vmatprep.mubr.msk.bf16.mxu1 %vm4311_vm0, %v6018_v19  ;;  %3770 = vmatpush3.bf16.msra.mxu1 %v4659_v15  ;;  %v931_v33 = vsub.f32 %v4897_v31, %v923_v17  ;;  %v1284_v43 = vsub.f32 %v4549_v40, %v1275_v39  ;;  %v1281_v40 = vmul.f32 %v4833_v12, %v4471_v60 }
 0x73a   : > { %v1288_v36 = vsub.f32 %v4466_v59, %v1279_v30 }
 0x73b   : > { %949 = vperm.xlu0 %4060, %v927_v47   ;;  %v1277_v47 = vmul.f32 %v4833_v12, %v4436_v50  ;;  %v1290_v50 = vsub.f32 %v4484_v4, %v1281_v40 }
 0x73f   : > { %959 = vperm.xlu0 %4060, %v929_v52  }
 0x740   : > { %3726 = vmatmul.mubr.msk.bf16.gmra.mrb[24].mxu1 %vm481_vm1, %v4476_v61  ;;  %v1286_v61 = vsub.f32 %v4449_v55, %v1277_v47 }
 0x741   : > { %3729 = vmatprep.mubr.msk.bf16.mxu1 %vm4311_vm0, %v6018_v19 }
 0x743   : > { %969 = vperm.xlu0 %4060, %v931_v33  }
 0x747   : > { %1299 = vperm.xlu0 %4060, %v1284_v43  }
 0x748   : > { %3730 = vmatmul.mubr.msk.bf16.gmra.mrb[28].mxu1 %vm481_vm1, %v4494_v6 }
 0x749   : > { %3733 = vmatprep.mubr.msk.bf16.mxu1 %vm4311_vm0, %v6018_v19 }
 0x74b   : > { %1309 = vperm.xlu0 %4060, %v1286_v61  }
 0x74f   : > { %1319 = vperm.xlu0 %4060, %v1288_v36  }
 0x750   : > { %3734 = vmatmul.mubr.msk.bf16.gmra.mrb[32].mxu1 %vm481_vm1, %v4503_v7 }
 0x751   : > { %3737 = vmatprep.mubr.msk.bf16.mxu1 %vm4311_vm0, %v6018_v19 }
 0x753   : > { %1329 = vperm.xlu0 %4060, %v1290_v50  }
 0x758   : > { %3738 = vmatmul.mubr.msk.bf16.gmra.mrb[36].mxu1 %vm481_vm1, %v4512_v8 }
 0x76a   : > { %v935_v56 = vpop.permute.xlu1 %934 }
 0x76e   : > { %v945_v6 = vpop.permute.xlu1 %944 }
 0x772   : > { %v955_v50 = vpop.permute.xlu1 %954 }
 0x7b2   : > { %v4926_v55 = vpop.permute.xlu0 %1334 }
 0x7b6   : > { %v940_v59 = vpop.permute.xlu0 %939 }
 0x7ba   : > { %v950_v33 = vpop.permute.xlu0 %949 }
 0x7c4   : > { %v3699_v52 = vpop.f32.mrb[12].mxu1 }
 0x7c5   : > { %v1047_v60 = vadd.f32 %v3699_v52, %v945_v6  ;;  %v1038_v17 = vpop.f32.mrb[13].mxu1 }
 0x7c6   : > { %v1039_v39 = vadd.f32 %v1038_v17, %v935_v56  ;;  %v3700_v7 = vpop.f32.mrb[14].mxu1  ;;  %v960_v56 = vpop.permute.xlu0 %959 }
 0x7c7   : > { %v3372_v43 = vmul.f32 -1.442695, %v1047_v60  ;;  %v1050_v4 = vadd.f32 %v3700_v7, %v950_v33  ;;  %v1041_v47 = vpop.f32.mrb[15].mxu1 }
 0x7c8   : > { %v3370_v61 = vmul.f32 -1.442695, %v1039_v39  ;;  %v1042_v30 = vadd.f32 %v1041_v47, %v940_v59 }
 0x7c9   : > { %4092 = vpow2.f32 %v3372_v43  ;;  %v3373_v36 = vmul.f32 -1.442695, %v1050_v4 }
 0x7ca   : > { %4094 = vpow2.f32 %v3370_v61  ;;  %v3371_v8 = vmul.f32 -1.442695, %v1042_v30 }
 0x7cb   : > { %4096 = vpow2.f32 %v3373_v36 }
 0x7cc   : > { %4098 = vpow2.f32 %v3371_v8  ;;  %v4928_v40 = vpop.f32.mrb[16].mxu1 }
 0x7cd   : > { %v1054_v42 = vpop.f32.mrb[17].mxu1 }
 0x7ce   : > { %v1055_v6 = vadd.f32 %v1054_v42, %v955_v50  ;;  %v4930_v52 = vpop.f32.mrb[18].mxu1 }
 0x7cf   : > { %v1057_v17 = vpop.f32.mrb[19].mxu1 }
 0x7d0   : > { %v3374_v31 = vmul.f32 -1.442695, %v1055_v6  ;;  %v1058_v33 = vadd.f32 %v1057_v17, %v960_v56 }
 0x7d2   : > { %4100 = vpow2.f32 %v3374_v31  ;;  %v3375_v7 = vmul.f32 -1.442695, %v1058_v33 }
 0x7d3   : > { %v4093_v59 = vpop.eup %4092 }
 0x7d4   : > { %v4095_v43 = vpop.eup %4094  ;;  %v1095_v47 = vadd.f32 1.0, %v4093_v59  ;;  %4102 = vpow2.f32 %v3375_v7 }
 0x7d5   : > { %v4097_v61 = vpop.eup %4096  ;;  %v1093_v36 = vadd.f32 1.0, %v4095_v43 }
 0x7d6   : > { %v4099_v8 = vpop.eup %4098  ;;  %4104 = vrcp.f32 %v1095_v47  ;;  %v1096_v13 = vadd.f32 1.0, %v4097_v61 }
 0x7d7   : > { %4106 = vrcp.f32 %v1093_v36  ;;  %v1094_v22 = vadd.f32 1.0, %v4099_v8 }
 0x7d8   : > { %4108 = vrcp.f32 %v1096_v13 }
 0x7d9   : > { %4110 = vrcp.f32 %v1094_v22 }
 0x7dc   : > { %v4101_v42 = vpop.eup %4100 }
 0x7dd   : > { %v1097_v50 = vadd.f32 1.0, %v4101_v42 }
 0x7de   : > { %v4103_v15 = vpop.eup %4102 }
 0x7df   : > { %4112 = vrcp.f32 %v1097_v50  ;;  %v1098_v56 = vadd.f32 1.0, %v4103_v15 }
 0x7e0   : > { %v4105_v31 = vpop.eup %4104 }
 0x7e1   : > { %v4107_v17 = vpop.eup %4106  ;;  %4114 = vrcp.f32 %v1098_v56  ;;  %v1119_v7 = vmul.f32 %v4105_v31, %v1047_v60 }
 0x7e2   : > { %v4109_v26 = vpop.eup %4108  ;;  %v1117_v43 = vmul.f32 %v4107_v17, %v1039_v39 }
 0x7e3   : > { %v4111_v59 = vpop.eup %4110  ;;  %v1120_v46 = vmul.f32 %v4109_v26, %v1050_v4 }
 0x7e4   : > { %v1118_v34 = vmul.f32 %v4111_v59, %v1042_v30 }
 0x7e5   : > { %v1126_v47 = vpack.c.bf16 %v1120_v46, %v1119_v7 }
 0x7e6   : > { %v1125_v61 = vpack.c.bf16 %v1118_v34, %v1117_v43 }
 0x7e8   : > { %3705 = vmatprep.subr.bf16.mxu0 %v1125_v61 }
 0x7e9   : > { %v4113_v36 = vpop.eup %4112  ;;  %3706 = vmatpush3.bf16.msra.mxu0 %v1125_v61 }
 0x7ea   : > { %3707 = vmatprep.subr.bf16.mxu0 %v1126_v47  ;;  %v1121_v13 = vmul.f32 %v4113_v36, %v1055_v6 }
 0x7eb   : > { %v4115_v22 = vpop.eup %4114 }
 0x7ec   : > { %v1122_v8 = vmul.f32 %v4115_v22, %v1058_v33 }
 0x7ed   : > { %3708 = vmatpush3.bf16.msra.mxu0 %v1126_v47 }
 0x7ee   : > { %v1127_v15 = vpack.c.bf16 %v1122_v8, %v1121_v13  ;;  %v4956_v8 = vld [vmem:[%s5970_s3 + $0x120] sm:$0xff] }
 0x7f0   : > { %3709 = vmatprep.subr.bf16.mxu0 %v1127_v15 }
 0x7f1   : > { %3710 = vmatpush3.bf16.msra.mxu0 %v1127_v15  ;;  %v922_v15 = vmul.f32 %v4767_v14, %v4956_v8  ;;  %v4976_v14 = vld [vmem:[%s5970_s3] sm:$0xff] }
 0x80b   : > { %v4932_v42 = vpop.f32.mrb[20].mxu1 }
 0x80c   : > { %v3723_v50 = vpop.f32.mrb[21].mxu1 }
 0x80d   : > { %v4934_v60 = vpop.f32.mrb[22].mxu1 }
 0x80e   : > { %v3724_v26 = vpop.f32.mrb[23].mxu1 }
 0x80f   : > { %v4969_v26 = vld [vmem:[%s5970_s3 + $0x48] sm:$0xff] }
 0x813   : > { %v4936_v39 = vpop.f32.mrb[24].mxu1 }
 0x814   : > { %v3727_v34 = vpop.f32.mrb[25].mxu1 }
 0x815   : > { %v4938_v46 = vpop.f32.mrb[26].mxu1  ;;  %v1274_v34 = vmul.f32 %v4969_v26, %v4833_v12 }
 0x816   : > { %v3728_v4 = vpop.f32.mrb[27].mxu1 }
 0x817   : > { %v1283_v4 = vsub.f32 %v4976_v14, %v1274_v34 }
 0x81b   : > { %v4940_v30 = vpop.f32.mrb[28].mxu1 }
 0x81c   : > { %v3731_v6 = vpop.f32.mrb[29].mxu1 }
 0x81d   : > { %v4942_v33 = vpop.f32.mrb[30].mxu1  ;;  %v4982_v6 = vld [vmem:[%s5970_s3 + $0x58] sm:$0xff] }
 0x81e   : > { %v3732_v56 = vpop.f32.mrb[31].mxu1 }
 0x81f   : > { %v1276_v56 = vmul.f32 %v4982_v6, %v4833_v12 }
 0x823   : > { %v4944_v31 = vpop.f32.mrb[32].mxu1 }
 0x824   : > { %v3735_v17 = vpop.f32.mrb[33].mxu1 }
 0x825   : > { %v4946_v59 = vpop.f32.mrb[34].mxu1  ;;  %v1285_v17 = vsub.f32 %v4431_v49, %v1276_v56  ;;  %v970_v49 = vpop.permute.xlu0 %969 }
 0x826   : > { %v3736_v7 = vpop.f32.mrb[35].mxu1 }
 0x827   : > { %v1278_v7 = vmul.f32 %v4833_v12, %v4554_v41  ;;  %v1066_v41 = vadd.f32 %v4930_v52, %v970_v49 }
 0x82b   : > { %v1403_v43 = vpop.f32.mrb[36].mxu1 }
 0x82c   : > { %v4949_v47 = vadd.f32 %v1403_v43, %v4926_v55  ;;  %v3739_v61 = vpop.f32.mrb[37].mxu1  ;;  %v4963_v55 = vld [vmem:[%s5970_s3 + $0xe0] sm:$0xff]  ;;  %v1287_v43 = vsub.f32 %v4562_v44, %v1278_v7  ;;  %v3377_v44 = vmul.f32 -1.442695, %v1066_v41 }
 0x82d   : > { %v1406_v36 = vpop.f32.mrb[38].mxu1  ;;  %v930_v50 = vsub.f32 %v4963_v55, %v922_v15  ;;  %v1280_v61 = vmul.f32 %v4833_v12, %v4567_v45 }
 0x82e   : > { %v3740_v22 = vpop.f32.mrb[39].mxu1  ;;  %v1409_v13 = vsel %vm569_vm2, %v4949_v47, -inf  ;;  %4116 = vpow2.f32 %v3377_v44 }
 0x82f   : > { %1410 = vmax.xlane.f32.xlu1 %v1409_v13  ;;  %v1289_v36 = vsub.f32 %v4575_v48, %v1280_v61  ;;  %v4996_v22 = vld [vmem:[%s5969_s2] sm:$0xff]  }
 0x830   : > { %3713 = vmatprep.mubr.msk.bf16.mxu0 %vm1159_vm5, %v4996_v22 }
 0x838   : > { %v4117_v7 = vpop.eup %4116 }
 0x840   : > { %964 = vperm.xlu1 %4059, %v930_v50  }
 0x844   : > { %1294 = vperm.xlu1 %4059, %v1283_v4  }
 0x848   : > { %1304 = vperm.xlu1 %4059, %v1285_v17  }
 0x84c   : > { %1314 = vperm.xlu1 %4059, %v1287_v43   ;;  %v1100_v43 = vadd.f32 1.0, %v4117_v7 }
 0x850   : > { %1324 = vperm.xlu1 %4059, %v1289_v36  }
 0x8bc   : > { %v1411_v13 = vpop.xlane.xlu1 %1410 }
 0x8bd   : > { %v1412_v15 = vrot.slane %v1411_v13, 4 }
 0x8bf   : > { %v1413_v45 = vmax.f32 %v1411_v13, %v1412_v15 }
 0x8c0   : > { %v965_v12 = vpop.permute.xlu1 %964 }
 0x8c1   : > { %v1414_v48 = vrot.slane %v1413_v45, 2  ;;  %v1063_v50 = vadd.f32 %v4928_v40, %v965_v12  ;;  %v5005_v40 = vld [vmem:[%s5969_s2 + $0x8] sm:$0xff]  }
 0x8c3   : > { %v3376_v34 = vmul.f32 -1.442695, %v1063_v50  ;;  %v1415_v4 = vmax.f32 %v1413_v45, %v1414_v48 }
 0x8c5   : > { %4118 = vpow2.f32 %v3376_v34  ;;  %v1416_v56 = vrot.slane %v1415_v4, 1 }
 0x8c6   : > { %4120 = vrcp.f32 %v1100_v43 }
 0x8c7   : > { %v1417_v17 = vmax.f32 %v1415_v4, %v1416_v56 }
 0x8c9   : > { %4011 = vpush %v1417_v17 }
 0x8cf   : > { %v4119_v61 = vpop.eup %4118 }
 0x8d0   : > { %v1099_v52 = vadd.f32 1.0, %v4119_v61  ;;  %v4121_v36 = vpop.eup %4120 }
 0x8d1   : > { %v1124_v44 = vmul.f32 %v4121_v36, %v1066_v41 }
 0x8d2   : > { %4122 = vrcp.f32 %v1099_v52 }
 0x8dc   : > { %v4123_v49 = vpop.eup %4122 }
 0x8dd   : > { %v1123_v13 = vmul.f32 %v4123_v49, %v1063_v50 }
 0x8df   : > { %v1128_v15 = vpack.c.bf16 %v1124_v44, %v1123_v13 }
 0x8e1   : > { %3711 = vmatprep.subr.bf16.mxu0 %v1128_v15 }
 0x8e2   : > { %3712 = vmatpush3.bf16.msra.mxu0 %v1128_v15 }
 0x8e3   : > { %3741 = vmatprep.subr.bf16.mxu0 %v6018_v19 }
 0x8e5   : > { %3714 = vmatmul.mubr.msk.bf16.vlgmr.msra.gmra.mrb[28].mxu0 %vm1159_vm5, %v5005_v40 }
 0x8e6   : > { %3742 = vmatpush3.bf16.msra.mxu0 %v4587_v38  ;;  %3757 = vmatprep.mubr.msk.bf16.mxu0 %vm4311_vm0, %v6018_v19 }
 0x8e7   : > { %3743 = vmatprep.subr.bf16.mxu0 %v6018_v19 }
 0x8ea   : > { %3744 = vmatpush3.bf16.msra.mxu0 %v4593_v57 }
 0x8eb   : > { %3745 = vmatprep.subr.bf16.mxu0 %v6018_v19 }
 0x8ee   : > { %3746 = vmatpush3.bf16.msra.mxu0 %v4601_v58  ;;  %v1295_v58 = vpop.permute.xlu1 %1294 }
 0x8ef   : > { %3747 = vmatprep.subr.bf16.mxu0 %v6018_v19  ;;  %v1372_v50 = vadd.f32 %v4932_v42, %v1295_v58 }
 0x8f2   : > { %3748 = vmatpush3.bf16.msra.mxu0 %v4608_v62  ;;  %v1300_v62 = vpop.permute.xlu0 %1299 }
 0x8f3   : > { %3749 = vmatprep.subr.bf16.mxu0 %v6018_v19 }
 0x8f6   : > { %3750 = vmatpush3.bf16.msra.mxu0 %v4615_v63  ;;  %v1305_v63 = vpop.permute.xlu1 %1304  ;;  %v1310_v12 = vpop.permute.xlu0 %1309 }
 0x8f7   : > { %3751 = vmatprep.subr.bf16.mxu0 %v6018_v19  ;;  %v1383_v48 = vadd.f32 %v4938_v46, %v1310_v12 }
 0x8fa   : > { %s4012_s9 = spop %4011  ;;  %3752 = vmatpush3.bf16.msra.mxu0 %v4622_v5  ;;  %v1375_v5 = vadd.f32 %v4934_v60, %v1300_v62 }
 0x8fb   : > { %v1419_v38 = vstv %s4012_s9  ;;  %3753 = vmatprep.subr.bf16.mxu0 %v6018_v19 }
 0x8fc   : > { %v1420_v57 = vsub.f32 %v4949_v47, %v1419_v38  ;;  %v1380_v47 = vadd.f32 %v4936_v39, %v1305_v63 }
 0x8fe   : > { %v1421_v41 = vmul.f32 1.442695, %v1420_v57  ;;  %3754 = vmatpush3.bf16.msra.mxu0 %v4629_v9 }
 0x8ff   : > { %3755 = vmatprep.subr.bf16.mxu0 %v6018_v19 }
 0x900   : > { %4124 = vpow2.f32 %v1421_v41 }
 0x902   : > { %3756 = vmatpush3.bf16.msra.mxu0 %v4635_v10 }
 0x90a   : > { %v4125_v45 = vpop.eup %4124 }
 0x90b   : > { %v1426_v9 = vrot.slane %v4125_v45, %v4639_v37  ;;  %v1433_v60 = vpack.c.bf16 %v4125_v45, %v4125_v45 }
 0x90d   : > { %v1427_v34 = vmul.f32 %v1426_v9, %v1372_v50  ;;  %v1428_v4 = vmul.f32 %v1426_v9, %v1375_v5  ;;  %v1429_v56 = vmul.f32 %v1426_v9, %v1380_v47  ;;  %v1430_v17 = vmul.f32 %v1426_v9, %v1383_v48 }
 0x90f   : > { %v1431_v7 = vpack.c.bf16 %v1428_v4, %v1427_v34  ;;  %v1432_v10 = vpack.c.bf16 %v1430_v17, %v1429_v56  ;;  %v1315_v34 = vpop.permute.xlu1 %1314  ;;  %v1320_v4 = vpop.permute.xlu0 %1319 }
 0x911   : > { %3758 = vmatmul.mubr.bf16.vlgmr.msra.gmra.mrb[32].mxu0 %v1431_v7 }
 0x912   : > { %3761 = vmatprep.mubr.msk.bf16.mxu0 %vm4311_vm0, %v6018_v19 }
 0x913   : > { %v1325_v56 = vpop.permute.xlu1 %1324  ;;  %v1330_v7 = vpop.permute.xlu0 %1329 }
 0x914   : > { %v1396_v17 = vadd.f32 %v4944_v31, %v1325_v56 }
 0x919   : > { %3762 = vmatmul.mubr.bf16.gmra.mrb[36].mxu0 %v1432_v10  ;;  %v1388_v10 = vadd.f32 %v4940_v30, %v1315_v34 }
 0x91a   : > { %3765 = vmatprep.mubr.msk.bf16.mxu0 %vm4311_vm0, %v6018_v19 }
 0x921   : > { %3766 = vmatmul.mubr.bf16.gmra.mrb[40].mxu0 %v1433_v60  ;;  %v1399_v60 = vadd.f32 %v4946_v59, %v1330_v7  ;;  %v5064_v59 = vld [vmem:[%s4364_s27 + $0x48] sm:$0xff] }
 0x922   : > { %3787 = vmatprep.mubr.msk.bf16.mxu0 %vm481_vm1, %v4746_v3 }
 0x9b8   : > { %v5039_v42 = vpop.f32.mrb[28].mxu0 }
 0x9b9   : > { %6025 = vst [vmem:[#allocation17_spill] sm:$0xff] %v5039_v42  ;;  %v5041_v39 = vpop.f32.mrb[29].mxu0 }
 0x9ba   : > { %6026 = vst [vmem:[#allocation18_spill] sm:$0xff] %v5041_v39  ;;  %v5043_v46 = vpop.f32.mrb[30].mxu0 }
 0x9bb   : > { %6027 = vst [vmem:[#allocation19_spill] sm:$0xff] %v5043_v46  ;;  %v5045_v43 = vpop.f32.mrb[31].mxu0 }
 0x9bc   : > { %6028 = vst [vmem:[#allocation20_spill] sm:$0xff] %v5045_v43 }
 0x9e4   : > { %v1468_v61 = vpop.f32.mrb[32].mxu0 }
 0x9e5   : > { %v3759_v52 = vpop.f32.mrb[33].mxu0 }
 0x9e6   : > { %v1471_v36 = vpop.f32.mrb[34].mxu0  ;;  %v1559_v52 = vmax.f32 %v1396_v17, 0.0 }
 0x9e7   : > { %v3760_v49 = vpop.f32.mrb[35].mxu0 }
 0x9ec   : > { %v1476_v44 = vpop.f32.mrb[36].mxu0 }
 0x9ed   : > { %v3763_v13 = vpop.f32.mrb[37].mxu0 }
 0x9ee   : > { %v1479_v15 = vpop.f32.mrb[38].mxu0 }
 0x9ef   : > { %v3764_v38 = vpop.f32.mrb[39].mxu0 }
 0x9f4   : > { %v1484_v57 = vpop.f32.mrb[40].mxu0 }
 0x9f5   : > { %v1490_v41 = vmax.f32 %v1484_v57, 1e-20  ;;  %v3767_v58 = vpop.f32.mrb[41].mxu0 }
 0x9f6   : > { %v1487_v3 = vpop.f32.mrb[42].mxu0 }
 0x9f7   : > { %4126 = vrcp.f32 %v1490_v41  ;;  %v3768_v62 = vpop.f32.mrb[43].mxu0 }
 0xa01   : > { %v4127_v63 = vpop.eup %4126 }
 0xa02   : > { %v1495_v45 = vrot.slane %v4127_v63, %v4639_v37 }
 0xa04   : > { %v1496_v12 = vmul.f32 %v1495_v45, %v1468_v61  ;;  %v1497_v5 = vmul.f32 %v1495_v45, %v1471_v36  ;;  %v1498_v48 = vmul.f32 %v1495_v45, %v1476_v44  ;;  %v1499_v50 = vmul.f32 %v1495_v45, %v1479_v15 }
 0xa05   : > { %v1391_v61 = vadd.f32 %v4942_v33, %v1320_v4  ;;  %v1557_v36 = vmax.f32 %v1388_v10, 0.0  ;;  %v1560_v44 = vmax.f32 %v1399_v60, 0.0  ;;  %v5061_v33 = vld [vmem:[%s4364_s27 + $0x40] sm:$0xff]  ;;  %v6031_v4 = vld [vmem:[#allocation4_spill] sm:$0xff]  ;;  %v5087_v10 = vld [vmem:[%s4364_s27 + $0x58] sm:$0xff] }
 0xa06   : > { %v1500_v47 = vpack.c.bf16 %v1497_v5, %v1496_v12  ;;  %v1501_v9 = vpack.c.bf16 %v1499_v50, %v1498_v48  ;;  %v1922_v48 = vmul.f32 %v5061_v33, %v5061_v33 }
 0xa08   : > { %3771 = vmatprep.mubr.msk.bf16.mxu1 %vm711_vm4, %v1500_v47 }
 0xa09   : > { %3772 = vmatmul.mubr.msk.bf16.vlgmr.msra.gmra.mrb[40].mxu1 %vm711_vm4, %v1501_v9  ;;  %v6030_v9 = vld [vmem:[#allocation6_spill] sm:$0xff] }
 0xa0a   : > { %3779 = vmatprep.mubr.msk.bf16.mxu1 %vm481_vm1, %v4668_v20  ;;  %v1558_v20 = vmax.f32 %v1391_v61, 0.0 }
 0xadc   : > { %v3773_v49 = vpop.f32.mrb[40].mxu1 }
 0xadd   : > { %v1563_v13 = vmul.f32 %v3773_v49, %v1559_v52  ;;  %v1542_v15 = vpop.f32.mrb[41].mxu1  ;;  %v1925_v49 = vmul.f32 %v5087_v10, %v5087_v10 }
 0xade   : > { %v1561_v38 = vmul.f32 %v1557_v36, %v1542_v15  ;;  %v3774_v57 = vpop.f32.mrb[42].mxu1 }
 0xadf   : > { %v1564_v41 = vmul.f32 %v3774_v57, %v1560_v44  ;;  %v1545_v31 = vpop.f32.mrb[43].mxu1 }
 0xae0   : > { %v1562_v58 = vmul.f32 %v1558_v20, %v1545_v31 }
 0xae1   : > { %v1566_v3 = vpack.c.bf16 %v1564_v41, %v1563_v13 }
 0xae2   : > { %v1565_v30 = vpack.c.bf16 %v1562_v58, %v1561_v38 }
 0xae4   : > { %3775 = vmatprep.subr.bf16.mxu1 %v1565_v30 }
 0xae5   : > { %3776 = vmatpush3.bf16.msra.mxu1 %v1565_v30 }
 0xae6   : > { %3777 = vmatprep.subr.bf16.mxu1 %v1566_v3 }
 0xae9   : > { %3778 = vmatpush3.bf16.msra.mxu1 %v1566_v3 }
 0xaec   : > { %3780 = vmatmul.mubr.msk.bf16.vlgmr.msra.gmra.mrb[44].mxu1 %vm481_vm1, %v4679_v21  ;;  %v1923_v21 = vmul.f32 %v5064_v59, %v5064_v59 }
 0xaed   : > { %3803 = vmatprep.mubr.msk.bf16.mxu1 %vm1159_vm5, %v4996_v22  ;;  %v5073_v22 = vld [vmem:[%s4364_s27 + $0x50] sm:$0xff] }
 0xaee   : > { %v1924_v60 = vmul.f32 %v5073_v22, %v5073_v22  ;;  %v1926_v61 = vadd.f32 %v1923_v21, %v1922_v48 }
 0xbbf   : > { %v3781_v62 = vpop.f32.mrb[44].mxu1 }
 0xbc0   : > { %v1601_v63 = vpop.f32.mrb[45].mxu1  ;;  %v1610_v45 = vadd.f32 %v3781_v62, %v4693_v11 }
 0xbc1   : > { %v1602_v12 = vadd.f32 %v1601_v63, %v4683_v25  ;;  %v3782_v5 = vpop.f32.mrb[46].mxu1 }
 0xbc2   : > { %v1604_v50 = vpop.f32.mrb[47].mxu1  ;;  %v1613_v34 = vadd.f32 %v3782_v5, %v6030_v9  ;;  %v5081_v17 = vadd.f32 %v4704_v35, %v1610_v45 }
 0xbc3   : > { %v5076_v47 = vadd.f32 %v4688_v16, %v1602_v12  ;;  %v1605_v56 = vadd.f32 %v1604_v50, %v6031_v4  ;;  %v1910_v16 = vadd.f32 %v5064_v59, %v5061_v33 }
 0xbc4   : > { %6032 = vst [vmem:[#allocation22_spill] sm:$0xff] %v5081_v17  ;;  %v5094_v52 = vadd.f32 %v4718_v53, %v1613_v34  ;;  %v1634_v13 = vmul.f32 %v5081_v17, %v5081_v17  ;;  %v1927_v53 = vadd.f32 %v1926_v61, %v1924_v60 }
 0xbc5   : > { %6029 = vst [vmem:[#allocation21_spill] sm:$0xff] %v5076_v47  ;;  %v5084_v7 = vadd.f32 %v4691_v18, %v1605_v56  ;;  %v1632_v35 = vmul.f32 %v5076_v47, %v5076_v47  ;;  %v1911_v41 = vadd.f32 %v5073_v22, %v1910_v16 }
 0xbc6   : > { %6034 = vst [vmem:[#allocation24_spill] sm:$0xff] %v5094_v52  ;;  %v1635_v38 = vmul.f32 %v5094_v52, %v5094_v52  ;;  %v1928_v58 = vadd.f32 %v1927_v53, %v1925_v49 }
 0xbc7   : > { %6033 = vst [vmem:[#allocation23_spill] sm:$0xff] %v5084_v7  ;;  %v1620_v36 = vadd.f32 %v5084_v7, %v5076_v47  ;;  %v1633_v18 = vmul.f32 %v5084_v7, %v5084_v7  ;;  %v1912_v3 = vadd.f32 %v5087_v10, %v1911_v41 }
 0xbc9   : > { %v1621_v44 = vadd.f32 %v1620_v36, %v5081_v17  ;;  %v1636_v15 = vadd.f32 %v1633_v18, %v1632_v35 }
 0xbcb   : > { %v1622_v20 = vadd.f32 %v1621_v44, %v5094_v52  ;;  %v1637_v57 = vadd.f32 %v1636_v15, %v1634_v13 }
 0xbcd   : > { %1623 = vadd.xlane.f32.xlu1 %v1622_v20  ;;  %v1638_v31 = vadd.f32 %v1637_v57, %v1635_v38 }
 0xbcf   : > { %1639 = vadd.xlane.f32.xlu0 %v1638_v31 }
 0xbd1   : > { %1929 = vadd.xlane.f32.xlu1 %v1928_v58 }
 0xbd3   : > { %1913 = vadd.xlane.f32.xlu0 %v1912_v3 }
 0xc5a   : > { %v1624_v30 = vpop.xlane.xlu1 %1623 }
 0xc5b   : > { %v1625_v62 = vrot.slane %v1624_v30, 4 }
 0xc5c   : > { %v1640_v63 = vpop.xlane.xlu0 %1639 }
 0xc5d   : > { %v1626_v45 = vadd.f32 %v1625_v62, %v1624_v30  ;;  %v1641_v12 = vrot.slane %v1640_v63, 4 }
 0xc5e   : > { %v1930_v35 = vpop.xlane.xlu1 %1929 }
 0xc5f   : > { %v1627_v5 = vrot.slane %v1626_v45, 2  ;;  %v1642_v48 = vadd.f32 %v1641_v12, %v1640_v63  ;;  %v1931_v49 = vrot.slane %v1930_v35, 4 }
 0xc60   : > { %v1914_v36 = vpop.xlane.xlu0 %1913 }
 0xc61   : > { %v1643_v21 = vrot.slane %v1642_v48, 2  ;;  %v1628_v50 = vadd.f32 %v1627_v5, %v1626_v45  ;;  %v1915_v18 = vrot.slane %v1914_v36, 4  ;;  %v1932_v13 = vadd.f32 %v1931_v49, %v1930_v35  ;;  %v5164_v49 = vld [vmem:[%s5970_s3 + $0x40] sm:$0xff] }
 0xc63   : > { %v1629_v34 = vrot.slane %v1628_v50, 1  ;;  %v1644_v56 = vadd.f32 %v1643_v21, %v1642_v48  ;;  %v1916_v44 = vadd.f32 %v1915_v18, %v1914_v36  ;;  %v1933_v20 = vrot.slane %v1932_v13, 2 }
 0xc65   : > { %v1630_v60 = vadd.f32 %v1629_v34, %v1628_v50  ;;  %v1645_v61 = vrot.slane %v1644_v56, 1  ;;  %v1917_v15 = vrot.slane %v1916_v44, 2  ;;  %v1934_v57 = vadd.f32 %v1933_v20, %v1932_v13  ;;  %v6035_v20 = vld [vmem:[#allocation11_spill] sm:$0xff] }
 0xc67   : > { %4013 = vpush %v1630_v60  ;;  %v1646_v16 = vadd.f32 %v1645_v61, %v1644_v56  ;;  %v1918_v38 = vadd.f32 %v1917_v15, %v1916_v44  ;;  %v1935_v31 = vrot.slane %v1934_v57, 1 }
 0xc69   : > { %4015 = vpush %v1646_v16  ;;  %v1919_v41 = vrot.slane %v1918_v38, 1  ;;  %v1936_v30 = vadd.f32 %v1935_v31, %v1934_v57  ;;  %v5176_v57 = vld [vmem:[%s5972_s5] sm:$0xf]  ;;  %v6037_v31 = vld [vmem:[#allocation13_spill] sm:$0xff] }
 0xc6b   : > { %v1920_v3 = vadd.f32 %v1919_v41, %v1918_v38 }
 0xc98   : > { %s4014_s11 = spop %4013 }
 0xc99   : > { %s5112_s13 = smul.f32 0.00024414063, %s4014_s11 }
 0xc9a   : > { %s4016_s14 = spop %4015 }
 0xc9b   : > { %s1650_s15 = smul.f32 %s5112_s13, %s5112_s13 }
 0xc9c   : > { %s1649_s16 = smul.f32 0.00024414063, %s4016_s14 }
 0xc9e   : > { %s1651_s17 = ssub.f32 %s1649_s16, %s1650_s15 }
 0xca0   : > { %s1652_s18 = smax.f32 %s4312_s10, %s1651_s17 }
 0xca1   : > { %s1653_s19 = sadd.f32 1e-05, %s1652_s18 }
 0xca3   : > { %v1654_v53 = vstv %s1653_s19 }
 0xca4   : > { %4128 = vrsqrt.f32 %v1654_v53 }
 0xcae   : > { %v4129_v58 = vpop.eup %4128 }
 0xcaf   : > { %4017 = vpush %v4129_v58 }
 0xcb0   : > { %4019 = vpush %v1920_v3  ;;  %v6038_v3 = vld [vmem:[#allocation2_spill] sm:$0xff] }
 0xcb1   : > { %4021 = vpush %v1936_v30  ;;  %v6039_v30 = vld [vmem:[#allocation14_spill] sm:$0xff] }
 0xce0   : > { %s4018_s20 = spop %4017 }
 0xce1   : > { %v1657_v62 = vstv %s4018_s20  ;;  %s1664_s12 = smul.f32 %s4018_s20, %s5112_s13  ;;  %s4020_s22 = spop %4019 }
 0xce2   : > { %v1658_v63 = vmul.f32 %v1657_v62, %v5076_v47  ;;  %v1659_v45 = vmul.f32 %v1657_v62, %v5084_v7  ;;  %v1660_v12 = vmul.f32 %v1657_v62, %v5081_v17  ;;  %v1661_v5 = vmul.f32 %v1657_v62, %v5094_v52  ;;  %s5122_s25 = smul.f32 0.00024414063, %s4020_s22  ;;  %s4022_s26 = spop %4021 }
 0xce3   : > { %v5124_v48 = vstv %s1664_s12  ;;  %s1939_s28 = smul.f32 0.00024414063, %s4022_s26 }
 0xce4   : > { %s1940_s29 = smul.f32 %s5122_s25, %s5122_s25  ;;  %v1662_v21 = vpack.c.bf16 %v1659_v45, %v1658_v63  ;;  %v1666_v50 = vmul.f32 %v5124_v48, %v4759_v0  ;;  %v1663_v56 = vpack.c.bf16 %v1661_v5, %v1660_v12  ;;  %v1668_v60 = vmul.f32 %v5124_v48, %v4777_v29  ;;  %v6040_v63 = vld [vmem:[#allocation15_spill] sm:$0xff]  ;;  %v6041_v5 = vld [vmem:[#allocation16_spill] sm:$0xff] }
 0xce5   : > { %v1670_v16 = vmul.f32 %v5124_v48, %v4794_v54  ;;  %v1667_v13 = vmul.f32 %v5124_v48, %v4838_v23  ;;  %v1669_v38 = vmul.f32 %v5124_v48, %v6035_v20  ;;  %v5183_v23 = vld [vmem:[%s5968_s1] sm:$0xff]   ;;  %v1671_v58 = vmul.f32 %v5124_v48, %v6037_v31  ;;  %v5199_v12 = vld [vmem:[%s5968_s1 + $0x8] sm:$0xff]  }
 0xce6   : > { %s1941_s30 = ssub.f32 %s1939_s28, %s1940_s29  ;;  %3783 = vmatprep.subr.bf16.mxu0 %v1662_v21  ;;  %v1674_v34 = vsub.f32 %v4772_v32, %v1666_v50  ;;  %v1676_v61 = vsub.f32 %v4789_v2, %v1668_v60  ;;  %v1673_v45 = vmul.f32 %v5124_v48, %v6040_v63  ;;  %v5207_v50 = vld [vmem:[%s5970_s3 + $0x50] sm:$0xff] }
 0xce7   : > { %3784 = vmatpush3.bf16.msra.mxu0 %v1662_v21  ;;  %v1678_v32 = vsub.f32 %v4808_v24, %v1670_v16  ;;  %v1675_v53 = vsub.f32 %v4851_v51, %v1667_v13  ;;  %v6036_v51 = vld [vmem:[#allocation12_spill] sm:$0xff]  ;;  %v1679_v62 = vsub.f32 %v6039_v30, %v1671_v58 }
 0xce8   : > { %s1942_s7 = smax.f32 %s4312_s10, %s1941_s30  ;;  %1684 = vperm.xlu1 %4059, %v1674_v34   ;;  %3785 = vmatprep.subr.bf16.mxu0 %v1663_v56  ;;  %v1677_v41 = vsub.f32 %v6036_v51, %v1669_v38  ;;  %v1681_v21 = vsub.f32 %v6041_v5, %v1673_v45 }
 0xce9   : > { %s1943_s8 = sadd.f32 1e-05, %s1942_s7 }
 0xceb   : > { %v1944_v0 = vstv %s1943_s8  ;;  %3786 = vmatpush3.bf16.msra.mxu0 %v1663_v56  ;;  %v5216_v56 = vld [vmem:[%s5970_s3 + $0x8] sm:$0xff] }
 0xcec   : > { %4130 = vrsqrt.f32 %v1944_v0  ;;  %1694 = vperm.xlu1 %4059, %v1676_v61   ;;  %3807 = vmatprep.subr.bf16.mxu0 %v6018_v19  ;;  %v5222_v61 = vld [vmem:[%s5970_s3 + $0x60] sm:$0xff]  ;;  %v5229_v0 = vld [vmem:[%s5968_s1 + $0x10] sm:$0xff]  }
 0xcee   : > { %3788 = vmatmul.mubr.msk.bf16.vlgmr.msra.gmra.mrb[44].mxu0 %vm481_vm1, %v4801_v1 }
 0xcef   : > { %3791 = vmatprep.mubr.msk.bf16.mxu0 %vm481_vm1, %v4813_v27 }
 0xcf0   : > { %1704 = vperm.xlu1 %4059, %v1678_v32   ;;  %v5236_v32 = vld [vmem:[%s5970_s3 + $0x18] sm:$0xff] }
 0xcf6   : > { %v4131_v29 = vpop.eup %4130  ;;  %3792 = vmatmul.mubr.msk.bf16.gmra.mrb[48].mxu0 %vm481_vm1, %v4824_v28  ;;  %v5157_v28 = vld [vmem:[%s5970_s3 + $0x88] sm:$0xff] }
 0xcf7   : > { %4023 = vpush %v4131_v29  ;;  %3811 = vmatprep.mubr.msk.bf16.mxu0 %vm4311_vm0, %v6018_v19 }
 0xd28   : > { %s4024_s9 = spop %4023 }
 0xd29   : > { %v1947_v2 = vstv %s4024_s9  ;;  %s1954_s11 = smul.f32 %s4024_s9, %s5122_s25 }
 0xd2a   : > { %v1948_v54 = vmul.f32 %v5061_v33, %v1947_v2  ;;  %v1949_v1 = vmul.f32 %v5064_v59, %v1947_v2  ;;  %v1950_v27 = vmul.f32 %v5073_v22, %v1947_v2  ;;  %v1951_v36 = vmul.f32 %v5087_v10, %v1947_v2  ;;  %v5242_v2 = vld [vmem:[%s5970_s3 + $0x70] sm:$0xff] }
 0xd2b   : > { %v5150_v24 = vstv %s1954_s11 }
 0xd2c   : > { %v1952_v35 = vpack.c.bf16 %v1949_v1, %v1948_v54  ;;  %v1964_v18 = vmul.f32 %v5157_v28, %v5150_v24  ;;  %v1953_v15 = vpack.c.bf16 %v1951_v36, %v1950_v27  ;;  %v1957_v34 = vmul.f32 %v5207_v50, %v5150_v24  ;;  %v5251_v1 = vld [vmem:[%s5970_s3 + $0x28] sm:$0xff]  ;;  %v5257_v36 = vld [vmem:[%s5970_s3 + $0x80] sm:$0xff] }
 0xd2d   : > { %v1959_v16 = vmul.f32 %v5222_v61, %v5150_v24  ;;  %v1961_v54 = vmul.f32 %v5242_v2, %v5150_v24 }
 0xd2e   : > { %3808 = vmatpush3.bf16.msra.mxu0 %v1952_v35  ;;  %v1973_v44 = vsub.f32 %v5164_v49, %v1964_v18  ;;  %v1966_v60 = vsub.f32 %v5216_v56, %v1957_v34  ;;  %v1963_v35 = vmul.f32 %v5257_v36, %v5150_v24  ;;  %v5264_v18 = vld [vmem:[%s5968_s1 + $0x18] sm:$0xff]  }
 0xd2f   : > { %3809 = vmatprep.subr.bf16.mxu0 %v6018_v19  ;;  %v1968_v29 = vsub.f32 %v5236_v32, %v1959_v16  ;;  %v1970_v27 = vsub.f32 %v5251_v1, %v1961_v54 }
 0xd30   : > { %2016 = vperm.xlu0 %4060, %v1973_v44   ;;  %v5271_v44 = vld [vmem:[%s5970_s3 + $0x38] sm:$0xff] }
 0xd31   : > { %v1972_v13 = vsub.f32 %v5271_v44, %v1963_v35 }
 0xd32   : > { %3810 = vmatpush3.bf16.msra.mxu0 %v1953_v15  ;;  %v5279_v15 = vld [vmem:[%s5968_s1 + $0x20] ss:$0 sps:$4 sm:$0xff]  }
 0xd33   : > { %3989 = vmatprep.subr.msk.bf16.mxu0 %vm718_vm3, %v5176_v57 }
 0xd34   : > { %1689 = vperm.xlu0 %4060, %v1675_v53  }
 0xd35   : > { %3812 = vmatmul.mubr.msk.bf16.vlgmr.msra.gmra.mrb[52].mxu0 %vm481_vm1, %v5183_v23 }
 0xd36   : > { %3815 = vmatprep.mubr.msk.bf16.mxu0 %vm4311_vm0, %v6018_v19  ;;  %3860 = vmatpush3.bf16.msra.mxu0 %v6038_v3 }
 0xd38   : > { %1699 = vperm.xlu0 %4060, %v1677_v41  }
 0xd3c   : > { %1709 = vperm.xlu0 %4060, %v1679_v62  }
 0xd3d   : > { %3816 = vmatmul.mubr.msk.bf16.gmra.mrb[56].mxu0 %vm481_vm1, %v5199_v12 }
 0xd3e   : > { %3819 = vmatprep.mubr.msk.bf16.mxu0 %vm4311_vm0, %v6018_v19 }
 0xd40   : > { %1719 = vperm.xlu0 %4060, %v1681_v21  }
 0xd44   : > { %1981 = vperm.xlu0 %4060, %v1966_v60  }
 0xd45   : > { %3820 = vmatmul.mubr.msk.bf16.gmra.mrb[60].mxu0 %vm481_vm1, %v5229_v0 }
 0xd46   : > { %3823 = vmatprep.mubr.msk.bf16.mxu0 %vm4311_vm0, %v6018_v19 }
 0xd48   : > { %1991 = vperm.xlu0 %4060, %v1968_v29  }
 0xd4c   : > { %2001 = vperm.xlu0 %4060, %v1970_v27  }
 0xd4d   : > { %3824 = vmatmul.mubr.msk.bf16.gmra.mrb[64].mxu0 %vm481_vm1, %v5264_v18 }
 0xd4e   : > { %3827 = vmatprep.mubr.msk.bf16.mxu0 %vm4311_vm0, %v6018_v19 }
 0xd50   : > { %2011 = vperm.xlu0 %4060, %v1972_v13  }
 0xd55   : > { %3828 = vmatmul.mubr.msk.bf16.gmra.mrb[68].mxu0 %vm481_vm1, %v5279_v15 }
 0xd67   : > { %v1685_v20 = vpop.permute.xlu1 %1684 }
 0xd6b   : > { %v1695_v51 = vpop.permute.xlu1 %1694 }
 0xd6f   : > { %v1705_v27 = vpop.permute.xlu1 %1704 }
 0xdaf   : > { %v5283_v53 = vpop.permute.xlu0 %2016 }
 0xdb3   : > { %v1690_v38 = vpop.permute.xlu0 %1689 }
 0xdb7   : > { %v1700_v30 = vpop.permute.xlu0 %1699 }
 0xdc1   : > { %v3789_v41 = vpop.f32.mrb[44].mxu0 }
 0xdc2   : > { %v1765_v31 = vadd.f32 %v3789_v41, %v1695_v51  ;;  %v1756_v58 = vpop.f32.mrb[45].mxu0 }
 0xdc3   : > { %v1757_v62 = vadd.f32 %v1756_v58, %v1685_v20  ;;  %v3790_v63 = vpop.f32.mrb[46].mxu0  ;;  %v1710_v20 = vpop.permute.xlu0 %1709 }
 0xdc4   : > { %v3401_v45 = vmul.f32 -1.442695, %v1765_v31  ;;  %v1768_v5 = vadd.f32 %v3790_v63, %v1700_v30  ;;  %v1759_v21 = vpop.f32.mrb[47].mxu0 }
 0xdc5   : > { %v3399_v34 = vmul.f32 -1.442695, %v1757_v62  ;;  %v1760_v60 = vadd.f32 %v1759_v21, %v1690_v38 }
 0xdc6   : > { %4132 = vpow2.f32 %v3401_v45  ;;  %v3402_v16 = vmul.f32 -1.442695, %v1768_v5 }
 0xdc7   : > { %4134 = vpow2.f32 %v3399_v34  ;;  %v3400_v29 = vmul.f32 -1.442695, %v1760_v60 }
 0xdc8   : > { %4136 = vpow2.f32 %v3402_v16 }
 0xdc9   : > { %4138 = vpow2.f32 %v3400_v29  ;;  %v5285_v54 = vpop.f32.mrb[48].mxu0 }
 0xdca   : > { %v1772_v35 = vpop.f32.mrb[49].mxu0 }
 0xdcb   : > { %v1773_v13 = vadd.f32 %v1772_v35, %v1705_v27  ;;  %v5287_v51 = vpop.f32.mrb[50].mxu0 }
 0xdcc   : > { %v1775_v41 = vpop.f32.mrb[51].mxu0 }
 0xdcd   : > { %v3403_v58 = vmul.f32 -1.442695, %v1773_v13  ;;  %v1776_v30 = vadd.f32 %v1775_v41, %v1710_v20 }
 0xdcf   : > { %4140 = vpow2.f32 %v3403_v58  ;;  %v3404_v63 = vmul.f32 -1.442695, %v1776_v30 }
 0xdd0   : > { %v4133_v38 = vpop.eup %4132 }
 0xdd1   : > { %v4135_v45 = vpop.eup %4134  ;;  %v1813_v21 = vadd.f32 1.0, %v4133_v38  ;;  %4142 = vpow2.f32 %v3404_v63 }
 0xdd2   : > { %v4137_v34 = vpop.eup %4136  ;;  %v1811_v16 = vadd.f32 1.0, %v4135_v45 }
 0xdd3   : > { %v4139_v29 = vpop.eup %4138  ;;  %4144 = vrcp.f32 %v1813_v21  ;;  %v1814_v52 = vadd.f32 1.0, %v4137_v34 }
 0xdd4   : > { %4146 = vrcp.f32 %v1811_v16  ;;  %v1812_v17 = vadd.f32 1.0, %v4139_v29 }
 0xdd5   : > { %4148 = vrcp.f32 %v1814_v52 }
 0xdd6   : > { %4150 = vrcp.f32 %v1812_v17 }
 0xdd9   : > { %v4141_v27 = vpop.eup %4140 }
 0xdda   : > { %v1815_v35 = vadd.f32 1.0, %v4141_v27 }
 0xddb   : > { %v4143_v46 = vpop.eup %4142 }
 0xddc   : > { %4152 = vrcp.f32 %v1815_v35  ;;  %v1816_v20 = vadd.f32 1.0, %v4143_v46 }
 0xddd   : > { %v4145_v41 = vpop.eup %4144 }
 0xdde   : > { %v4147_v58 = vpop.eup %4146  ;;  %4154 = vrcp.f32 %v1816_v20  ;;  %v1837_v63 = vmul.f32 %v4145_v41, %v1765_v31 }
 0xddf   : > { %v4149_v42 = vpop.eup %4148  ;;  %v1835_v45 = vmul.f32 %v4147_v58, %v1757_v62 }
 0xde0   : > { %v4151_v38 = vpop.eup %4150  ;;  %v1838_v7 = vmul.f32 %v4149_v42, %v1768_v5 }
 0xde1   : > { %v1836_v47 = vmul.f32 %v4151_v38, %v1760_v60 }
 0xde2   : > { %v1844_v21 = vpack.c.bf16 %v1838_v7, %v1837_v63 }
 0xde3   : > { %v1843_v34 = vpack.c.bf16 %v1836_v47, %v1835_v45 }
 0xde5   : > { %3795 = vmatprep.subr.bf16.mxu1 %v1843_v34 }
 0xde6   : > { %v4153_v16 = vpop.eup %4152  ;;  %3796 = vmatpush3.bf16.msra.mxu1 %v1843_v34 }
 0xde7   : > { %3797 = vmatprep.subr.bf16.mxu1 %v1844_v21  ;;  %v1839_v52 = vmul.f32 %v4153_v16, %v1773_v13 }
 0xde8   : > { %v4155_v17 = vpop.eup %4154 }
 0xde9   : > { %v1840_v29 = vmul.f32 %v4155_v17, %v1776_v30 }
 0xdea   : > { %3798 = vmatpush3.bf16.msra.mxu1 %v1844_v21 }
 0xdeb   : > { %v1845_v46 = vpack.c.bf16 %v1840_v29, %v1839_v52  ;;  %v1672_v29 = vmul.f32 %v5124_v48, %v4956_v8  ;;  %v5327_v8 = vld [vmem:[%s5970_s3 + $0x68] sm:$0xff] }
 0xded   : > { %3799 = vmatprep.subr.bf16.mxu1 %v1845_v46 }
 0xdee   : > { %3800 = vmatpush3.bf16.msra.mxu1 %v1845_v46  ;;  %v1680_v46 = vsub.f32 %v4963_v55, %v1672_v29  ;;  %v1960_v55 = vmul.f32 %v5327_v8, %v5150_v24 }
 0xe08   : > { %v5289_v27 = vpop.f32.mrb[52].mxu0 }
 0xe09   : > { %v3813_v35 = vpop.f32.mrb[53].mxu0 }
 0xe0a   : > { %v5291_v31 = vpop.f32.mrb[54].mxu0  ;;  %v1956_v35 = vmul.f32 %v4969_v26, %v5150_v24  ;;  %v5334_v26 = vld [vmem:[%s5970_s3 + $0x20] sm:$0xff] }
 0xe0b   : > { %v3814_v42 = vpop.f32.mrb[55].mxu0 }
 0xe0c   : > { %v1965_v42 = vsub.f32 %v4976_v14, %v1956_v35  ;;  %v1969_v14 = vsub.f32 %v5334_v26, %v1960_v55 }
 0xe10   : > { %v5293_v62 = vpop.f32.mrb[56].mxu0 }
 0xe11   : > { %v3817_v47 = vpop.f32.mrb[57].mxu0 }
 0xe12   : > { %v5295_v7 = vpop.f32.mrb[58].mxu0  ;;  %v5321_v47 = vld [vmem:[%s5970_s3 + $0x10] sm:$0xff] }
 0xe13   : > { %v3818_v5 = vpop.f32.mrb[59].mxu0 }
 0xe18   : > { %v5297_v60 = vpop.f32.mrb[60].mxu0 }
 0xe19   : > { %v3821_v13 = vpop.f32.mrb[61].mxu0 }
 0xe1a   : > { %v5299_v30 = vpop.f32.mrb[62].mxu0  ;;  %v5347_v13 = vld [vmem:[%s5970_s3 + $0x30] sm:$0xff] }
 0xe1b   : > { %v3822_v20 = vpop.f32.mrb[63].mxu0 }
 0xe20   : > { %v5301_v41 = vpop.f32.mrb[64].mxu0 }
 0xe21   : > { %v3825_v58 = vpop.f32.mrb[65].mxu0 }
 0xe22   : > { %v5303_v38 = vpop.f32.mrb[66].mxu0  ;;  %v1720_v58 = vpop.permute.xlu0 %1719 }
 0xe23   : > { %v3826_v63 = vpop.f32.mrb[67].mxu0 }
 0xe24   : > { %v1784_v63 = vadd.f32 %v5287_v51, %v1720_v58 }
 0xe28   : > { %v2085_v45 = vpop.f32.mrb[68].mxu0 }
 0xe29   : > { %v5306_v21 = vadd.f32 %v2085_v45, %v5283_v53  ;;  %v3829_v34 = vpop.f32.mrb[69].mxu0  ;;  %v1958_v53 = vmul.f32 %v4982_v6, %v5150_v24  ;;  %v5340_v6 = vld [vmem:[%s5970_s3 + $0x78] sm:$0xff]  ;;  %v3406_v45 = vmul.f32 -1.442695, %v1784_v63 }
 0xe2a   : > { %v2088_v16 = vpop.f32.mrb[70].mxu0  ;;  %v1962_v48 = vmul.f32 %v5340_v6, %v5150_v24 }
 0xe2b   : > { %v3830_v17 = vpop.f32.mrb[71].mxu0  ;;  %v2091_v52 = vsel %vm569_vm2, %v5306_v21, -inf  ;;  %v1967_v5 = vsub.f32 %v5321_v47, %v1958_v53  ;;  %4156 = vpow2.f32 %v3406_v45 }
 0xe2c   : > { %2092 = vmax.xlane.f32.xlu1 %v2091_v52  ;;  %v1971_v20 = vsub.f32 %v5347_v13, %v1962_v48 }
 0xe3d   : > { %1714 = vperm.xlu1 %4059, %v1680_v46  }
 0xe41   : > { %1976 = vperm.xlu1 %4059, %v1965_v42  }
 0xe45   : > { %1986 = vperm.xlu1 %4059, %v1967_v5   ;;  %v4157_v5 = vpop.eup %4156 }
 0xe46   : > { %v1818_v55 = vadd.f32 1.0, %v4157_v5 }
 0xe49   : > { %1996 = vperm.xlu1 %4059, %v1969_v14  }
 0xe4d   : > { %2006 = vperm.xlu1 %4059, %v1971_v20  }
 0xeb9   : > { %v2093_v34 = vpop.xlane.xlu1 %2092 }
 0xeba   : > { %v2094_v16 = vrot.slane %v2093_v34, 4 }
 0xebc   : > { %v2095_v17 = vmax.f32 %v2093_v34, %v2094_v16  ;;  %v5381_v16 = vld [vmem:[%s5971_s4 + $0x18] sm:$0xff]  }
 0xebd   : > { %v1715_v52 = vpop.permute.xlu1 %1714 }
 0xebe   : > { %v2096_v29 = vrot.slane %v2095_v17, 2  ;;  %v1781_v24 = vadd.f32 %v5285_v54, %v1715_v52  ;;  %v5358_v54 = vld [vmem:[%s5971_s4] sm:$0xff]   ;;  %v5395_v52 = vld [vmem:[%s5971_s4 + $0x28] sm:$0xff]  }
 0xec0   : > { %v3405_v46 = vmul.f32 -1.442695, %v1781_v24  ;;  %v2097_v35 = vmax.f32 %v2095_v17, %v2096_v29  ;;  %v5388_v17 = vld [vmem:[%s5971_s4 + $0x20] sm:$0xff]  }
 0xec2   : > { %4158 = vpow2.f32 %v3405_v46  ;;  %v2098_v42 = vrot.slane %v2097_v35, 1 }
 0xec3   : > { %4160 = vrcp.f32 %v1818_v55 }
 0xec4   : > { %v2099_v53 = vmax.f32 %v2097_v35, %v2098_v42  ;;  %v5403_v35 = vld [vmem:[%s5971_s4 + $0x30] sm:$0xff]   ;;  %v1977_v42 = vpop.permute.xlu1 %1976 }
 0xec6   : > { %4025 = vpush %v2099_v53  ;;  %v5410_v53 = vld [vmem:[%s5971_s4 + $0x38] sm:$0xff]  }
 0xec8   : > { %v1987_v5 = vpop.permute.xlu1 %1986 }
 0xecc   : > { %v4159_v14 = vpop.eup %4158 }
 0xecd   : > { %v1817_v51 = vadd.f32 1.0, %v4159_v14  ;;  %v4161_v48 = vpop.eup %4160 }
 0xece   : > { %v1842_v58 = vmul.f32 %v4161_v48, %v1784_v63  ;;  %v5367_v63 = vld [vmem:[%s5971_s4 + $0x8] sm:$0xff]  }
 0xecf   : > { %4162 = vrcp.f32 %v1817_v51 }
 0xed9   : > { %v4163_v20 = vpop.eup %4162 }
 0xeda   : > { %v1841_v45 = vmul.f32 %v4163_v20, %v1781_v24  ;;  %v2054_v20 = vadd.f32 %v5289_v27, %v1977_v42  ;;  %v5425_v27 = vld [vmem:[%s5968_s1 + $0x34] sm:$0xff]  }
 0xedb   : > { %6042 = vst [vmem:[#allocation11_spill] sm:$0xff] %v5425_v27 }
 0xedc   : > { %v1846_v34 = vpack.c.bf16 %v1842_v58, %v1841_v45  ;;  %v2062_v58 = vadd.f32 %v5293_v62, %v1987_v5 }
 0xede   : > { %3801 = vmatprep.subr.bf16.mxu1 %v1846_v34 }
 0xedf   : > { %3802 = vmatpush3.bf16.msra.mxu1 %v1846_v34 }
 0xee0   : > { %3831 = vmatprep.subr.bf16.mxu1 %v6018_v19 }
 0xee2   : > { %3804 = vmatmul.mubr.msk.bf16.vlgmr.msra.gmra.mrb[48].mxu1 %vm1159_vm5, %v5005_v40  ;;  %v5374_v40 = vld [vmem:[%s5971_s4 + $0x10] sm:$0xff]  }
 0xee3   : > { %3832 = vmatpush3.bf16.msra.mxu1 %v5358_v54  ;;  %3847 = vmatprep.mubr.msk.bf16.mxu1 %vm4311_vm0, %v6018_v19 }
 0xee4   : > { %3833 = vmatprep.subr.bf16.mxu1 %v6018_v19 }
 0xee7   : > { %3834 = vmatpush3.bf16.msra.mxu1 %v5367_v63 }
 0xee8   : > { %3835 = vmatprep.subr.bf16.mxu1 %v6018_v19 }
 0xeeb   : > { %3836 = vmatpush3.bf16.msra.mxu1 %v5374_v40 }
 0xeec   : > { %3837 = vmatprep.subr.bf16.mxu1 %v6018_v19 }
 0xeef   : > { %3838 = vmatpush3.bf16.msra.mxu1 %v5381_v16 }
 0xef0   : > { %3839 = vmatprep.subr.bf16.mxu1 %v6018_v19 }
 0xef3   : > { %3840 = vmatpush3.bf16.msra.mxu1 %v5388_v17 }
 0xef4   : > { %3841 = vmatprep.subr.bf16.mxu1 %v6018_v19 }
 0xef7   : > { %s4026_s30 = spop %4025  ;;  %3842 = vmatpush3.bf16.msra.mxu1 %v5395_v52 }
 0xef8   : > { %v2101_v29 = vstv %s4026_s30  ;;  %3843 = vmatprep.subr.bf16.mxu1 %v6018_v19 }
 0xef9   : > { %v2102_v24 = vsub.f32 %v5306_v21, %v2101_v29  ;;  %v1982_v21 = vpop.permute.xlu0 %1981 }
 0xefa   : > { %v2057_v51 = vadd.f32 %v5291_v31, %v1982_v21 }
 0xefb   : > { %v2103_v46 = vmul.f32 1.442695, %v2102_v24  ;;  %3844 = vmatpush3.bf16.msra.mxu1 %v5403_v35 }
 0xefc   : > { %3845 = vmatprep.subr.bf16.mxu1 %v6018_v19 }
 0xefd   : > { %4164 = vpow2.f32 %v2103_v46  ;;  %v1992_v14 = vpop.permute.xlu0 %1991 }
 0xefe   : > { %v2065_v48 = vadd.f32 %v5295_v7, %v1992_v14 }
 0xeff   : > { %3846 = vmatpush3.bf16.msra.mxu1 %v5410_v53 }
 0xf07   : > { %v4165_v55 = vpop.eup %4164 }
 0xf08   : > { %v2108_v45 = vrot.slane %v4165_v55, %v4639_v37  ;;  %v2115_v31 = vpack.c.bf16 %v4165_v55, %v4165_v55 }
 0xf0a   : > { %v2109_v34 = vmul.f32 %v2108_v45, %v2054_v20  ;;  %v2110_v29 = vmul.f32 %v2108_v45, %v2057_v51  ;;  %v2111_v24 = vmul.f32 %v2108_v45, %v2062_v58  ;;  %v2112_v46 = vmul.f32 %v2108_v45, %v2065_v48 }
 0xf0c   : > { %v2113_v43 = vpack.c.bf16 %v2110_v29, %v2109_v34  ;;  %v2114_v39 = vpack.c.bf16 %v2112_v46, %v2111_v24 }
 0xf0e   : > { %3848 = vmatmul.mubr.bf16.vlgmr.msra.gmra.mrb[52].mxu1 %v2113_v43 }
 0xf0f   : > { %3851 = vmatprep.mubr.msk.bf16.mxu1 %vm4311_vm0, %v6018_v19 }
 0xf16   : > { %3852 = vmatmul.mubr.bf16.gmra.mrb[56].mxu1 %v2114_v39 }
 0xf17   : > { %3855 = vmatprep.mubr.msk.bf16.mxu1 %vm4311_vm0, %v6018_v19 }
 0xf1e   : > { %3856 = vmatmul.mubr.bf16.gmra.mrb[60].mxu1 %v2115_v31 }
 0xf1f   : > { %3877 = vmatprep.mubr.msk.bf16.mxu1 %vm481_vm1, %v5425_v27 }
 0xfb5   : > { %v5429_v62 = vpop.f32.mrb[48].mxu1 }
 0xfb6   : > { %6043 = vst [vmem:[#allocation12_spill] sm:$0xff] %v5429_v62  ;;  %v5431_v43 = vpop.f32.mrb[49].mxu1 }
 0xfb7   : > { %6044 = vst [vmem:[#allocation13_spill] sm:$0xff] %v5431_v43  ;;  %v5433_v7 = vpop.f32.mrb[50].mxu1 }
 0xfb8   : > { %6045 = vst [vmem:[#allocation2_spill] sm:$0xff] %v5433_v7  ;;  %v5435_v39 = vpop.f32.mrb[51].mxu1 }
 0xfb9   : > { %6046 = vst [vmem:[#allocation14_spill] sm:$0xff] %v5435_v39 }
 0xfe1   : > { %v2150_v42 = vpop.f32.mrb[52].mxu1 }
 0xfe2   : > { %v3849_v21 = vpop.f32.mrb[53].mxu1 }
 0xfe3   : > { %v2153_v5 = vpop.f32.mrb[54].mxu1 }
 0xfe4   : > { %v3850_v55 = vpop.f32.mrb[55].mxu1 }
 0xfe5   : > { %v5443_v55 = vld [vmem:[%s5968_s1 + $0x24] sm:$0xff]  }
 0xfe9   : > { %v2158_v14 = vpop.f32.mrb[56].mxu1 }
 0xfea   : > { %v3853_v51 = vpop.f32.mrb[57].mxu1 }
 0xfeb   : > { %v2161_v48 = vpop.f32.mrb[58].mxu1  ;;  %v1997_v51 = vpop.permute.xlu1 %1996 }
 0xfec   : > { %v3854_v20 = vpop.f32.mrb[59].mxu1 }
 0xfed   : > { %v2002_v20 = vpop.permute.xlu0 %2001 }
 0xff1   : > { %v2166_v58 = vpop.f32.mrb[60].mxu1 }
 0xff2   : > { %v2172_v45 = vmax.f32 %v2166_v58, 1e-20  ;;  %v3857_v34 = vpop.f32.mrb[61].mxu1 }
 0xff3   : > { %v2169_v29 = vpop.f32.mrb[62].mxu1 }
 0xff4   : > { %4166 = vrcp.f32 %v2172_v45  ;;  %v3858_v24 = vpop.f32.mrb[63].mxu1 }
 0xffe   : > { %v4167_v46 = vpop.eup %4166 }
 0xfff   : > { %v2177_v31 = vrot.slane %v4167_v46, %v4639_v37 }
0x1001   : > { %v2178_v7 = vmul.f32 %v2177_v31, %v2150_v42  ;;  %v2179_v62 = vmul.f32 %v2177_v31, %v2153_v5  ;;  %v2180_v39 = vmul.f32 %v2177_v31, %v2158_v14  ;;  %v2181_v43 = vmul.f32 %v2177_v31, %v2161_v48  ;;  %v2007_v42 = vpop.permute.xlu1 %2006  ;;  %v2012_v14 = vpop.permute.xlu0 %2011 }
0x1002   : > { %v2078_v5 = vadd.f32 %v5301_v41, %v2007_v42 }
0x1003   : > { %v2182_v21 = vpack.c.bf16 %v2179_v62, %v2178_v7  ;;  %v2183_v27 = vpack.c.bf16 %v2181_v43, %v2180_v39  ;;  %v2070_v62 = vadd.f32 %v5297_v60, %v1997_v51  ;;  %v2081_v43 = vadd.f32 %v5303_v38, %v2012_v14  ;;  %v5461_v38 = vld [vmem:[%s5969_s2] sm:$0xff]  }
0x1004   : > { %v2241_v7 = vmax.f32 %v2078_v5, 0.0  ;;  %v5466_v51 = vld [vmem:[%s4364_s27 + $0x60] sm:$0xff] }
0x1005   : > { %3861 = vmatprep.mubr.msk.bf16.mxu0 %vm711_vm4, %v2182_v21  ;;  %v2239_v39 = vmax.f32 %v2070_v62, 0.0  ;;  %v2242_v58 = vmax.f32 %v2081_v43, 0.0 }
0x1006   : > { %3862 = vmatmul.mubr.msk.bf16.vlgmr.msra.gmra.mrb[72].mxu0 %vm711_vm4, %v2183_v27  ;;  %v2073_v27 = vadd.f32 %v5299_v30, %v2002_v20  ;;  %v5454_v30 = vld [vmem:[%s5968_s1 + $0x2c] sm:$0xff]  }
0x1007   : > { %3869 = vmatprep.mubr.msk.bf16.mxu0 %vm481_vm1, %v5443_v55  ;;  %v5469_v20 = vld [vmem:[%s4364_s27 + $0x68] sm:$0xff] }
0x1008   : > { %v2240_v29 = vmax.f32 %v2073_v27, 0.0 }
0x10d9   : > { %v3863_v48 = vpop.f32.mrb[72].mxu0 }
0x10da   : > { %v2245_v45 = vmul.f32 %v3863_v48, %v2241_v7  ;;  %v2224_v34 = vpop.f32.mrb[73].mxu0  ;;  %v2604_v7 = vmul.f32 %v5466_v51, %v5466_v51 }
0x10db   : > { %v2243_v24 = vmul.f32 %v2239_v39, %v2224_v34  ;;  %v3864_v46 = vpop.f32.mrb[74].mxu0  ;;  %v2605_v39 = vmul.f32 %v5469_v20, %v5469_v20 }
0x10dc   : > { %v2246_v31 = vmul.f32 %v3864_v46, %v2242_v58  ;;  %v2227_v41 = vpop.f32.mrb[75].mxu0  ;;  %v5478_v58 = vld [vmem:[%s4364_s27 + $0x70] sm:$0xff] }
0x10dd   : > { %v2244_v21 = vmul.f32 %v2240_v29, %v2227_v41  ;;  %v2606_v41 = vmul.f32 %v5478_v58, %v5478_v58 }
0x10de   : > { %v2248_v42 = vpack.c.bf16 %v2246_v31, %v2245_v45  ;;  %v5492_v31 = vld [vmem:[%s4364_s27 + $0x78] sm:$0xff] }
0x10df   : > { %v2247_v60 = vpack.c.bf16 %v2244_v21, %v2243_v24  ;;  %v2608_v21 = vadd.f32 %v2605_v39, %v2604_v7 }
0x10e1   : > { %3865 = vmatprep.subr.bf16.mxu0 %v2247_v60 }
0x10e2   : > { %3866 = vmatpush3.bf16.msra.mxu0 %v2247_v60 }
0x10e3   : > { %3867 = vmatprep.subr.bf16.mxu0 %v2248_v42 }
0x10e6   : > { %3868 = vmatpush3.bf16.msra.mxu0 %v2248_v42 }
0x10e9   : > { %3870 = vmatmul.mubr.msk.bf16.vlgmr.msra.gmra.mrb[76].mxu0 %vm481_vm1, %v5454_v30 }
0x10ea   : > { %3893 = vmatprep.mubr.msk.bf16.mxu0 %vm1159_vm5, %v5461_v38 }
0x11bc   : > { %v3871_v5 = vpop.f32.mrb[76].mxu0 }
0x11bd   : > { %v2283_v14 = vpop.f32.mrb[77].mxu0  ;;  %v2292_v62 = vadd.f32 %v3871_v5, %v4693_v11  ;;  %v2607_v5 = vmul.f32 %v5492_v31, %v5492_v31 }
0x11be   : > { %v2284_v43 = vadd.f32 %v2283_v14, %v4683_v25  ;;  %v3872_v27 = vpop.f32.mrb[78].mxu0 }
0x11bf   : > { %v2286_v48 = vpop.f32.mrb[79].mxu0  ;;  %v2295_v34 = vadd.f32 %v3872_v27, %v6030_v9  ;;  %v5486_v24 = vadd.f32 %v5073_v22, %v2292_v62 }
0x11c0   : > { %v5481_v45 = vadd.f32 %v5061_v33, %v2284_v43  ;;  %v2287_v29 = vadd.f32 %v2286_v48, %v6031_v4  ;;  %v2592_v33 = vadd.f32 %v5469_v20, %v5466_v51 }
0x11c1   : > { %6048 = vst [vmem:[#allocation16_spill] sm:$0xff] %v5486_v24  ;;  %v5499_v42 = vadd.f32 %v5087_v10, %v2295_v34  ;;  %v2316_v62 = vmul.f32 %v5486_v24, %v5486_v24  ;;  %v2609_v10 = vadd.f32 %v2608_v21, %v2606_v41 }
0x11c2   : > { %6047 = vst [vmem:[#allocation15_spill] sm:$0xff] %v5481_v45  ;;  %v5489_v46 = vadd.f32 %v5064_v59, %v2287_v29  ;;  %v2314_v22 = vmul.f32 %v5481_v45, %v5481_v45  ;;  %v2593_v48 = vadd.f32 %v5478_v58, %v2592_v33 }
0x11c3   : > { %6050 = vst [vmem:[#allocation26_spill] sm:$0xff] %v5499_v42  ;;  %v2317_v7 = vmul.f32 %v5499_v42, %v5499_v42  ;;  %v2610_v29 = vadd.f32 %v2609_v10, %v2607_v5 }
0x11c4   : > { %6049 = vst [vmem:[#allocation25_spill] sm:$0xff] %v5489_v46  ;;  %v2302_v60 = vadd.f32 %v5489_v46, %v5481_v45  ;;  %v2315_v59 = vmul.f32 %v5489_v46, %v5489_v46  ;;  %v2594_v4 = vadd.f32 %v5492_v31, %v2593_v48 }
0x11c6   : > { %v2303_v14 = vadd.f32 %v2302_v60, %v5486_v24  ;;  %v2318_v43 = vadd.f32 %v2315_v59, %v2314_v22 }
0x11c8   : > { %v2304_v27 = vadd.f32 %v2303_v14, %v5499_v42  ;;  %v2319_v39 = vadd.f32 %v2318_v43, %v2316_v62 }
0x11ca   : > { %2305 = vadd.xlane.f32.xlu1 %v2304_v27  ;;  %v2320_v34 = vadd.f32 %v2319_v39, %v2317_v7 }
0x11cc   : > { %2321 = vadd.xlane.f32.xlu0 %v2320_v34 }
0x11ce   : > { %2611 = vadd.xlane.f32.xlu1 %v2610_v29 }
0x11d0   : > { %2595 = vadd.xlane.f32.xlu0 %v2594_v4 }
0x1257   : > { %v2306_v60 = vpop.xlane.xlu1 %2305 }
0x1258   : > { %v2307_v9 = vrot.slane %v2306_v60, 4 }
0x1259   : > { %v2322_v22 = vpop.xlane.xlu0 %2321 }
0x125a   : > { %v2308_v41 = vadd.f32 %v2307_v9, %v2306_v60  ;;  %v2323_v21 = vrot.slane %v2322_v22, 4 }
0x125b   : > { %v2612_v7 = vpop.xlane.xlu1 %2611 }
0x125c   : > { %v2309_v59 = vrot.slane %v2308_v41, 2  ;;  %v2324_v14 = vadd.f32 %v2323_v21, %v2322_v22  ;;  %v2613_v4 = vrot.slane %v2612_v7, 4 }
0x125d   : > { %v2596_v10 = vpop.xlane.xlu0 %2595 }
0x125e   : > { %v2325_v25 = vrot.slane %v2324_v14, 2  ;;  %v2310_v11 = vadd.f32 %v2309_v59, %v2308_v41  ;;  %v2597_v9 = vrot.slane %v2596_v10, 4 }
0x1260   : > { %v2311_v62 = vrot.slane %v2310_v11, 1  ;;  %v2326_v43 = vadd.f32 %v2325_v25, %v2324_v14  ;;  %v2598_v39 = vadd.f32 %v2597_v9, %v2596_v10  ;;  %v2614_v25 = vadd.f32 %v2613_v4, %v2612_v7  ;;  %v5536_v9 = vld [vmem:[%s5970_s3 + $0xf0] sm:$0xff] }
0x1262   : > { %v2312_v33 = vadd.f32 %v2311_v62, %v2310_v11  ;;  %v2327_v27 = vrot.slane %v2326_v43, 1  ;;  %v2599_v11 = vrot.slane %v2598_v39, 2  ;;  %v2615_v34 = vrot.slane %v2614_v25, 2 }
0x1264   : > { %4027 = vpush %v2312_v33  ;;  %v2328_v5 = vadd.f32 %v2327_v27, %v2326_v43  ;;  %v2600_v29 = vadd.f32 %v2599_v11, %v2598_v39  ;;  %v2616_v60 = vadd.f32 %v2615_v34, %v2614_v25  ;;  %v5543_v39 = vld [vmem:[%s5970_s3 + $0xb0] sm:$0xff] }
0x1266   : > { %4029 = vpush %v2328_v5  ;;  %v2601_v22 = vrot.slane %v2600_v29, 1  ;;  %v2617_v41 = vrot.slane %v2616_v60, 1 }
0x1268   : > { %v2602_v59 = vadd.f32 %v2601_v22, %v2600_v29  ;;  %v2618_v14 = vadd.f32 %v2617_v41, %v2616_v60  ;;  %v5557_v29 = vld [vmem:[%s5970_s3 + $0xc0] sm:$0xff]  ;;  %v5563_v22 = vld [vmem:[%s5970_s3 + $0x110] sm:$0xff] }
0x1295   : > { %s4028_s27 = spop %4027 }
0x1296   : > { %s5517_s25 = smul.f32 0.00024414063, %s4028_s27 }
0x1297   : > { %s4030_s26 = spop %4029 }
0x1298   : > { %s2332_s28 = smul.f32 %s5517_s25, %s5517_s25 }
0x1299   : > { %s2331_s29 = smul.f32 0.00024414063, %s4030_s26 }
0x129b   : > { %s2333_s30 = ssub.f32 %s2331_s29, %s2332_s28 }
0x129d   : > { %s2334_s7 = smax.f32 %s4312_s10, %s2333_s30 }
0x129e   : > { %s2335_s8 = sadd.f32 1e-05, %s2334_s7 }
0x12a0   : > { %v2336_v48 = vstv %s2335_s8 }
0x12a1   : > { %4168 = vrsqrt.f32 %v2336_v48  ;;  %v5549_v48 = vld [vmem:[%s5970_s3 + $0x100] sm:$0xff] }
0x12ab   : > { %v4169_v21 = vpop.eup %4168 }
0x12ac   : > { %4031 = vpush %v4169_v21 }
0x12ad   : > { %4033 = vpush %v2602_v59  ;;  %v5571_v59 = vld [vmem:[%s5968_s1 + $0x3c] sm:$0xff]  }
0x12ae   : > { %4035 = vpush %v2618_v14  ;;  %v5578_v14 = vld [vmem:[%s5970_s3 + $0xd0] sm:$0xff] }
0x12dd   : > { %s4032_s9 = spop %4031 }
0x12de   : > { %v2339_v62 = vstv %s4032_s9  ;;  %s2346_s11 = smul.f32 %s4032_s9, %s5517_s25  ;;  %s4034_s13 = spop %4033 }
0x12df   : > { %v2340_v43 = vmul.f32 %v2339_v62, %v5481_v45  ;;  %v2341_v33 = vmul.f32 %v2339_v62, %v5489_v46  ;;  %v2342_v27 = vmul.f32 %v2339_v62, %v5486_v24  ;;  %v2343_v5 = vmul.f32 %v2339_v62, %v5499_v42  ;;  %s5527_s14 = smul.f32 0.00024414063, %s4034_s13  ;;  %s4036_s15 = spop %4035 }
0x12e0   : > { %v5529_v10 = vstv %s2346_s11  ;;  %s2621_s16 = smul.f32 0.00024414063, %s4036_s15 }
0x12e1   : > { %s2622_s17 = smul.f32 %s5527_s14, %s5527_s14  ;;  %v2344_v7 = vpack.c.bf16 %v2341_v33, %v2340_v43  ;;  %v2348_v4 = vmul.f32 %v5536_v9, %v5529_v10  ;;  %v2345_v11 = vpack.c.bf16 %v2343_v5, %v2342_v27  ;;  %v2350_v34 = vmul.f32 %v5549_v48, %v5529_v10  ;;  %v5584_v43 = vld [vmem:[%s5968_s1 + $0x44] sm:$0xff]   ;;  %v5591_v27 = vld [vmem:[%s5968_s1 + $0x4c] sm:$0xff]  }
0x12e2   : > { %v2352_v41 = vmul.f32 %v5563_v22, %v5529_v10  ;;  %6051 = vst [vmem:[#allocation27_spill] sm:$0xff] %v5584_v43  ;;  %6052 = vst [vmem:[#allocation28_spill] sm:$0xff] %v5591_v27 }
0x12e3   : > { %s2623_s20 = ssub.f32 %s2621_s16, %s2622_s17  ;;  %3873 = vmatprep.subr.bf16.mxu1 %v2344_v7  ;;  %v2356_v25 = vsub.f32 %v5543_v39, %v2348_v4  ;;  %v2358_v60 = vsub.f32 %v5557_v29, %v2350_v34 }
0x12e4   : > { %3874 = vmatpush3.bf16.msra.mxu1 %v2344_v7  ;;  %v2360_v62 = vsub.f32 %v5578_v14, %v2352_v41 }
0x12e5   : > { %s2624_s26 = smax.f32 %s4312_s10, %s2623_s20  ;;  %2366 = vperm.xlu1 %4059, %v2356_v25   ;;  %3875 = vmatprep.subr.bf16.mxu1 %v2345_v11 }
0x12e6   : > { %s2625_s28 = sadd.f32 1e-05, %s2624_s26 }
0x12e8   : > { %v2626_v21 = vstv %s2625_s28  ;;  %3876 = vmatpush3.bf16.msra.mxu1 %v2345_v11 }
0x12e9   : > { %4170 = vrsqrt.f32 %v2626_v21  ;;  %2376 = vperm.xlu1 %4059, %v2358_v60   ;;  %3897 = vmatprep.subr.bf16.mxu1 %v6018_v19 }
0x12eb   : > { %3878 = vmatmul.mubr.msk.bf16.vlgmr.msra.gmra.mrb[64].mxu1 %vm481_vm1, %v5571_v59 }
0x12ec   : > { %3881 = vmatprep.mubr.msk.bf16.mxu1 %vm481_vm1, %v5584_v43 }
0x12ed   : > { %2386 = vperm.xlu1 %4059, %v2360_v62   ;;  %v5610_v62 = vld [vmem:[%s5970_s3 + $0xf8] sm:$0xff] }
0x12f3   : > { %v4171_v33 = vpop.eup %4170  ;;  %3882 = vmatmul.mubr.msk.bf16.gmra.mrb[68].mxu1 %vm481_vm1, %v5591_v27 }
0x12f4   : > { %4037 = vpush %v4171_v33  ;;  %3901 = vmatprep.mubr.msk.bf16.mxu1 %vm4311_vm0, %v6018_v19  ;;  %v2349_v33 = vmul.f32 %v5610_v62, %v5529_v10 }
0x1325   : > { %s4038_s20 = spop %4037 }
0x1326   : > { %v2629_v5 = vstv %s4038_s20  ;;  %s2636_s12 = smul.f32 %s4038_s20, %s5527_s14 }
0x1327   : > { %v2630_v7 = vmul.f32 %v5466_v51, %v2629_v5  ;;  %v2631_v4 = vmul.f32 %v5469_v20, %v2629_v5  ;;  %v2632_v11 = vmul.f32 %v5478_v58, %v2629_v5  ;;  %v2633_v34 = vmul.f32 %v5492_v31, %v2629_v5  ;;  %v5624_v5 = vld [vmem:[%s5970_s3 + $0x108] sm:$0xff] }
0x1328   : > { %v5600_v25 = vstv %s2636_s12 }
0x1329   : > { %v2634_v60 = vpack.c.bf16 %v2631_v4, %v2630_v7  ;;  %v2646_v41 = vmul.f32 %v5157_v28, %v5600_v25  ;;  %v2635_v42 = vpack.c.bf16 %v2633_v34, %v2632_v11  ;;  %v5618_v28 = vld [vmem:[%s5970_s3 + $0xb8] sm:$0xff]  ;;  %v2351_v7 = vmul.f32 %v5624_v5, %v5529_v10 }
0x132a   : > { %v5641_v11 = vld [vmem:[%s5970_s3 + $0x118] sm:$0xff] }
0x132b   : > { %3898 = vmatpush3.bf16.msra.mxu1 %v2634_v60  ;;  %v2655_v21 = vsub.f32 %v5164_v49, %v2646_v41  ;;  %v2357_v49 = vsub.f32 %v5618_v28, %v2349_v33  ;;  %v2353_v34 = vmul.f32 %v5641_v11, %v5529_v10  ;;  %v5657_v60 = vld [vmem:[%s5970_s3 + $0x128] sm:$0xff]  ;;  %v2639_v33 = vmul.f32 %v5207_v50, %v5600_v25 }
0x132c   : > { %3899 = vmatprep.subr.bf16.mxu1 %v6018_v19  ;;  %6053 = vst [vmem:[#allocation29_spill] sm:$0xff] %v5657_v60  ;;  %v2355_v41 = vmul.f32 %v5657_v60, %v5529_v10 }
0x132d   : > { %2698 = vperm.xlu0 %4060, %v2655_v21  }
0x132f   : > { %3900 = vmatpush3.bf16.msra.mxu1 %v2635_v42  ;;  %v5635_v42 = vld [vmem:[%s5970_s3 + $0xc8] sm:$0xff] }
0x1330   : > { %3990 = vmatprep.subr.msk.bf16.mxu1 %vm718_vm3, %v5176_v57  ;;  %v2359_v4 = vsub.f32 %v5635_v42, %v2351_v7  ;;  %v5651_v57 = vld [vmem:[%s5970_s3 + $0xd8] sm:$0xff]  ;;  %v2641_v7 = vmul.f32 %v5222_v61, %v5600_v25 }
0x1331   : > { %2371 = vperm.xlu0 %4060, %v2357_v49   ;;  %v2648_v49 = vsub.f32 %v5216_v56, %v2639_v33  ;;  %v2645_v56 = vmul.f32 %v5257_v36, %v5600_v25 }
0x1332   : > { %3902 = vmatmul.mubr.msk.bf16.vlgmr.msra.gmra.mrb[72].mxu1 %vm481_vm1, %v5183_v23  ;;  %v2361_v23 = vsub.f32 %v5651_v57, %v2353_v34 }
0x1333   : > { %3905 = vmatprep.mubr.msk.bf16.mxu1 %vm4311_vm0, %v6018_v19  ;;  %3950 = vmatpush3.bf16.msra.mxu1 %v6038_v3  ;;  %v5666_v3 = vld [vmem:[%s5970_s3 + $0xe8] sm:$0xff]  ;;  %v2654_v61 = vsub.f32 %v5271_v44, %v2645_v56 }
0x1334   : > { %6054 = vst [vmem:[#allocation30_spill] sm:$0xff] %v5666_v3  ;;  %v2363_v21 = vsub.f32 %v5666_v3, %v2355_v41 }
0x1335   : > { %2381 = vperm.xlu0 %4060, %v2359_v4   ;;  %v2643_v4 = vmul.f32 %v5242_v2, %v5600_v25 }
0x1337   : > { %v2652_v50 = vsub.f32 %v5251_v1, %v2643_v4 }
0x1339   : > { %2391 = vperm.xlu0 %4060, %v2361_v23  }
0x133a   : > { %3906 = vmatmul.mubr.msk.bf16.gmra.mrb[76].mxu1 %vm481_vm1, %v5199_v12  ;;  %v2650_v12 = vsub.f32 %v5236_v32, %v2641_v7 }
0x133b   : > { %3909 = vmatprep.mubr.msk.bf16.mxu1 %vm4311_vm0, %v6018_v19 }
0x133d   : > { %2401 = vperm.xlu0 %4060, %v2363_v21  }
0x1341   : > { %2663 = vperm.xlu0 %4060, %v2648_v49  }
0x1342   : > { %3910 = vmatmul.mubr.msk.bf16.gmra.mrb[80].mxu1 %vm481_vm1, %v5229_v0 }
0x1343   : > { %3913 = vmatprep.mubr.msk.bf16.mxu1 %vm4311_vm0, %v6018_v19 }
0x1345   : > { %2673 = vperm.xlu0 %4060, %v2650_v12  }
0x1349   : > { %2683 = vperm.xlu0 %4060, %v2652_v50  }
0x134a   : > { %3914 = vmatmul.mubr.msk.bf16.gmra.mrb[84].mxu1 %vm481_vm1, %v5264_v18 }
0x134b   : > { %3917 = vmatprep.mubr.msk.bf16.mxu1 %vm4311_vm0, %v6018_v19 }
0x134d   : > { %2693 = vperm.xlu0 %4060, %v2654_v61  }
0x1352   : > { %3918 = vmatmul.mubr.msk.bf16.gmra.mrb[88].mxu1 %vm481_vm1, %v5279_v15 }
0x1364   : > { %v2367_v32 = vpop.permute.xlu1 %2366 }
0x1368   : > { %v2377_v1 = vpop.permute.xlu1 %2376 }
0x136c   : > { %v2387_v56 = vpop.permute.xlu1 %2386 }
0x13ac   : > { %v5693_v0 = vpop.permute.xlu0 %2698 }
0x13b0   : > { %v2372_v2 = vpop.permute.xlu0 %2371 }
0x13b4   : > { %v2382_v41 = vpop.permute.xlu0 %2381 }
0x13be   : > { %v3879_v34 = vpop.f32.mrb[64].mxu1 }
0x13bf   : > { %v2447_v36 = vadd.f32 %v3879_v34, %v2377_v1  ;;  %v2438_v23 = vpop.f32.mrb[65].mxu1 }
0x13c0   : > { %v2439_v21 = vadd.f32 %v2438_v23, %v2367_v32  ;;  %v3880_v18 = vpop.f32.mrb[66].mxu1  ;;  %v2392_v32 = vpop.permute.xlu0 %2391 }
0x13c1   : > { %v3432_v33 = vmul.f32 -1.442695, %v2447_v36  ;;  %v2450_v44 = vadd.f32 %v3880_v18, %v2382_v41  ;;  %v2441_v49 = vpop.f32.mrb[67].mxu1 }
0x13c2   : > { %v3430_v7 = vmul.f32 -1.442695, %v2439_v21  ;;  %v2442_v12 = vadd.f32 %v2441_v49, %v2372_v2 }
0x13c3   : > { %4172 = vpow2.f32 %v3432_v33  ;;  %v3433_v4 = vmul.f32 -1.442695, %v2450_v44 }
0x13c4   : > { %4174 = vpow2.f32 %v3430_v7  ;;  %v3431_v15 = vmul.f32 -1.442695, %v2442_v12 }
0x13c5   : > { %4176 = vpow2.f32 %v3433_v4 }
0x13c6   : > { %4178 = vpow2.f32 %v3431_v15  ;;  %v5695_v50 = vpop.f32.mrb[68].mxu1 }
0x13c7   : > { %v2454_v61 = vpop.f32.mrb[69].mxu1 }
0x13c8   : > { %v2455_v1 = vadd.f32 %v2454_v61, %v2387_v56  ;;  %v5697_v34 = vpop.f32.mrb[70].mxu1 }
0x13c9   : > { %v2457_v23 = vpop.f32.mrb[71].mxu1 }
0x13ca   : > { %v3434_v24 = vmul.f32 -1.442695, %v2455_v1  ;;  %v2458_v41 = vadd.f32 %v2457_v23, %v2392_v32 }
0x13cc   : > { %4180 = vpow2.f32 %v3434_v24  ;;  %v3435_v18 = vmul.f32 -1.442695, %v2458_v41 }
0x13cd   : > { %v4173_v2 = vpop.eup %4172 }
0x13ce   : > { %v4175_v33 = vpop.eup %4174  ;;  %v2495_v49 = vadd.f32 1.0, %v4173_v2  ;;  %4182 = vpow2.f32 %v3435_v18 }
0x13cf   : > { %v4177_v7 = vpop.eup %4176  ;;  %v2493_v4 = vadd.f32 1.0, %v4175_v33 }
0x13d0   : > { %v4179_v15 = vpop.eup %4178  ;;  %4184 = vrcp.f32 %v2495_v49  ;;  %v2496_v46 = vadd.f32 1.0, %v4177_v7 }
0x13d1   : > { %4186 = vrcp.f32 %v2493_v4  ;;  %v2494_v45 = vadd.f32 1.0, %v4179_v15 }
0x13d2   : > { %4188 = vrcp.f32 %v2496_v46 }
0x13d3   : > { %4190 = vrcp.f32 %v2494_v45 }
0x13d6   : > { %v4181_v56 = vpop.eup %4180 }
0x13d7   : > { %v2497_v61 = vadd.f32 1.0, %v4181_v56 }
0x13d8   : > { %v4183_v27 = vpop.eup %4182 }
0x13d9   : > { %4192 = vrcp.f32 %v2497_v61  ;;  %v2498_v32 = vadd.f32 1.0, %v4183_v27 }
0x13da   : > { %v4185_v24 = vpop.eup %4184 }
0x13db   : > { %v4187_v23 = vpop.eup %4186  ;;  %4194 = vrcp.f32 %v2498_v32  ;;  %v2519_v18 = vmul.f32 %v4185_v24, %v2447_v36 }
0x13dc   : > { %v4189_v3 = vpop.eup %4188  ;;  %v2517_v33 = vmul.f32 %v4187_v23, %v2439_v21 }
0x13dd   : > { %v4191_v2 = vpop.eup %4190  ;;  %v2520_v43 = vmul.f32 %v4189_v3, %v2450_v44 }
0x13de   : > { %v2518_v60 = vmul.f32 %v4191_v2, %v2442_v12 }
0x13df   : > { %v2526_v49 = vpack.c.bf16 %v2520_v43, %v2519_v18 }
0x13e0   : > { %v2525_v7 = vpack.c.bf16 %v2518_v60, %v2517_v33 }
0x13e2   : > { %3885 = vmatprep.subr.bf16.mxu0 %v2525_v7 }
0x13e3   : > { %v4193_v4 = vpop.eup %4192  ;;  %3886 = vmatpush3.bf16.msra.mxu0 %v2525_v7 }
0x13e4   : > { %3887 = vmatprep.subr.bf16.mxu0 %v2526_v49  ;;  %v2521_v46 = vmul.f32 %v4193_v4, %v2455_v1 }
0x13e5   : > { %v4195_v45 = vpop.eup %4194 }
0x13e6   : > { %v2522_v15 = vmul.f32 %v4195_v45, %v2458_v41 }
0x13e7   : > { %3888 = vmatpush3.bf16.msra.mxu0 %v2526_v49 }
0x13e8   : > { %v2527_v27 = vpack.c.bf16 %v2522_v15, %v2521_v46  ;;  %v5723_v15 = vld [vmem:[%s5970_s3 + $0x120] sm:$0xff] }
0x13ea   : > { %3889 = vmatprep.subr.bf16.mxu0 %v2527_v27 }
0x13eb   : > { %3890 = vmatpush3.bf16.msra.mxu0 %v2527_v27  ;;  %v2354_v27 = vmul.f32 %v5723_v15, %v5529_v10  ;;  %v4299_v10 = vld [vmem:[%s5970_s3 + $0x58] sm:$0xff] }
0x1405   : > { %v5699_v56 = vpop.f32.mrb[72].mxu1 }
0x1406   : > { %v3903_v61 = vpop.f32.mrb[73].mxu1 }
0x1407   : > { %v5701_v36 = vpop.f32.mrb[74].mxu1 }
0x1408   : > { %v3904_v3 = vpop.f32.mrb[75].mxu1 }
0x1409   : > { %v4297_v3 = vld [vmem:[%s5970_s3 + $0x48] sm:$0xff] }
0x140d   : > { %v5703_v21 = vpop.f32.mrb[76].mxu1 }
0x140e   : > { %v3907_v43 = vpop.f32.mrb[77].mxu1 }
0x140f   : > { %v5705_v60 = vpop.f32.mrb[78].mxu1  ;;  %v2638_v43 = vmul.f32 %v4297_v3, %v5600_v25 }
0x1410   : > { %v3908_v44 = vpop.f32.mrb[79].mxu1 }
0x1411   : > { %v4298_v44 = vld [vmem:[%s5970_s3] sm:$0xff] }
0x1415   : > { %v5707_v12 = vpop.f32.mrb[80].mxu1 }
0x1416   : > { %v3911_v1 = vpop.f32.mrb[81].mxu1 }
0x1417   : > { %v5709_v41 = vpop.f32.mrb[82].mxu1  ;;  %v2647_v1 = vsub.f32 %v4298_v44, %v2638_v43 }
0x1418   : > { %v3912_v32 = vpop.f32.mrb[83].mxu1 }
0x1419   : > { %v2640_v32 = vmul.f32 %v4299_v10, %v5600_v25 }
0x141d   : > { %v5711_v24 = vpop.f32.mrb[84].mxu1 }
0x141e   : > { %v3915_v23 = vpop.f32.mrb[85].mxu1 }
0x141f   : > { %v5713_v2 = vpop.f32.mrb[86].mxu1  ;;  %v2649_v23 = vsub.f32 %v5321_v47, %v2640_v32 }
0x1420   : > { %v3916_v18 = vpop.f32.mrb[87].mxu1 }
0x1421   : > { %v2642_v18 = vmul.f32 %v5327_v8, %v5600_v25 }
0x1425   : > { %v2767_v33 = vpop.f32.mrb[88].mxu1 }
0x1426   : > { %v5716_v49 = vadd.f32 %v2767_v33, %v5693_v0  ;;  %v3919_v7 = vpop.f32.mrb[89].mxu1  ;;  %v5730_v0 = vld [vmem:[%s5970_s3 + $0xe0] sm:$0xff]  ;;  %v2651_v33 = vsub.f32 %v5334_v26, %v2642_v18 }
0x1427   : > { %v2770_v4 = vpop.f32.mrb[90].mxu1  ;;  %v2362_v61 = vsub.f32 %v5730_v0, %v2354_v27  ;;  %v2644_v7 = vmul.f32 %v5340_v6, %v5600_v25 }
0x1428   : > { %v3920_v45 = vpop.f32.mrb[91].mxu1  ;;  %v2773_v46 = vsel %vm569_vm2, %v5716_v49, -inf }
0x1429   : > { %2774 = vmax.xlane.f32.xlu1 %v2773_v46  ;;  %v2653_v4 = vsub.f32 %v5347_v13, %v2644_v7  ;;  %v2402_v45 = vpop.permute.xlu0 %2401 }
0x142a   : > { %v2466_v46 = vadd.f32 %v5697_v34, %v2402_v45 }
0x142c   : > { %v3437_v27 = vmul.f32 -1.442695, %v2466_v46 }
0x142e   : > { %4196 = vpow2.f32 %v3437_v27 }
0x1438   : > { %v4197_v10 = vpop.eup %4196 }
0x1439   : > { %v2500_v13 = vadd.f32 1.0, %v4197_v10 }
0x143a   : > { %2396 = vperm.xlu1 %4059, %v2362_v61  }
0x143e   : > { %2658 = vperm.xlu1 %4059, %v2647_v1  }
0x1442   : > { %2668 = vperm.xlu1 %4059, %v2649_v23  }
0x1446   : > { %2678 = vperm.xlu1 %4059, %v2651_v33  }
0x144a   : > { %2688 = vperm.xlu1 %4059, %v2653_v4  }
0x14b6   : > { %v2775_v61 = vpop.xlane.xlu1 %2774 }
0x14b7   : > { %v2776_v3 = vrot.slane %v2775_v61, 4 }
0x14b9   : > { %v2777_v47 = vmax.f32 %v2775_v61, %v2776_v3 }
0x14ba   : > { %v2397_v43 = vpop.permute.xlu1 %2396 }
0x14bb   : > { %v2778_v8 = vrot.slane %v2777_v47, 2  ;;  %v2463_v44 = vadd.f32 %v5695_v50, %v2397_v43  ;;  %v5757_v50 = vld [vmem:[%s5969_s2 + $0x8] sm:$0xff]  }
0x14bd   : > { %v3436_v26 = vmul.f32 -1.442695, %v2463_v44  ;;  %v2779_v1 = vmax.f32 %v2777_v47, %v2778_v8 }
0x14bf   : > { %4198 = vpow2.f32 %v3436_v26  ;;  %v2780_v6 = vrot.slane %v2779_v1, 1 }
0x14c0   : > { %4200 = vrcp.f32 %v2500_v13 }
0x14c1   : > { %v2781_v25 = vmax.f32 %v2779_v1, %v2780_v6 }
0x14c3   : > { %4039 = vpush %v2781_v25 }
0x14c9   : > { %v4199_v32 = vpop.eup %4198 }
0x14ca   : > { %v2499_v34 = vadd.f32 1.0, %v4199_v32  ;;  %v4201_v23 = vpop.eup %4200 }
0x14cb   : > { %v2524_v33 = vmul.f32 %v4201_v23, %v2466_v46 }
0x14cc   : > { %4202 = vrcp.f32 %v2499_v34 }
0x14d6   : > { %v4203_v18 = vpop.eup %4202 }
0x14d7   : > { %v2523_v7 = vmul.f32 %v4203_v18, %v2463_v44 }
0x14d9   : > { %v2528_v4 = vpack.c.bf16 %v2524_v33, %v2523_v7 }
0x14db   : > { %3891 = vmatprep.subr.bf16.mxu0 %v2528_v4 }
0x14dc   : > { %3892 = vmatpush3.bf16.msra.mxu0 %v2528_v4 }
0x14dd   : > { %3921 = vmatprep.subr.bf16.mxu0 %v6018_v19 }
0x14df   : > { %3894 = vmatmul.mubr.msk.bf16.vlgmr.msra.gmra.mrb[80].mxu0 %vm1159_vm5, %v5757_v50 }
0x14e0   : > { %3922 = vmatpush3.bf16.msra.mxu0 %v5358_v54  ;;  %3937 = vmatprep.mubr.msk.bf16.mxu0 %vm4311_vm0, %v6018_v19 }
0x14e1   : > { %3923 = vmatprep.subr.bf16.mxu0 %v6018_v19 }
0x14e4   : > { %3924 = vmatpush3.bf16.msra.mxu0 %v5367_v63 }
0x14e5   : > { %3925 = vmatprep.subr.bf16.mxu0 %v6018_v19 }
0x14e8   : > { %3926 = vmatpush3.bf16.msra.mxu0 %v5374_v40  ;;  %v2659_v40 = vpop.permute.xlu1 %2658 }
0x14e9   : > { %3927 = vmatprep.subr.bf16.mxu0 %v6018_v19  ;;  %v2736_v3 = vadd.f32 %v5699_v56, %v2659_v40  ;;  %v6055_v56 = vld [vmem:[#allocation11_spill] sm:$0xff] }
0x14ec   : > { %3928 = vmatpush3.bf16.msra.mxu0 %v5381_v16  ;;  %v2664_v16 = vpop.permute.xlu0 %2663 }
0x14ed   : > { %3929 = vmatprep.subr.bf16.mxu0 %v6018_v19 }
0x14f0   : > { %3930 = vmatpush3.bf16.msra.mxu0 %v5388_v17  ;;  %v2669_v17 = vpop.permute.xlu1 %2668  ;;  %v2674_v27 = vpop.permute.xlu0 %2673 }
0x14f1   : > { %3931 = vmatprep.subr.bf16.mxu0 %v6018_v19  ;;  %v2747_v61 = vadd.f32 %v5705_v60, %v2674_v27 }
0x14f4   : > { %s4040_s7 = spop %4039  ;;  %3932 = vmatpush3.bf16.msra.mxu0 %v5395_v52  ;;  %v2739_v52 = vadd.f32 %v5701_v36, %v2664_v16 }
0x14f5   : > { %v2783_v54 = vstv %s4040_s7  ;;  %3933 = vmatprep.subr.bf16.mxu0 %v6018_v19  ;;  %s5901_s7 = scalar_lea.vmem %s5973_s6, %s3477_s24 }
0x14f6   : > { %v2784_v63 = vsub.f32 %v5716_v49, %v2783_v54  ;;  %v2744_v49 = vadd.f32 %v5703_v21, %v2669_v17 }
0x14f8   : > { %v2785_v45 = vmul.f32 1.442695, %v2784_v63  ;;  %3934 = vmatpush3.bf16.msra.mxu0 %v5403_v35 }
0x14f9   : > { %3935 = vmatprep.subr.bf16.mxu0 %v6018_v19 }
0x14fa   : > { %4204 = vpow2.f32 %v2785_v45 }
0x14fc   : > { %3936 = vmatpush3.bf16.msra.mxu0 %v5410_v53 }
0x1504   : > { %v4205_v46 = vpop.eup %4204 }
0x1505   : > { %v2790_v35 = vrot.slane %v4205_v46, %v4639_v37  ;;  %v2797_v36 = vpack.c.bf16 %v4205_v46, %v4205_v46 }
0x1507   : > { %v2791_v47 = vmul.f32 %v2790_v35, %v2736_v3  ;;  %v2792_v43 = vmul.f32 %v2790_v35, %v2739_v52  ;;  %v2793_v8 = vmul.f32 %v2790_v35, %v2744_v49  ;;  %v2794_v44 = vmul.f32 %v2790_v35, %v2747_v61  ;;  %v2679_v3 = vpop.permute.xlu1 %2678  ;;  %v2684_v49 = vpop.permute.xlu0 %2683 }
0x1509   : > { %v2795_v26 = vpack.c.bf16 %v2792_v43, %v2791_v47  ;;  %v2796_v53 = vpack.c.bf16 %v2794_v44, %v2793_v8  ;;  %v2755_v44 = vadd.f32 %v5709_v41, %v2684_v49 }
0x150b   : > { %3938 = vmatmul.mubr.bf16.vlgmr.msra.gmra.mrb[84].mxu0 %v2795_v26  ;;  %v2689_v35 = vpop.permute.xlu1 %2688  ;;  %v2694_v43 = vpop.permute.xlu0 %2693 }
0x150c   : > { %3941 = vmatprep.mubr.msk.bf16.mxu0 %vm4311_vm0, %v6018_v19  ;;  %v2760_v47 = vadd.f32 %v5711_v24, %v2689_v35  ;;  %v2763_v8 = vadd.f32 %v5713_v2, %v2694_v43  ;;  %v6056_v2 = vld [vmem:[#allocation5_spill] sm:$0xff] }
0x150e   : > { %v2923_v26 = vmax.f32 %v2760_v47, 0.0 }
0x1513   : > { %3942 = vmatmul.mubr.bf16.gmra.mrb[88].mxu0 %v2796_v53 }
0x1514   : > { %3945 = vmatprep.mubr.msk.bf16.mxu0 %vm4311_vm0, %v6018_v19 }
0x151b   : > { %3946 = vmatmul.mubr.bf16.gmra.mrb[92].mxu0 %v2797_v36 }
0x151c   : > { %3967 = vmatprep.mubr.msk.bf16.mxu0 %vm481_vm1, %v6055_v56  ;;  %v2924_v56 = vmax.f32 %v2763_v8, 0.0 }
0x15b2   : > { %v5790_v21 = vpop.f32.mrb[80].mxu0 }
0x15b3   : > { %v5792_v60 = vpop.f32.mrb[81].mxu0 }
0x15b4   : > { %v5794_v1 = vpop.f32.mrb[82].mxu0 }
0x15b5   : > { %v5796_v6 = vpop.f32.mrb[83].mxu0 }
0x15de   : > { %v2832_v25 = vpop.f32.mrb[84].mxu0 }
0x15df   : > { %v3939_v10 = vpop.f32.mrb[85].mxu0 }
0x15e0   : > { %v2835_v13 = vpop.f32.mrb[86].mxu0 }
0x15e1   : > { %v3940_v32 = vpop.f32.mrb[87].mxu0 }
0x15e6   : > { %v2840_v34 = vpop.f32.mrb[88].mxu0 }
0x15e7   : > { %v3943_v23 = vpop.f32.mrb[89].mxu0 }
0x15e8   : > { %v2843_v19 = vpop.f32.mrb[90].mxu0 }
0x15e9   : > { %v3944_v18 = vpop.f32.mrb[91].mxu0 }
0x15ee   : > { %v2848_v33 = vpop.f32.mrb[92].mxu0 }
0x15ef   : > { %v2854_v7 = vmax.f32 %v2848_v33, 1e-20  ;;  %v3947_v4 = vpop.f32.mrb[93].mxu0 }
0x15f0   : > { %v2851_v54 = vpop.f32.mrb[94].mxu0 }
0x15f1   : > { %4206 = vrcp.f32 %v2854_v7  ;;  %v3948_v63 = vpop.f32.mrb[95].mxu0  ;;  %v6057_v7 = vld [vmem:[#allocation3_spill] sm:$0xff] }
0x15fb   : > { %v4207_v45 = vpop.eup %4206 }
0x15fc   : > { %v2859_v40 = vrot.slane %v4207_v45, %v4639_v37  ;;  %v2752_v37 = vadd.f32 %v5707_v12, %v2679_v3 }
0x15fe   : > { %v2860_v16 = vmul.f32 %v2859_v40, %v2832_v25  ;;  %v2861_v17 = vmul.f32 %v2859_v40, %v2835_v13  ;;  %v2862_v46 = vmul.f32 %v2859_v40, %v2840_v34  ;;  %v2863_v27 = vmul.f32 %v2859_v40, %v2843_v19  ;;  %v6058_v40 = vld [vmem:[#allocation6_spill] sm:$0xff] }
0x15ff   : > { %v2921_v53 = vmax.f32 %v2752_v37, 0.0  ;;  %v2922_v13 = vmax.f32 %v2755_v44, 0.0 }
0x1600   : > { %v2864_v52 = vpack.c.bf16 %v2861_v17, %v2860_v16  ;;  %v2865_v61 = vpack.c.bf16 %v2863_v27, %v2862_v46  ;;  %v6059_v17 = vld [vmem:[#allocation4_spill] sm:$0xff] }
0x1602   : > { %3951 = vmatprep.mubr.msk.bf16.mxu1 %vm711_vm4, %v2864_v52 }
0x1603   : > { %3952 = vmatmul.mubr.msk.bf16.vlgmr.msra.gmra.mrb[92].mxu1 %vm711_vm4, %v2865_v61 }
0x1604   : > { %3959 = vmatprep.mubr.msk.bf16.mxu1 %vm481_vm1, %v5443_v55 }
0x16d6   : > { %v3953_v36 = vpop.f32.mrb[92].mxu1 }
0x16d7   : > { %v2927_v25 = vmul.f32 %v3953_v36, %v2923_v26  ;;  %v2906_v10 = vpop.f32.mrb[93].mxu1 }
0x16d8   : > { %v2925_v55 = vmul.f32 %v2921_v53, %v2906_v10  ;;  %v3954_v32 = vpop.f32.mrb[94].mxu1 }
0x16d9   : > { %v2928_v34 = vmul.f32 %v3954_v32, %v2924_v56  ;;  %v2909_v23 = vpop.f32.mrb[95].mxu1 }
0x16da   : > { %v2926_v19 = vmul.f32 %v2922_v13, %v2909_v23 }
0x16db   : > { %v2930_v24 = vpack.c.bf16 %v2928_v34, %v2927_v25 }
0x16dc   : > { %v2929_v18 = vpack.c.bf16 %v2926_v19, %v2925_v55 }
0x16de   : > { %3955 = vmatprep.subr.bf16.mxu1 %v2929_v18 }
0x16df   : > { %3956 = vmatpush3.bf16.msra.mxu1 %v2929_v18 }
0x16e0   : > { %3957 = vmatprep.subr.bf16.mxu1 %v2930_v24 }
0x16e3   : > { %3958 = vmatpush3.bf16.msra.mxu1 %v2930_v24 }
0x16e6   : > { %3960 = vmatmul.mubr.msk.bf16.vlgmr.msra.gmra.mrb[96].mxu1 %vm481_vm1, %v5454_v30 }
0x16e7   : > { %3983 = vmatprep.mubr.msk.bf16.mxu1 %vm1159_vm5, %v5461_v38 }
0x17b9   : > { %v3961_v12 = vpop.f32.mrb[96].mxu1 }
0x17ba   : > { %v2965_v41 = vpop.f32.mrb[97].mxu1  ;;  %v2974_v33 = vadd.f32 %v3961_v12, %v6056_v2 }
0x17bb   : > { %v2966_v4 = vadd.f32 %v2965_v41, %v6057_v7  ;;  %v3962_v54 = vpop.f32.mrb[98].mxu1 }
0x17bc   : > { %v2968_v63 = vpop.f32.mrb[99].mxu1  ;;  %v2977_v16 = vadd.f32 %v3962_v54, %v6058_v40  ;;  %v5819_v30 = vadd.f32 %v5478_v58, %v2974_v33 }
0x17bd   : > { %v5814_v45 = vadd.f32 %v5466_v51, %v2966_v4  ;;  %v2969_v46 = vadd.f32 %v2968_v63, %v6059_v17 }
0x17be   : > { %v5825_v27 = vadd.f32 %v5492_v31, %v2977_v16  ;;  %v2998_v58 = vmul.f32 %v5819_v30, %v5819_v30 }
0x17bf   : > { %v5822_v38 = vadd.f32 %v5469_v20, %v2969_v46  ;;  %v2996_v51 = vmul.f32 %v5814_v45, %v5814_v45 }
0x17c0   : > { %v2999_v31 = vmul.f32 %v5825_v27, %v5825_v27 }
0x17c1   : > { %v2984_v52 = vadd.f32 %v5822_v38, %v5814_v45  ;;  %v2997_v61 = vmul.f32 %v5822_v38, %v5822_v38 }
0x17c3   : > { %v2985_v3 = vadd.f32 %v2984_v52, %v5819_v30  ;;  %v3000_v49 = vadd.f32 %v2997_v61, %v2996_v51  ;;  %v6061_v61 = vld [vmem:[#allocation27_spill] sm:$0xff] }
0x17c5   : > { %v2986_v20 = vadd.f32 %v2985_v3, %v5825_v27  ;;  %v3001_v35 = vadd.f32 %v3000_v49, %v2998_v58 }
0x17c7   : > { %2987 = vadd.xlane.f32.xlu1 %v2986_v20  ;;  %v3002_v47 = vadd.f32 %v3001_v35, %v2999_v31 }
0x17c9   : > { %3003 = vadd.xlane.f32.xlu0 %v3002_v47 }
0x1854   : > { %v2988_v43 = vpop.xlane.xlu1 %2987 }
0x1855   : > { %v2989_v37 = vrot.slane %v2988_v43, 4 }
0x1856   : > { %v3004_v8 = vpop.xlane.xlu0 %3003 }
0x1857   : > { %v2990_v44 = vadd.f32 %v2989_v37, %v2988_v43  ;;  %v3005_v26 = vrot.slane %v3004_v8, 4 }
0x1859   : > { %v2991_v53 = vrot.slane %v2990_v44, 2  ;;  %v3006_v36 = vadd.f32 %v3005_v26, %v3004_v8 }
0x185b   : > { %v3007_v56 = vrot.slane %v3006_v36, 2  ;;  %v2992_v25 = vadd.f32 %v2991_v53, %v2990_v44  ;;  %v6064_v44 = vld [vmem:[#allocation18_spill] sm:$0xff]  ;;  %v6065_v53 = vld [vmem:[#allocation13_spill] sm:$0xff] }
0x185d   : > { %v2993_v10 = vrot.slane %v2992_v25, 1  ;;  %v3008_v13 = vadd.f32 %v3007_v56, %v3006_v36 }
0x185f   : > { %v2994_v55 = vadd.f32 %v2993_v10, %v2992_v25  ;;  %v3009_v32 = vrot.slane %v3008_v13, 1  ;;  %v6066_v25 = vld [vmem:[#allocation20_spill] sm:$0xff] }
0x1861   : > { %4041 = vpush %v2994_v55  ;;  %v3010_v34 = vadd.f32 %v3009_v32, %v3008_v13  ;;  %v6067_v13 = vld [vmem:[#allocation14_spill] sm:$0xff] }
0x1863   : > { %4043 = vpush %v3010_v34  ;;  %v6068_v34 = vld [vmem:[#allocation7_spill] sm:$0xff] }
0x1892   : > { %s4042_s8 = spop %4041 }
0x1893   : > { %s3012_s9 = smul.f32 0.00024414063, %s4042_s8 }
0x1894   : > { %s4044_s11 = spop %4043 }
0x1895   : > { %s3014_s13 = smul.f32 %s3012_s9, %s3012_s9 }
0x1896   : > { %s3013_s15 = smul.f32 0.00024414063, %s4044_s11 }
0x1898   : > { %s3015_s16 = ssub.f32 %s3013_s15, %s3014_s13 }
0x189a   : > { %s3016_s17 = smax.f32 %s4312_s10, %s3015_s16 }
0x189b   : > { %s3017_s18 = sadd.f32 1e-05, %s3016_s17 }
0x189d   : > { %v3018_v23 = vstv %s3017_s18 }
0x189e   : > { %4208 = vrsqrt.f32 %v3018_v23  ;;  %v6069_v23 = vld [vmem:[#allocation21_spill] sm:$0xff] }
0x18a8   : > { %v4209_v19 = vpop.eup %4208 }
0x18a9   : > { %4045 = vpush %v4209_v19 }
0x18da   : > { %s4046_s19 = spop %4045 }
0x18db   : > { %v3021_v24 = vstv %s4046_s19  ;;  %s3028_s20 = smul.f32 %s4046_s19, %s3012_s9 }
0x18dc   : > { %v3022_v18 = vmul.f32 %v3021_v24, %v5814_v45  ;;  %v3023_v12 = vmul.f32 %v3021_v24, %v5822_v38  ;;  %v3024_v41 = vmul.f32 %v3021_v24, %v5819_v30  ;;  %v3025_v2 = vmul.f32 %v3021_v24, %v5825_v27  ;;  %v6070_v24 = vld [vmem:[#allocation9_spill] sm:$0xff] }
0x18dd   : > { %v3029_v33 = vstv %s3028_s20 }
0x18de   : > { %v3026_v7 = vpack.c.bf16 %v3023_v12, %v3022_v18  ;;  %v3031_v4 = vmul.f32 %v5610_v62, %v3029_v33  ;;  %v3030_v54 = vmul.f32 %v5536_v9, %v3029_v33  ;;  %v3032_v16 = vmul.f32 %v5549_v48, %v3029_v33  ;;  %v6071_v12 = vld [vmem:[#allocation15_spill] sm:$0xff] }
0x18df   : > { %v3033_v17 = vmul.f32 %v5624_v5, %v3029_v33  ;;  %v3027_v46 = vpack.c.bf16 %v3025_v2, %v3024_v41  ;;  %v3034_v9 = vmul.f32 %v5563_v22, %v3029_v33  ;;  %v3035_v51 = vmul.f32 %v5641_v11, %v3029_v33  ;;  %v6060_v5 = vld [vmem:[#allocation29_spill] sm:$0xff]  ;;  %v6072_v2 = vld [vmem:[#allocation23_spill] sm:$0xff] }
0x18e0   : > { %3963 = vmatprep.subr.bf16.mxu0 %v3026_v7  ;;  %v3039_v63 = vsub.f32 %v5618_v28, %v3031_v4  ;;  %v3038_v40 = vsub.f32 %v5543_v39, %v3030_v54  ;;  %v3040_v52 = vsub.f32 %v5557_v29, %v3032_v16  ;;  %v3036_v28 = vmul.f32 %v5723_v15, %v3029_v33  ;;  %v326_v15 = vld [vmem:[%s5970_s3 + $0x140] sm:$0xff]  ;;  %v6075_v16 = vld [vmem:[#allocation12_spill] sm:$0xff] }
0x18e1   : > { %3964 = vmatpush3.bf16.msra.mxu0 %v3026_v7  ;;  %v3041_v62 = vsub.f32 %v5635_v42, %v3033_v17  ;;  %v3042_v39 = vsub.f32 %v5578_v14, %v3034_v9  ;;  %v3043_v48 = vsub.f32 %v5651_v57, %v3035_v51  ;;  %v3037_v29 = vmul.f32 %v6060_v5, %v3029_v33  ;;  %v6062_v42 = vld [vmem:[#allocation30_spill] sm:$0xff]  ;;  %v325_v14 = vld [vmem:[%s5970_s3 + $0x138] sm:$0xff]  ;;  %v6063_v57 = vld [vmem:[#allocation28_spill] sm:$0xff] }
0x18e2   : > { %3053 = vperm.xlu1 %4059, %v3039_v63   ;;  %3048 = vperm.xlu0 %4060, %v3038_v40   ;;  %v3044_v22 = vsub.f32 %v5730_v0, %v3036_v28  ;;  %v327_v0 = vld [vmem:[%s5970_s3 + $0x148] sm:$0xff]  ;;  %v6073_v7 = vld [vmem:[#allocation25_spill] sm:$0xff]  ;;  %v6077_v9 = vld [vmem:[#allocation2_spill] sm:$0xff] }
0x18e3   : > { %3965 = vmatprep.subr.bf16.mxu0 %v3027_v46  ;;  %v3045_v11 = vsub.f32 %v6062_v42, %v3037_v29  ;;  %v6079_v5 = vld [vmem:[#allocation22_spill] sm:$0xff] }
0x18e4   : > { %v6080_v29 = vld [vmem:[#allocation10_spill] sm:$0xff] }
0x18e5   : > { %3966 = vmatpush3.bf16.msra.mxu0 %v3027_v46 }
0x18e6   : > { %3058 = vperm.xlu1 %4059, %v3040_v52   ;;  %3063 = vperm.xlu0 %4060, %v3041_v62   ;;  %v6076_v52 = vld [vmem:[#allocation19_spill] sm:$0xff] }
0x18e8   : > { %3968 = vmatmul.mubr.msk.bf16.vlgmr.msra.gmra.mrb[96].mxu0 %vm481_vm1, %v5571_v59  ;;  %v324_v59 = vld [vmem:[%s5970_s3 + $0x130] sm:$0xff] }
0x18e9   : > { %3971 = vmatprep.mubr.msk.bf16.mxu0 %vm481_vm1, %v6061_v61 }
0x18ea   : > { %3068 = vperm.xlu1 %4059, %v3042_v39   ;;  %3073 = vperm.xlu0 %4060, %v3043_v48   ;;  %v6078_v48 = vld [vmem:[#allocation8_spill] sm:$0xff] }
0x18ee   : > { %3078 = vperm.xlu1 %4059, %v3044_v22   ;;  %3083 = vperm.xlu0 %4060, %v3045_v11   ;;  %v6081_v22 = vld [vmem:[#allocation24_spill] sm:$0xff] }
0x18ef   : > { %v6082_v11 = vld [vmem:[#allocation16_spill] sm:$0xff] }
0x18f0   : > { %3972 = vmatmul.mubr.msk.bf16.gmra.mrb[100].mxu0 %vm481_vm1, %v6063_v57 }
0x18f2   : > { %1131 = vperm.xlu1 %4059, %v324_v59   ;;  %1136 = vperm.xlu0 %4060, %v325_v14   ;;  %v6083_v14 = vld [vmem:[#allocation26_spill] sm:$0xff] }
0x18f6   : > { %1141 = vperm.xlu1 %4059, %v326_v15   ;;  %1146 = vperm.xlu0 %4060, %v327_v0  }
0x1961   : > { %v3054_v3 = vpop.permute.xlu1 %3053  ;;  %v3049_v58 = vpop.permute.xlu0 %3048 }
0x1965   : > { %v3059_v49 = vpop.permute.xlu1 %3058  ;;  %v3064_v20 = vpop.permute.xlu0 %3063 }
0x1969   : > { %v5878_v31 = vpop.permute.xlu1 %3068  ;;  %v5880_v35 = vpop.permute.xlu0 %3073 }
0x196d   : > { %v3079_v47 = vpop.permute.xlu1 %3078  ;;  %v5882_v43 = vpop.permute.xlu0 %3083 }
0x1971   : > { %v5884_v37 = vpop.permute.xlu1 %1131  ;;  %v5886_v8 = vpop.permute.xlu0 %1136 }
0x1972   : > { %v1201_v26 = vadd.f32 %v6064_v44, %v5884_v37  ;;  %v1882_v36 = vadd.f32 %v6065_v53, %v5884_v37  ;;  %v2564_v56 = vadd.f32 %v5792_v60, %v5884_v37  ;;  %v1204_v10 = vadd.f32 %v6066_v25, %v5886_v8 }
0x1973   : > { %v1885_v55 = vadd.f32 %v6067_v13, %v5886_v8  ;;  %v2567_v32 = vadd.f32 %v5796_v6, %v5886_v8  ;;  %v6074_v6 = vld [vmem:[#allocation17_spill] sm:$0xff] }
0x1974   : > { %v1215_v60 = vadd.f32 %v1201_v26, %v6068_v34  ;;  %v1896_v19 = vadd.f32 %v1882_v36, %v6069_v23  ;;  %v1216_v18 = vadd.f32 %v1204_v10, %v6070_v24  ;;  %v2578_v41 = vadd.f32 %v2564_v56, %v6071_v12 }
0x1975   : > { %v1897_v33 = vadd.f32 %v1885_v55, %v6072_v2  ;;  %v2579_v4 = vadd.f32 %v2567_v32, %v6073_v7  ;;  %v5913_v54 = vpop.permute.xlu1 %1141  ;;  %v5915_v63 = vpop.permute.xlu0 %1146 }
0x1976   : > { %1219 = vst [vmem:[%s5901_s7] sm:$0xff] %v1215_v60  ;;  %1220 = vst [vmem:[%s5901_s7 + $0x8] sm:$0xff] %v1216_v18  ;;  %v1209_v40 = vadd.f32 %v6074_v6, %v5913_v54  ;;  %v1890_v17 = vadd.f32 %v6075_v16, %v5913_v54  ;;  %v2572_v46 = vadd.f32 %v5790_v21, %v5913_v54 }
0x1977   : > { %v1212_v62 = vadd.f32 %v6076_v52, %v5915_v63  ;;  %3409 = vst [vmem:[%s5901_s7 + $0x20] sm:$0xff] %v1896_v19  ;;  %3410 = vst [vmem:[%s5901_s7 + $0x28] sm:$0xff] %v1897_v33  ;;  %v1893_v51 = vadd.f32 %v6077_v9, %v5915_v63  ;;  %v2575_v39 = vadd.f32 %v5794_v1, %v5915_v63 }
0x1978   : > { %3440 = vst [vmem:[%s5901_s7 + $0x40] sm:$0xff] %v2578_v41  ;;  %v1217_v28 = vadd.f32 %v1209_v40, %v6078_v48  ;;  %v1898_v21 = vadd.f32 %v1890_v17, %v6079_v5  ;;  %3441 = vst [vmem:[%s5901_s7 + $0x48] sm:$0xff] %v2579_v4  ;;  %v2580_v59 = vadd.f32 %v2572_v46, %v6082_v11 }
0x1979   : > { %v1218_v61 = vadd.f32 %v1212_v62, %v6080_v29  ;;  %v1899_v42 = vadd.f32 %v1893_v51, %v6081_v22  ;;  %v2581_v57 = vadd.f32 %v2575_v39, %v6083_v14 }
0x197a   : > { %1221 = vst [vmem:[%s5901_s7 + $0x10] sm:$0xff] %v1217_v28  ;;  %3411 = vst [vmem:[%s5901_s7 + $0x30] sm:$0xff] %v1898_v21 }
0x197b   : > { %1222 = vst [vmem:[%s5901_s7 + $0x18] sm:$0xff] %v1218_v61  ;;  %3412 = vst [vmem:[%s5901_s7 + $0x38] sm:$0xff] %v1899_v42 }
0x197c   : > { %3442 = vst [vmem:[%s5901_s7 + $0x50] sm:$0xff] %v2580_v59  ;;  %3443 = vst [vmem:[%s5901_s7 + $0x58] sm:$0xff] %v2581_v57 }
0x19bb   : > { %v3969_v1 = vpop.f32.mrb[96].mxu0 }
0x19bc   : > { %v3129_v15 = vadd.f32 %v3969_v1, %v3059_v49  ;;  %v3120_v0 = vpop.f32.mrb[97].mxu0 }
0x19bd   : > { %v3121_v44 = vadd.f32 %v3120_v0, %v3049_v58  ;;  %v3970_v26 = vpop.f32.mrb[98].mxu0 }
0x19be   : > { %v3463_v53 = vmul.f32 -1.442695, %v3129_v15  ;;  %v3132_v36 = vadd.f32 %v3970_v26, %v3064_v20  ;;  %v3123_v56 = vpop.f32.mrb[99].mxu0 }
0x19bf   : > { %v3461_v25 = vmul.f32 -1.442695, %v3121_v44  ;;  %v3124_v10 = vadd.f32 %v3123_v56, %v3054_v3 }
0x19c0   : > { %4210 = vpow2.f32 %v3463_v53  ;;  %v3464_v13 = vmul.f32 -1.442695, %v3132_v36 }
0x19c1   : > { %4212 = vpow2.f32 %v3461_v25  ;;  %v3462_v55 = vmul.f32 -1.442695, %v3124_v10 }
0x19c2   : > { %4214 = vpow2.f32 %v3464_v13 }
0x19c3   : > { %4216 = vpow2.f32 %v3462_v55  ;;  %v3973_v32 = vpop.f32.mrb[100].mxu0 }
0x19c4   : > { %v3145_v34 = vadd.f32 %v3973_v32, %v3079_v47  ;;  %v3136_v60 = vpop.f32.mrb[101].mxu0 }
0x19c5   : > { %v3137_v23 = vadd.f32 %v3136_v60, %v5878_v31  ;;  %v3974_v49 = vpop.f32.mrb[102].mxu0 }
0x19c6   : > { %v3467_v19 = vmul.f32 -1.442695, %v3145_v34  ;;  %v3148_v58 = vadd.f32 %v3974_v49, %v5882_v43  ;;  %v3139_v24 = vpop.f32.mrb[103].mxu0 }
0x19c7   : > { %v3465_v20 = vmul.f32 -1.442695, %v3137_v23  ;;  %v3140_v18 = vadd.f32 %v3139_v24, %v5880_v35 }
0x19c8   : > { %4218 = vpow2.f32 %v3467_v19  ;;  %v3468_v3 = vmul.f32 -1.442695, %v3148_v58 }
0x19c9   : > { %4220 = vpow2.f32 %v3465_v20  ;;  %v3466_v12 = vmul.f32 -1.442695, %v3140_v18 }
0x19ca   : > { %v4211_v41 = vpop.eup %4210  ;;  %4222 = vpow2.f32 %v3468_v3 }
0x19cb   : > { %v4213_v2 = vpop.eup %4212  ;;  %v3177_v33 = vadd.f32 1.0, %v4211_v41  ;;  %4224 = vpow2.f32 %v3466_v12 }
0x19cc   : > { %v4215_v47 = vpop.eup %4214  ;;  %v3175_v7 = vadd.f32 1.0, %v4213_v2 }
0x19cd   : > { %v4217_v31 = vpop.eup %4216  ;;  %4226 = vrcp.f32 %v3177_v33  ;;  %v3178_v4 = vadd.f32 1.0, %v4215_v47 }
0x19ce   : > { %4228 = vrcp.f32 %v3175_v7  ;;  %v3176_v43 = vadd.f32 1.0, %v4217_v31 }
0x19cf   : > { %4230 = vrcp.f32 %v3178_v4 }
0x19d0   : > { %4232 = vrcp.f32 %v3176_v43 }
0x19d2   : > { %v4219_v6 = vpop.eup %4218 }
0x19d3   : > { %v4221_v35 = vpop.eup %4220  ;;  %v3181_v40 = vadd.f32 1.0, %v4219_v6 }
0x19d4   : > { %v4223_v16 = vpop.eup %4222  ;;  %v3179_v17 = vadd.f32 1.0, %v4221_v35 }
0x19d5   : > { %v4225_v46 = vpop.eup %4224  ;;  %4234 = vrcp.f32 %v3181_v40  ;;  %v3182_v52 = vadd.f32 1.0, %v4223_v16 }
0x19d6   : > { %4236 = vrcp.f32 %v3179_v17  ;;  %v3180_v62 = vadd.f32 1.0, %v4225_v46 }
0x19d7   : > { %v4227_v9 = vpop.eup %4226  ;;  %4238 = vrcp.f32 %v3182_v52 }
0x19d8   : > { %v4229_v51 = vpop.eup %4228  ;;  %4240 = vrcp.f32 %v3180_v62  ;;  %v3201_v28 = vmul.f32 %v4227_v9, %v3129_v15 }
0x19d9   : > { %v4231_v39 = vpop.eup %4230  ;;  %v3199_v21 = vmul.f32 %v4229_v51, %v3121_v44 }
0x19da   : > { %v4233_v48 = vpop.eup %4232  ;;  %v3202_v5 = vmul.f32 %v4231_v39, %v3132_v36 }
0x19db   : > { %v3200_v29 = vmul.f32 %v4233_v48, %v3124_v10 }
0x19dc   : > { %v3208_v61 = vpack.c.bf16 %v3202_v5, %v3201_v28 }
0x19dd   : > { %v3207_v22 = vpack.c.bf16 %v3200_v29, %v3199_v21 }
0x19df   : > { %v4235_v42 = vpop.eup %4234  ;;  %3975 = vmatprep.subr.bf16.mxu1 %v3207_v22 }
0x19e0   : > { %v4237_v11 = vpop.eup %4236  ;;  %3976 = vmatpush3.bf16.msra.mxu1 %v3207_v22  ;;  %v3205_v57 = vmul.f32 %v4235_v42, %v3145_v34 }
0x19e1   : > { %v4239_v59 = vpop.eup %4238  ;;  %3977 = vmatprep.subr.bf16.mxu1 %v3208_v61  ;;  %v3203_v0 = vmul.f32 %v4237_v11, %v3137_v23 }
0x19e2   : > { %v4241_v14 = vpop.eup %4240  ;;  %v3206_v1 = vmul.f32 %v4239_v59, %v3148_v58 }
0x19e3   : > { %v3204_v26 = vmul.f32 %v4241_v14, %v3140_v18 }
0x19e4   : > { %3978 = vmatpush3.bf16.msra.mxu1 %v3208_v61  ;;  %v3210_v53 = vpack.c.bf16 %v3206_v1, %v3205_v57 }
0x19e5   : > { %v3209_v56 = vpack.c.bf16 %v3204_v26, %v3203_v0 }
0x19e7   : > { %3979 = vmatprep.subr.bf16.mxu1 %v3209_v56 }
0x19e8   : > { %3980 = vmatpush3.bf16.msra.mxu1 %v3209_v56 }
0x19e9   : > { %3981 = vmatprep.subr.bf16.mxu1 %v3210_v53 }
0x19ec   : > { %3982 = vmatpush3.bf16.msra.mxu1 %v3210_v53 }
0x19ef   : > { %3984 = vmatmul.mubr.msk.bf16.vlgmr.msra.gmra.mrb[100].mxu1 %vm1159_vm5, %v5757_v50 }
0x1ac2   : > { %v3985_v15 = vpop.f32.mrb[100].mxu1 }
0x1ac3   : > { %v3254_v44 = vadd.f32 %v3985_v15, %v5913_v54  ;;  %v3245_v36 = vpop.f32.mrb[101].mxu1 }
0x1ac4   : > { %v3246_v25 = vadd.f32 %v3245_v36, %v5884_v37  ;;  %v3986_v10 = vpop.f32.mrb[102].mxu1 }
0x1ac5   : > { %v3262_v13 = vadd.f32 %v3254_v44, %v5819_v30  ;;  %v3257_v55 = vadd.f32 %v3986_v10, %v5915_v63  ;;  %v3248_v32 = vpop.f32.mrb[103].mxu1 }
0x1ac6   : > { %v3260_v34 = vadd.f32 %v3246_v25, %v5814_v45  ;;  %v3249_v60 = vadd.f32 %v3248_v32, %v5886_v8 }
0x1ac7   : > { %3473 = vst [vmem:[%s5901_s7 + $0x70] sm:$0xff] %v3262_v13  ;;  %v3263_v50 = vadd.f32 %v3257_v55, %v5825_v27 }
0x1ac8   : > { %3471 = vst [vmem:[%s5901_s7 + $0x60] sm:$0xff] %v3260_v34  ;;  %v3261_v23 = vadd.f32 %v3249_v60, %v5822_v38 }
0x1ac9   : > { %3474 = vst [vmem:[%s5901_s7 + $0x78] sm:$0xff] %v3263_v50 }
0x1aca   : > { %3472 = vst [vmem:[%s5901_s7 + $0x68] sm:$0xff] %v3261_v23 }
0x1acb PF: > { %s16_s21 = sadd.s32 1, %s4307_s21  }
0x1acc   : > { %p13_p4 = scmp.ge.s32.totalorder %s16_s21, 4  }
0x1ace   :  { %15 = sbr.rel (!%p13_p4) target bundleno = 1 (0x1), region = 80 }

</bundles_post_ra>
